<compile_context>
chip_gen: v7x
topology: tpu7x:2x2x1
jax: 0.10.0
libtpu: 0.0.40
codegen_flags: <defaults>
</compile_context>

<pallas_src>
import functools

import jax
import jax.numpy as jnp
import numpy as np
from jax import lax
from jax.experimental import pallas as pl
from jax.experimental.pallas import tpu as pltpu

GCN_DIM = 300       # hard-coded in the PyTorch module (self.gcn_dim = 300)
G_PAD = 384         # GCN_DIM rounded up to a multiple of 128 (lane aligned)
LN_EPS = 1e-6       # LayerNorm eps


# --------------------------------------------------------------------------- #
# Kernel
# --------------------------------------------------------------------------- #
def gcn_kernel(x_ref, adj_ref, wxx_ref, bxx_ref, w_ref, bw_ref, out_ref, *,
               num_layers, small_l):
    """One grid step processes `bt` batch elements end-to-end.

    x_ref   : (bt, L, H)       bert_input slice (native dtype, upcast here)
    adj_ref : (bt, L, L)       head-averaged (attn * mask) adjacency
    wxx_ref : (H, G_PAD)       Wxx^T with LayerNorm a_2 folded in, zero padded
    bxx_ref : (1, G_PAD)       Wxx bias with (b_2 @ Wxx^T) folded in, padded
    w_ref   : (G_PAD, G_PAD)   W^T zero padded
    bw_ref  : (1, G_PAD)       W bias zero padded
    out_ref : (bt, L, G_PAD)
    """
    x = x_ref[...].astype(jnp.float32)
    bt, L, H = x.shape
    M = bt * L
    x2 = x.reshape(M, H)

    # LayerNorm core (a_2 / b_2 are folded into Wxx / bxx by the wrapper).
    # torch.std is the unbiased estimator (divide by H-1); keep the
    # (std + eps) form and an EXACT reciprocal (approx=True risks the 1e-4
    # self-check).
    mean = jnp.mean(x2, axis=-1, keepdims=True)
    var = jnp.sum((x2 - mean) ** 2, axis=-1, keepdims=True) * (1.0 / (H - 1))
    inv_std = pl.reciprocal(jnp.sqrt(var) + LN_EPS, approx=False)
    xn = (x2 - mean) * inv_std

    # gcn_input = Wxx(layernorm(bert_input)): one (M, H) @ (H, G_PAD) matmul.
    wxx = wxx_ref[...]
    g = jnp.dot(xn.astype(wxx.dtype), wxx,
                preferred_element_type=jnp.float32) + bxx_ref[...]

    # Hoist loop-invariant operands (weights, bias broadcast, adjacency cast)
    # out of the layer loop -- JAX does not CSE broadcast_in_dim.
    w = w_ref[...]
    mm_dtype = w.dtype
    bw2 = jnp.broadcast_to(bw_ref[...], (M, G_PAD))
    if small_l:
        adj_f = adj_ref[...].astype(jnp.float32)       # (bt, L, L)
    else:
        adj_c = adj_ref[...].astype(mm_dtype)

    def layer_body(_, g):
        g3 = g.reshape(bt, L, G_PAD)
        if small_l:
            # Tiny L: do the adjacency contraction on the VPU.  A per-batch
            # (L, L) @ (L, G_PAD) MXU matmul would fill only L of the 128/256
            # MXU rows and pay push/drain latency per batch element.
            ax = adj_f[:, :, 0:1] * g3[:, 0:1, :]
            for j in range(1, L):
                ax = ax + adj_f[:, :, j:j + 1] * g3[:, j:j + 1, :]
        else:
            ax = jnp.einsum('bij,bjd->bid', adj_c, g3.astype(mm_dtype),
                            preferred_element_type=jnp.float32)
        ax2 = jnp.dot(ax.reshape(M, G_PAD).astype(mm_dtype), w,
                      preferred_element_type=jnp.float32) + bw2
        return jnp.maximum(ax2, 0.0)                   # ReLU

    # fori_loop bounds live ranges (vs. an unbounded static unroll); fully
    # unroll for shallow GCNs so the scheduler still sees straight-line code.
    g = lax.fori_loop(0, num_layers, layer_body, g, unroll=(num_layers <= 4))

    out_ref[...] = g.reshape(bt, L, G_PAD)


# --------------------------------------------------------------------------- #
# Tiling / VMEM heuristics
# --------------------------------------------------------------------------- #
def _vmem_capacity_bytes():
    """Physical VMEM per core; conservative (v7x, 64 MiB) fallback."""
    try:
        cap = getattr(pltpu.get_tpu_info(), "vmem_capacity_bytes", None)
        if cap:
            return int(cap)
    except Exception:
        pass
    return 64 << 20


def _step_vmem_bytes(bt, Lp, H, x_bytes, adj_bytes, w_bytes):
    io = 2 * bt * Lp * (H * x_bytes + Lp * adj_bytes + G_PAD * 4)   # dbl-buffered x/adj/out
    weights = 2 * ((H + G_PAD) * G_PAD * w_bytes + 2 * G_PAD * 4)   # worst case dbl-buffered
    live = bt * Lp * (6 * G_PAD + Lp + H) * 4                       # in-kernel f32 temporaries
    return io + weights + live


def _pick_block_batch(B, Lp, H, x_bytes, adj_bytes, w_bytes, vmem_budget,
                      row_cap=2048):
    """Largest divisor bt of B whose step fits the VMEM budget and keeps
    bt*Lp <= row_cap.  Prefer >=2 grid steps (both v7x TensorCores) only when
    each step still feeds the MXU >= 256 rows; otherwise one big step wins."""
    feasible = [bt for bt in range(1, B + 1)
                if B % bt == 0 and bt * Lp <= row_cap
                and _step_vmem_bytes(bt, Lp, H, x_bytes, adj_bytes,
                                     w_bytes) <= vmem_budget]
    if not feasible:
        return 1
    multi = [bt for bt in feasible if B // bt >= 2 and bt * Lp >= 256]
    return max(multi) if multi else max(feasible)


# --------------------------------------------------------------------------- #
# Wrapper
# --------------------------------------------------------------------------- #
def gcn_forward(bert_input, attn_score, layer_mask, params, *,
                gcn_layers, is_multi_head=True, use_bf16_matmul=False):
    """Returns the padded (B, Lp, G_PAD) output; real data is [:, :L, :300].

    use_bf16_matmul=True trades accuracy for MXU throughput (v6e/v7x) and is
    NOT guaranteed to pass a 1e-4 check against an f32 reference.
    """
    B, L, H = bert_input.shape
    a2, b2, wxx_t, bxx, w_t, bw = params

    # -- adjacency pre-reduction (head mean commutes with the matmul) --------
    if layer_mask is not None:
        weight_adj = attn_score * jnp.swapaxes(layer_mask, 0, 1)
    else:
        weight_adj = attn_score                      # nothing materialized
    if is_multi_head:
        adj_eff = jnp.mean(weight_adj, axis=1)       # (B, L, L)
    else:
        adj_eff = weight_adj                         # already (B, L, L)

    # -- fold LayerNorm affine into Wxx / bxx --------------------------------
    #   (a2*xhat + b2) @ Wxx^T + bxx == xhat @ (a2[:,None]*Wxx^T) + (b2@Wxx^T + bxx)
    wxx_eff = wxx_t * a2.reshape(H, 1)
    bxx_eff = bxx + b2 @ wxx_t

    # -- pad gcn_dim 300 -> 384 (zero pad keeps padded columns exactly 0) ----
    pad = G_PAD - GCN_DIM
    wxx_p = jnp.pad(wxx_eff, ((0, 0), (0, pad)))
    bxx_p = jnp.pad(bxx_eff, ((0, 0), (0, pad))).astype(jnp.float32)
    w_p = jnp.pad(w_t, ((0, pad), (0, pad)))
    bw_p = jnp.pad(bw, ((0, 0), (0, pad))).astype(jnp.float32)

    # -- pad L to a multiple of 8 (sublane aligned) --------------------------
    # Zero adjacency padding keeps the extra rows from contaminating real rows.
    Lp = -(-L // 8) * 8
    x_in = bert_input
    if Lp != L:
        x_in = jnp.pad(x_in, ((0, 0), (0, Lp - L), (0, 0)))
        adj_eff = jnp.pad(adj_eff, ((0, 0), (0, Lp - L), (0, Lp - L)))

    w_dtype = jnp.bfloat16 if use_bf16_matmul else jnp.float32
    adj_eff = adj_eff.astype(w_dtype)
    wxx_p = wxx_p.astype(w_dtype)
    w_p = w_p.astype(w_dtype)

    x_bytes = np.dtype(x_in.dtype).itemsize
    adj_bytes = np.dtype(adj_eff.dtype).itemsize
    w_bytes = np.dtype(w_dtype).itemsize

    vmem_cap = _vmem_capacity_bytes()
    bt = _pick_block_batch(B, Lp, H, x_bytes, adj_bytes, w_bytes,
                           vmem_budget=int(0.7 * vmem_cap))
    grid = (B // bt,)

    # VPU adjacency path only when L is tiny and the unrolled j-loop stays small.
    small_l = (Lp <= 16) and (bt * Lp * Lp * G_PAD * 4 <= (4 << 20))

    kernel = functools.partial(gcn_kernel, num_layers=gcn_layers,
                               small_l=small_l)

    flops = 2 * B * Lp * (H * G_PAD + gcn_layers * (Lp * G_PAD + G_PAD * G_PAD))
    bytes_accessed = (B * Lp * (H * x_bytes + Lp * adj_bytes + G_PAD * 4)
                      + (H + G_PAD) * G_PAD * w_bytes + 2 * G_PAD * 4)
    cost = pl.CostEstimate(flops=flops, transcendentals=2 * B * Lp,
                           bytes_accessed=bytes_accessed)

    step_bytes = _step_vmem_bytes(bt, Lp, H, x_bytes, adj_bytes, w_bytes)
    vmem_limit = int(min(max(32 << 20, step_bytes + (16 << 20)),
                         vmem_cap - (4 << 20)))

    x_spec = pl.BlockSpec((bt, Lp, H), lambda b: (b, 0, 0))
    adj_spec = pl.BlockSpec((bt, Lp, Lp), lambda b: (b, 0, 0))
    out_spec = pl.BlockSpec((bt, Lp, G_PAD), lambda b: (b, 0, 0))
    w_shapes = [(H, G_PAD), (1, G_PAD), (G_PAD, G_PAD), (1, G_PAD)]

    def run(single_buffer_weights):
        if single_buffer_weights:
            # Weight index_maps are constant across the grid: single-buffer
            # them to free VMEM (most valuable under v7x's 64 MiB ceiling).
            wkw = dict(pipeline_mode=pl.Buffered(1))
        else:
            wkw = {}
        w_specs = [pl.BlockSpec(s, lambda b: (0, 0), **wkw) for s in w_shapes]
        return pl.pallas_call(
            kernel,
            out_shape=jax.ShapeDtypeStruct((B, Lp, G_PAD), jnp.float32),
            grid_spec=pltpu.PrefetchScalarGridSpec(
                num_scalar_prefetch=0,
                grid=grid,
                in_specs=[x_spec, adj_spec] + w_specs,
                out_specs=out_spec,
            ),
            compiler_params=pltpu.CompilerParams(
                dimension_semantics=("parallel",),
                vmem_limit_bytes=vmem_limit),
            cost_estimate=cost,
        )(x_in, adj_eff, wxx_p, bxx_p, w_p, bw_p)

    if hasattr(pl, "Buffered"):
        try:
            return run(True)
        except Exception:
            pass   # this JAX build rejects pipeline_mode / Buffered(1); fall back
    return run(False)


# --------------------------------------------------------------------------- #
# Float64 NumPy reference (mirrors the PyTorch forward exactly, eval mode)
# --------------------------------------------------------------------------- #
def reference_forward_np(bert_input, attn_score, layer_mask, params, *,
                         gcn_layers, is_multi_head=True):
    a2, b2, wxx_t, bxx, w_t, bw = [np.asarray(p, np.float64) for p in params]
    x = np.asarray(bert_input, np.float64)
    attn = np.asarray(attn_score, np.float64)
    mean = x.mean(-1, keepdims=True)
    std = np.sqrt(((x - mean) ** 2).sum(-1, keepdims=True) / (x.shape[-1] - 1))
    x = a2[0] * (x - mean) / (std + LN_EPS) + b2[0]
    gcn_input = x @ wxx_t + bxx[0]
    if layer_mask is not None:
        weight_adj = attn * np.swapaxes(np.asarray(layer_mask, np.float64), 0, 1)
    else:
        weight_adj = attn
    out = gcn_input
    for _ in range(gcn_layers):
        if is_multi_head:
            ax = np.einsum('bhij,bjd->bhid', weight_adj, out).mean(axis=1)
        else:
            ax = np.einsum('bij,bjd->bid', weight_adj, out)
        ax = ax @ w_t + bw[0]
        out = np.maximum(ax, 0.0)
    return out


def init_params(key, hidden_dim):
    """Deterministic init (PyTorch-Linear-style uniform bounds)."""
    ks = jax.random.split(key, 4)
    a2 = jnp.ones((1, hidden_dim), jnp.float32)
    b2 = jnp.zeros((1, hidden_dim), jnp.float32)
    bnd_xx = 1.0 / np.sqrt(hidden_dim)
    wxx_t = jax.random.uniform(ks[0], (hidden_dim, GCN_DIM), jnp.float32,
                               -bnd_xx, bnd_xx)
    bxx = jax.random.uniform(ks[1], (1, GCN_DIM), jnp.float32, -bnd_xx, bnd_xx)
    bnd_w = 1.0 / np.sqrt(GCN_DIM)
    w_t = jax.random.uniform(ks[2], (GCN_DIM, GCN_DIM), jnp.float32,
                             -bnd_w, bnd_w)
    bw = jax.random.uniform(ks[3], (1, GCN_DIM), jnp.float32, -bnd_w, bnd_w)
    return (a2, b2, wxx_t, bxx, w_t, bw)


if __name__ == "__main__":
    # args: gcn_layers=2, attention_heads=4, hidden_dim=32 (dropouts inactive)
    B, L, H, HEADS, LAYERS = 2, 8, 32, 4, 2

    key = jax.random.PRNGKey(0)
    k_x, k_a, k_m, k_p = jax.random.split(key, 4)

    bert_input = jax.random.normal(k_x, (B, L, H), jnp.float32)
    attn_score = jax.random.uniform(k_a, (B, HEADS, L, L), jnp.float32)
    # layer_mask shaped (heads, batch, L, L); the module applies .transpose(0, 1)
    layer_mask = (jax.random.uniform(k_m, (HEADS, B, L, L)) > 0.3).astype(jnp.float32)
    params = init_params(k_p, H)

    out_padded = gcn_forward(bert_input, attn_score, layer_mask, params,
                             gcn_layers=LAYERS, is_multi_head=True)
    out_padded = jax.block_until_ready(out_padded)

    ref = reference_forward_np(bert_input, attn_score, layer_mask, params,
                               gcn_layers=LAYERS, is_multi_head=True)
    # Strip lane/sublane padding on the host (no extra device HBM round trip).
    out = np.asarray(out_padded)[:, :L, :GCN_DIM]
    np.testing.assert_allclose(out, ref, rtol=1e-4, atol=1e-4)
    print("KERNEL_OK")
</pallas_src>

<mosaic_0001>
module attributes {stable_mosaic.version = 11 : i64} {
  func.func @gcn_kernel(%arg0: i32, %arg1: memref<2x8x32xf32, #tpu.memory_space<vmem>>, %arg2: memref<2x8x8xf32, #tpu.memory_space<vmem>>, %arg3: memref<32x384xf32, #tpu.memory_space<vmem>>, %arg4: memref<1x384xf32, #tpu.memory_space<vmem>>, %arg5: memref<384x384xf32, #tpu.memory_space<vmem>>, %arg6: memref<1x384xf32, #tpu.memory_space<vmem>>, %arg7: memref<2x8x384xf32, #tpu.memory_space<vmem>>) attributes {dimension_semantics = [#tpu.dimension_semantics<parallel>], iteration_bounds = array<i64: 1>, scalar_prefetch = 0 : i64, scratch_operands = 0 : i64, tpu.core_type = #tpu.core_type<tc>, window_params = [{transform_indices = @transform_0, window_bounds = array<i64: 2, 8, 32>}, {transform_indices = @transform_1, window_bounds = array<i64: 2, 8, 8>}, {pipeline_mode = #tpu.pipeline_mode<synchronous>, transform_indices = @transform_2, window_bounds = array<i64: 32, 384>}, {pipeline_mode = #tpu.pipeline_mode<synchronous>, transform_indices = @transform_3, window_bounds = array<i64: 1, 384>}, {pipeline_mode = #tpu.pipeline_mode<synchronous>, transform_indices = @transform_4, window_bounds = array<i64: 384, 384>}, {pipeline_mode = #tpu.pipeline_mode<synchronous>, transform_indices = @transform_5, window_bounds = array<i64: 1, 384>}, {transform_indices = @transform_6, window_bounds = array<i64: 2, 8, 384>}]} {
    %c0 = arith.constant 0 : index
    %c0_0 = arith.constant 0 : index
    %c0_1 = arith.constant 0 : index
    %0 = vector.load %arg1[%c0, %c0_0, %c0_1] : memref<2x8x32xf32, #tpu.memory_space<vmem>>, vector<2x8x32xf32>
    %1 = vector.shape_cast %0 : vector<2x8x32xf32> to vector<16x32xf32>
    %cst = arith.constant dense<0.000000e+00> : vector<16xf32>
    %2 = vector.multi_reduction <add>, %1, %cst [1] : vector<16x32xf32> to vector<16xf32>
    %3 = vector.shape_cast %2 : vector<16xf32> to vector<16x1xf32>
    %cst_2 = arith.constant 3.200000e+01 : f32
    %4 = vector.broadcast %cst_2 : f32 to vector<16x1xf32>
    %5 = arith.divf %3, %4 : vector<16x1xf32>
    %6 = vector.broadcast %5 : vector<16x1xf32> to vector<16x32xf32>
    %7 = arith.subf %1, %6 : vector<16x32xf32>
    %8 = arith.mulf %7, %7 : vector<16x32xf32>
    %cst_3 = arith.constant dense<0.000000e+00> : vector<16xf32>
    %9 = vector.multi_reduction <add>, %8, %cst_3 [1] : vector<16x32xf32> to vector<16xf32>
    %10 = vector.shape_cast %9 : vector<16xf32> to vector<16x1xf32>
    %cst_4 = arith.constant 0.0322580636 : f32
    %11 = vector.broadcast %cst_4 : f32 to vector<16x1xf32>
    %12 = arith.mulf %10, %11 : vector<16x1xf32>
    %13 = math.sqrt %12 : vector<16x1xf32>
    %cst_5 = arith.constant 9.99999997E-7 : f32
    %14 = vector.broadcast %cst_5 : f32 to vector<16x1xf32>
    %15 = arith.addf %13, %14 : vector<16x1xf32>
    %16 = tpu.reciprocal %15 : vector<16x1xf32> -> vector<16x1xf32>
    %17 = vector.broadcast %5 : vector<16x1xf32> to vector<16x32xf32>
    %18 = arith.subf %1, %17 : vector<16x32xf32>
    %19 = vector.broadcast %16 : vector<16x1xf32> to vector<16x32xf32>
    %20 = arith.mulf %18, %19 : vector<16x32xf32>
    %c0_6 = arith.constant 0 : index
    %c0_7 = arith.constant 0 : index
    %21 = vector.load %arg3[%c0_6, %c0_7] : memref<32x384xf32, #tpu.memory_space<vmem>>, vector<32x384xf32>
    %cst_8 = arith.constant dense<0.000000e+00> : vector<16x384xf32>
    %22 = tpu.matmul %20, %21, %cst_8 {dimension_numbers = #tpu.dot_dimension_numbers<[1], [0], [0], [1], [0, 0, 1, 1], [], []>} : vector<16x32xf32>, vector<32x384xf32>, vector<16x384xf32> -> vector<16x384xf32>
    %c0_9 = arith.constant 0 : index
    %c0_10 = arith.constant 0 : index
    %23 = vector.load %arg4[%c0_9, %c0_10] : memref<1x384xf32, #tpu.memory_space<vmem>>, vector<1x384xf32>
    %24 = vector.broadcast %23 : vector<1x384xf32> to vector<16x384xf32>
    %25 = arith.addf %22, %24 : vector<16x384xf32>
    %c0_11 = arith.constant 0 : index
    %c0_12 = arith.constant 0 : index
    %26 = vector.load %arg5[%c0_11, %c0_12] : memref<384x384xf32, #tpu.memory_space<vmem>>, vector<384x384xf32>
    %c0_13 = arith.constant 0 : index
    %c0_14 = arith.constant 0 : index
    %27 = vector.load %arg6[%c0_13, %c0_14] : memref<1x384xf32, #tpu.memory_space<vmem>>, vector<1x384xf32>
    %28 = vector.shape_cast %27 : vector<1x384xf32> to vector<1x384xf32>
    %29 = vector.broadcast %28 : vector<1x384xf32> to vector<16x384xf32>
    %c0_15 = arith.constant 0 : index
    %c0_16 = arith.constant 0 : index
    %c0_17 = arith.constant 0 : index
    %30 = vector.load %arg2[%c0_15, %c0_16, %c0_17] : memref<2x8x8xf32, #tpu.memory_space<vmem>>, vector<2x8x8xf32>
    %c0_i32 = arith.constant 0 : i32
    %31 = vector.shape_cast %25 : vector<16x384xf32> to vector<2x8x384xf32>
    %32 = vector.extract_strided_slice %30 {offsets = [0, 0, 0], sizes = [2, 8, 1], strides = [1, 1, 1]} : vector<2x8x8xf32> to vector<2x8x1xf32>
    %33 = vector.extract_strided_slice %31 {offsets = [0, 0, 0], sizes = [2, 1, 384], strides = [1, 1, 1]} : vector<2x8x384xf32> to vector<2x1x384xf32>
    %34 = vector.broadcast %32 : vector<2x8x1xf32> to vector<2x8x384xf32>
    %35 = vector.broadcast %33 : vector<2x1x384xf32> to vector<2x8x384xf32>
    %36 = arith.mulf %34, %35 : vector<2x8x384xf32>
    %37 = vector.extract_strided_slice %30 {offsets = [0, 0, 1], sizes = [2, 8, 1], strides = [1, 1, 1]} : vector<2x8x8xf32> to vector<2x8x1xf32>
    %38 = vector.extract_strided_slice %31 {offsets = [0, 1, 0], sizes = [2, 1, 384], strides = [1, 1, 1]} : vector<2x8x384xf32> to vector<2x1x384xf32>
    %39 = vector.broadcast %37 : vector<2x8x1xf32> to vector<2x8x384xf32>
    %40 = vector.broadcast %38 : vector<2x1x384xf32> to vector<2x8x384xf32>
    %41 = arith.mulf %39, %40 : vector<2x8x384xf32>
    %42 = arith.addf %36, %41 : vector<2x8x384xf32>
    %43 = vector.extract_strided_slice %30 {offsets = [0, 0, 2], sizes = [2, 8, 1], strides = [1, 1, 1]} : vector<2x8x8xf32> to vector<2x8x1xf32>
    %44 = vector.extract_strided_slice %31 {offsets = [0, 2, 0], sizes = [2, 1, 384], strides = [1, 1, 1]} : vector<2x8x384xf32> to vector<2x1x384xf32>
    %45 = vector.broadcast %43 : vector<2x8x1xf32> to vector<2x8x384xf32>
    %46 = vector.broadcast %44 : vector<2x1x384xf32> to vector<2x8x384xf32>
    %47 = arith.mulf %45, %46 : vector<2x8x384xf32>
    %48 = arith.addf %42, %47 : vector<2x8x384xf32>
    %49 = vector.extract_strided_slice %30 {offsets = [0, 0, 3], sizes = [2, 8, 1], strides = [1, 1, 1]} : vector<2x8x8xf32> to vector<2x8x1xf32>
    %50 = vector.extract_strided_slice %31 {offsets = [0, 3, 0], sizes = [2, 1, 384], strides = [1, 1, 1]} : vector<2x8x384xf32> to vector<2x1x384xf32>
    %51 = vector.broadcast %49 : vector<2x8x1xf32> to vector<2x8x384xf32>
    %52 = vector.broadcast %50 : vector<2x1x384xf32> to vector<2x8x384xf32>
    %53 = arith.mulf %51, %52 : vector<2x8x384xf32>
    %54 = arith.addf %48, %53 : vector<2x8x384xf32>
    %55 = vector.extract_strided_slice %30 {offsets = [0, 0, 4], sizes = [2, 8, 1], strides = [1, 1, 1]} : vector<2x8x8xf32> to vector<2x8x1xf32>
    %56 = vector.extract_strided_slice %31 {offsets = [0, 4, 0], sizes = [2, 1, 384], strides = [1, 1, 1]} : vector<2x8x384xf32> to vector<2x1x384xf32>
    %57 = vector.broadcast %55 : vector<2x8x1xf32> to vector<2x8x384xf32>
    %58 = vector.broadcast %56 : vector<2x1x384xf32> to vector<2x8x384xf32>
    %59 = arith.mulf %57, %58 : vector<2x8x384xf32>
    %60 = arith.addf %54, %59 : vector<2x8x384xf32>
    %61 = vector.extract_strided_slice %30 {offsets = [0, 0, 5], sizes = [2, 8, 1], strides = [1, 1, 1]} : vector<2x8x8xf32> to vector<2x8x1xf32>
    %62 = vector.extract_strided_slice %31 {offsets = [0, 5, 0], sizes = [2, 1, 384], strides = [1, 1, 1]} : vector<2x8x384xf32> to vector<2x1x384xf32>
    %63 = vector.broadcast %61 : vector<2x8x1xf32> to vector<2x8x384xf32>
    %64 = vector.broadcast %62 : vector<2x1x384xf32> to vector<2x8x384xf32>
    %65 = arith.mulf %63, %64 : vector<2x8x384xf32>
    %66 = arith.addf %60, %65 : vector<2x8x384xf32>
    %67 = vector.extract_strided_slice %30 {offsets = [0, 0, 6], sizes = [2, 8, 1], strides = [1, 1, 1]} : vector<2x8x8xf32> to vector<2x8x1xf32>
    %68 = vector.extract_strided_slice %31 {offsets = [0, 6, 0], sizes = [2, 1, 384], strides = [1, 1, 1]} : vector<2x8x384xf32> to vector<2x1x384xf32>
    %69 = vector.broadcast %67 : vector<2x8x1xf32> to vector<2x8x384xf32>
    %70 = vector.broadcast %68 : vector<2x1x384xf32> to vector<2x8x384xf32>
    %71 = arith.mulf %69, %70 : vector<2x8x384xf32>
    %72 = arith.addf %66, %71 : vector<2x8x384xf32>
    %73 = vector.extract_strided_slice %30 {offsets = [0, 0, 7], sizes = [2, 8, 1], strides = [1, 1, 1]} : vector<2x8x8xf32> to vector<2x8x1xf32>
    %74 = vector.extract_strided_slice %31 {offsets = [0, 7, 0], sizes = [2, 1, 384], strides = [1, 1, 1]} : vector<2x8x384xf32> to vector<2x1x384xf32>
    %75 = vector.broadcast %73 : vector<2x8x1xf32> to vector<2x8x384xf32>
    %76 = vector.broadcast %74 : vector<2x1x384xf32> to vector<2x8x384xf32>
    %77 = arith.mulf %75, %76 : vector<2x8x384xf32>
    %78 = arith.addf %72, %77 : vector<2x8x384xf32>
    %79 = vector.shape_cast %78 : vector<2x8x384xf32> to vector<16x384xf32>
    %cst_18 = arith.constant dense<0.000000e+00> : vector<16x384xf32>
    %80 = tpu.matmul %79, %26, %cst_18 {dimension_numbers = #tpu.dot_dimension_numbers<[1], [0], [0], [1], [0, 0, 1, 1], [], []>} : vector<16x384xf32>, vector<384x384xf32>, vector<16x384xf32> -> vector<16x384xf32>
    %81 = arith.addf %80, %29 : vector<16x384xf32>
    %cst_19 = arith.constant 0.000000e+00 : f32
    %82 = vector.broadcast %cst_19 : f32 to vector<16x384xf32>
    %83 = arith.maximumf %81, %82 : vector<16x384xf32>
    %c1_i32 = arith.constant 1 : i32
    %84 = vector.shape_cast %83 : vector<16x384xf32> to vector<2x8x384xf32>
    %85 = vector.extract_strided_slice %30 {offsets = [0, 0, 0], sizes = [2, 8, 1], strides = [1, 1, 1]} : vector<2x8x8xf32> to vector<2x8x1xf32>
    %86 = vector.extract_strided_slice %84 {offsets = [0, 0, 0], sizes = [2, 1, 384], strides = [1, 1, 1]} : vector<2x8x384xf32> to vector<2x1x384xf32>
    %87 = vector.broadcast %85 : vector<2x8x1xf32> to vector<2x8x384xf32>
    %88 = vector.broadcast %86 : vector<2x1x384xf32> to vector<2x8x384xf32>
    %89 = arith.mulf %87, %88 : vector<2x8x384xf32>
    %90 = vector.extract_strided_slice %30 {offsets = [0, 0, 1], sizes = [2, 8, 1], strides = [1, 1, 1]} : vector<2x8x8xf32> to vector<2x8x1xf32>
    %91 = vector.extract_strided_slice %84 {offsets = [0, 1, 0], sizes = [2, 1, 384], strides = [1, 1, 1]} : vector<2x8x384xf32> to vector<2x1x384xf32>
    %92 = vector.broadcast %90 : vector<2x8x1xf32> to vector<2x8x384xf32>
    %93 = vector.broadcast %91 : vector<2x1x384xf32> to vector<2x8x384xf32>
    %94 = arith.mulf %92, %93 : vector<2x8x384xf32>
    %95 = arith.addf %89, %94 : vector<2x8x384xf32>
    %96 = vector.extract_strided_slice %30 {offsets = [0, 0, 2], sizes = [2, 8, 1], strides = [1, 1, 1]} : vector<2x8x8xf32> to vector<2x8x1xf32>
    %97 = vector.extract_strided_slice %84 {offsets = [0, 2, 0], sizes = [2, 1, 384], strides = [1, 1, 1]} : vector<2x8x384xf32> to vector<2x1x384xf32>
    %98 = vector.broadcast %96 : vector<2x8x1xf32> to vector<2x8x384xf32>
    %99 = vector.broadcast %97 : vector<2x1x384xf32> to vector<2x8x384xf32>
    %100 = arith.mulf %98, %99 : vector<2x8x384xf32>
    %101 = arith.addf %95, %100 : vector<2x8x384xf32>
    %102 = vector.extract_strided_slice %30 {offsets = [0, 0, 3], sizes = [2, 8, 1], strides = [1, 1, 1]} : vector<2x8x8xf32> to vector<2x8x1xf32>
    %103 = vector.extract_strided_slice %84 {offsets = [0, 3, 0], sizes = [2, 1, 384], strides = [1, 1, 1]} : vector<2x8x384xf32> to vector<2x1x384xf32>
    %104 = vector.broadcast %102 : vector<2x8x1xf32> to vector<2x8x384xf32>
    %105 = vector.broadcast %103 : vector<2x1x384xf32> to vector<2x8x384xf32>
    %106 = arith.mulf %104, %105 : vector<2x8x384xf32>
    %107 = arith.addf %101, %106 : vector<2x8x384xf32>
    %108 = vector.extract_strided_slice %30 {offsets = [0, 0, 4], sizes = [2, 8, 1], strides = [1, 1, 1]} : vector<2x8x8xf32> to vector<2x8x1xf32>
    %109 = vector.extract_strided_slice %84 {offsets = [0, 4, 0], sizes = [2, 1, 384], strides = [1, 1, 1]} : vector<2x8x384xf32> to vector<2x1x384xf32>
    %110 = vector.broadcast %108 : vector<2x8x1xf32> to vector<2x8x384xf32>
    %111 = vector.broadcast %109 : vector<2x1x384xf32> to vector<2x8x384xf32>
    %112 = arith.mulf %110, %111 : vector<2x8x384xf32>
    %113 = arith.addf %107, %112 : vector<2x8x384xf32>
    %114 = vector.extract_strided_slice %30 {offsets = [0, 0, 5], sizes = [2, 8, 1], strides = [1, 1, 1]} : vector<2x8x8xf32> to vector<2x8x1xf32>
    %115 = vector.extract_strided_slice %84 {offsets = [0, 5, 0], sizes = [2, 1, 384], strides = [1, 1, 1]} : vector<2x8x384xf32> to vector<2x1x384xf32>
    %116 = vector.broadcast %114 : vector<2x8x1xf32> to vector<2x8x384xf32>
    %117 = vector.broadcast %115 : vector<2x1x384xf32> to vector<2x8x384xf32>
    %118 = arith.mulf %116, %117 : vector<2x8x384xf32>
    %119 = arith.addf %113, %118 : vector<2x8x384xf32>
    %120 = vector.extract_strided_slice %30 {offsets = [0, 0, 6], sizes = [2, 8, 1], strides = [1, 1, 1]} : vector<2x8x8xf32> to vector<2x8x1xf32>
    %121 = vector.extract_strided_slice %84 {offsets = [0, 6, 0], sizes = [2, 1, 384], strides = [1, 1, 1]} : vector<2x8x384xf32> to vector<2x1x384xf32>
    %122 = vector.broadcast %120 : vector<2x8x1xf32> to vector<2x8x384xf32>
    %123 = vector.broadcast %121 : vector<2x1x384xf32> to vector<2x8x384xf32>
    %124 = arith.mulf %122, %123 : vector<2x8x384xf32>
    %125 = arith.addf %119, %124 : vector<2x8x384xf32>
    %126 = vector.extract_strided_slice %30 {offsets = [0, 0, 7], sizes = [2, 8, 1], strides = [1, 1, 1]} : vector<2x8x8xf32> to vector<2x8x1xf32>
    %127 = vector.extract_strided_slice %84 {offsets = [0, 7, 0], sizes = [2, 1, 384], strides = [1, 1, 1]} : vector<2x8x384xf32> to vector<2x1x384xf32>
    %128 = vector.broadcast %126 : vector<2x8x1xf32> to vector<2x8x384xf32>
    %129 = vector.broadcast %127 : vector<2x1x384xf32> to vector<2x8x384xf32>
    %130 = arith.mulf %128, %129 : vector<2x8x384xf32>
    %131 = arith.addf %125, %130 : vector<2x8x384xf32>
    %132 = vector.shape_cast %131 : vector<2x8x384xf32> to vector<16x384xf32>
    %cst_20 = arith.constant dense<0.000000e+00> : vector<16x384xf32>
    %133 = tpu.matmul %132, %26, %cst_20 {dimension_numbers = #tpu.dot_dimension_numbers<[1], [0], [0], [1], [0, 0, 1, 1], [], []>} : vector<16x384xf32>, vector<384x384xf32>, vector<16x384xf32> -> vector<16x384xf32>
    %134 = arith.addf %133, %29 : vector<16x384xf32>
    %cst_21 = arith.constant 0.000000e+00 : f32
    %135 = vector.broadcast %cst_21 : f32 to vector<16x384xf32>
    %136 = arith.maximumf %134, %135 : vector<16x384xf32>
    %137 = vector.shape_cast %136 : vector<16x384xf32> to vector<2x8x384xf32>
    %c0_22 = arith.constant 0 : index
    %c0_23 = arith.constant 0 : index
    %c0_24 = arith.constant 0 : index
    %138 = vector.load %arg7[%c0_22, %c0_23, %c0_24] : memref<2x8x384xf32, #tpu.memory_space<vmem>>, vector<2x8x384xf32>
    tpu.vector_store %arg7[%c0_22, %c0_23, %c0_24], %137 {strides = array<i32>} : memref<2x8x384xf32, #tpu.memory_space<vmem>>, vector<2x8x384xf32>,
    return
  }
  func.func @transform_0(%arg0: i32) -> (i32, i32, i32) {
    %c0_i32 = arith.constant 0 : i32
    %c0_i32_0 = arith.constant 0 : i32
    %c0_i32_1 = arith.constant 0 : i32
    return %arg0, %c0_i32, %c0_i32_0 : i32, i32, i32
  }
  func.func @transform_1(%arg0: i32) -> (i32, i32, i32) {
    %c0_i32 = arith.constant 0 : i32
    %c0_i32_0 = arith.constant 0 : i32
    %c0_i32_1 = arith.constant 0 : i32
    return %arg0, %c0_i32, %c0_i32_0 : i32, i32, i32
  }
  func.func @transform_2(%arg0: i32) -> (i32, i32) {
    %c0_i32 = arith.constant 0 : i32
    %c0_i32_0 = arith.constant 0 : i32
    %c0_i32_1 = arith.constant 0 : i32
    return %c0_i32, %c0_i32_0 : i32, i32
  }
  func.func @transform_3(%arg0: i32) -> (i32, i32) {
    %c0_i32 = arith.constant 0 : i32
    %c0_i32_0 = arith.constant 0 : i32
    %c0_i32_1 = arith.constant 0 : i32
    return %c0_i32, %c0_i32_0 : i32, i32
  }
  func.func @transform_4(%arg0: i32) -> (i32, i32) {
    %c0_i32 = arith.constant 0 : i32
    %c0_i32_0 = arith.constant 0 : i32
    %c0_i32_1 = arith.constant 0 : i32
    return %c0_i32, %c0_i32_0 : i32, i32
  }
  func.func @transform_5(%arg0: i32) -> (i32, i32) {
    %c0_i32 = arith.constant 0 : i32
    %c0_i32_0 = arith.constant 0 : i32
    %c0_i32_1 = arith.constant 0 : i32
    return %c0_i32, %c0_i32_0 : i32, i32
  }
  func.func @transform_6(%arg0: i32) -> (i32, i32, i32) {
    %c0_i32 = arith.constant 0 : i32
    %c0_i32_0 = arith.constant 0 : i32
    %c0_i32_1 = arith.constant 0 : i32
    return %arg0, %c0_i32, %c0_i32_0 : i32, i32, i32
  }
}

module attributes {stable_mosaic.version = 11 : i64} {
  func.func @gcn_kernel(%arg0: i32, %arg1: memref<2x8x32xf32, #tpu.memory_space<vmem>>, %arg2: memref<2x8x8xf32, #tpu.memory_space<vmem>>, %arg3: memref<32x384xf32, #tpu.memory_space<vmem>>, %arg4: memref<1x384xf32, #tpu.memory_space<vmem>>, %arg5: memref<384x384xf32, #tpu.memory_space<vmem>>, %arg6: memref<1x384xf32, #tpu.memory_space<vmem>>, %arg7: memref<2x8x384xf32, #tpu.memory_space<vmem>>) attributes {dimension_semantics = [#tpu.dimension_semantics<parallel>], iteration_bounds = array<i64: 1>, scalar_prefetch = 0 : i64, scratch_operands = 0 : i64, tpu.core_type = #tpu.core_type<tc>, window_params = [{transform_indices = @transform_0, window_bounds = array<i64: 2, 8, 32>}, {transform_indices = @transform_1, window_bounds = array<i64: 2, 8, 8>}, {pipeline_mode = #tpu.pipeline_mode<synchronous>, transform_indices = @transform_2, window_bounds = array<i64: 32, 384>}, {pipeline_mode = #tpu.pipeline_mode<synchronous>, transform_indices = @transform_3, window_bounds = array<i64: 1, 384>}, {pipeline_mode = #tpu.pipeline_mode<synchronous>, transform_indices = @transform_4, window_bounds = array<i64: 384, 384>}, {pipeline_mode = #tpu.pipeline_mode<synchronous>, transform_indices = @transform_5, window_bounds = array<i64: 1, 384>}, {transform_indices = @transform_6, window_bounds = array<i64: 2, 8, 384>}]} {
    %c0 = arith.constant 0 : index
    %c0_0 = arith.constant 0 : index
    %c0_1 = arith.constant 0 : index
    %0 = vector.load %arg1[%c0, %c0_0, %c0_1] : memref<2x8x32xf32, #tpu.memory_space<vmem>>, vector<2x8x32xf32>
    %1 = vector.shape_cast %0 : vector<2x8x32xf32> to vector<16x32xf32>
    %cst = arith.constant dense<0.000000e+00> : vector<16xf32>
    %2 = vector.multi_reduction <add>, %1, %cst [1] : vector<16x32xf32> to vector<16xf32>
    %3 = vector.shape_cast %2 : vector<16xf32> to vector<16x1xf32>
    %cst_2 = arith.constant 3.200000e+01 : f32
    %4 = vector.broadcast %cst_2 : f32 to vector<16x1xf32>
    %5 = arith.divf %3, %4 : vector<16x1xf32>
    %6 = vector.broadcast %5 : vector<16x1xf32> to vector<16x32xf32>
    %7 = arith.subf %1, %6 : vector<16x32xf32>
    %8 = arith.mulf %7, %7 : vector<16x32xf32>
    %cst_3 = arith.constant dense<0.000000e+00> : vector<16xf32>
    %9 = vector.multi_reduction <add>, %8, %cst_3 [1] : vector<16x32xf32> to vector<16xf32>
    %10 = vector.shape_cast %9 : vector<16xf32> to vector<16x1xf32>
    %cst_4 = arith.constant 0.0322580636 : f32
    %11 = vector.broadcast %cst_4 : f32 to vector<16x1xf32>
    %12 = arith.mulf %10, %11 : vector<16x1xf32>
    %13 = math.sqrt %12 : vector<16x1xf32>
    %cst_5 = arith.constant 9.99999997E-7 : f32
    %14 = vector.broadcast %cst_5 : f32 to vector<16x1xf32>
    %15 = arith.addf %13, %14 : vector<16x1xf32>
    %16 = tpu.reciprocal %15 : vector<16x1xf32> -> vector<16x1xf32>
    %17 = vector.broadcast %5 : vector<16x1xf32> to vector<16x32xf32>
    %18 = arith.subf %1, %17 : vector<16x32xf32>
    %19 = vector.broadcast %16 : vector<16x1xf32> to vector<16x32xf32>
    %20 = arith.mulf %18, %19 : vector<16x32xf32>
    %c0_6 = arith.constant 0 : index
    %c0_7 = arith.constant 0 : index
    %21 = vector.load %arg3[%c0_6, %c0_7] : memref<32x384xf32, #tpu.memory_space<vmem>>, vector<32x384xf32>
    %cst_8 = arith.constant dense<0.000000e+00> : vector<16x384xf32>
    %22 = tpu.matmul %20, %21, %cst_8 {dimension_numbers = #tpu.dot_dimension_numbers<[1], [0], [0], [1], [0, 0, 1, 1], [], []>} : vector<16x32xf32>, vector<32x384xf32>, vector<16x384xf32> -> vector<16x384xf32>
    %c0_9 = arith.constant 0 : index
    %c0_10 = arith.constant 0 : index
    %23 = vector.load %arg4[%c0_9, %c0_10] : memref<1x384xf32, #tpu.memory_space<vmem>>, vector<1x384xf32>
    %24 = vector.broadcast %23 : vector<1x384xf32> to vector<16x384xf32>
    %25 = arith.addf %22, %24 : vector<16x384xf32>
    %c0_11 = arith.constant 0 : index
    %c0_12 = arith.constant 0 : index
    %26 = vector.load %arg5[%c0_11, %c0_12] : memref<384x384xf32, #tpu.memory_space<vmem>>, vector<384x384xf32>
    %c0_13 = arith.constant 0 : index
    %c0_14 = arith.constant 0 : index
    %27 = vector.load %arg6[%c0_13, %c0_14] : memref<1x384xf32, #tpu.memory_space<vmem>>, vector<1x384xf32>
    %28 = vector.shape_cast %27 : vector<1x384xf32> to vector<1x384xf32>
    %29 = vector.broadcast %28 : vector<1x384xf32> to vector<16x384xf32>
    %c0_15 = arith.constant 0 : index
    %c0_16 = arith.constant 0 : index
    %c0_17 = arith.constant 0 : index
    %30 = vector.load %arg2[%c0_15, %c0_16, %c0_17] : memref<2x8x8xf32, #tpu.memory_space<vmem>>, vector<2x8x8xf32>
    %c0_i32 = arith.constant 0 : i32
    %31 = vector.shape_cast %25 : vector<16x384xf32> to vector<2x8x384xf32>
    %32 = vector.extract_strided_slice %30 {offsets = [0, 0, 0], sizes = [2, 8, 1], strides = [1, 1, 1]} : vector<2x8x8xf32> to vector<2x8x1xf32>
    %33 = vector.extract_strided_slice %31 {offsets = [0, 0, 0], sizes = [2, 1, 384], strides = [1, 1, 1]} : vector<2x8x384xf32> to vector<2x1x384xf32>
    %34 = vector.broadcast %32 : vector<2x8x1xf32> to vector<2x8x384xf32>
    %35 = vector.broadcast %33 : vector<2x1x384xf32> to vector<2x8x384xf32>
    %36 = arith.mulf %34, %35 : vector<2x8x384xf32>
    %37 = vector.extract_strided_slice %30 {offsets = [0, 0, 1], sizes = [2, 8, 1], strides = [1, 1, 1]} : vector<2x8x8xf32> to vector<2x8x1xf32>
    %38 = vector.extract_strided_slice %31 {offsets = [0, 1, 0], sizes = [2, 1, 384], strides = [1, 1, 1]} : vector<2x8x384xf32> to vector<2x1x384xf32>
    %39 = vector.broadcast %37 : vector<2x8x1xf32> to vector<2x8x384xf32>
    %40 = vector.broadcast %38 : vector<2x1x384xf32> to vector<2x8x384xf32>
    %41 = arith.mulf %39, %40 : vector<2x8x384xf32>
    %42 = arith.addf %36, %41 : vector<2x8x384xf32>
    %43 = vector.extract_strided_slice %30 {offsets = [0, 0, 2], sizes = [2, 8, 1], strides = [1, 1, 1]} : vector<2x8x8xf32> to vector<2x8x1xf32>
    %44 = vector.extract_strided_slice %31 {offsets = [0, 2, 0], sizes = [2, 1, 384], strides = [1, 1, 1]} : vector<2x8x384xf32> to vector<2x1x384xf32>
    %45 = vector.broadcast %43 : vector<2x8x1xf32> to vector<2x8x384xf32>
    %46 = vector.broadcast %44 : vector<2x1x384xf32> to vector<2x8x384xf32>
    %47 = arith.mulf %45, %46 : vector<2x8x384xf32>
    %48 = arith.addf %42, %47 : vector<2x8x384xf32>
    %49 = vector.extract_strided_slice %30 {offsets = [0, 0, 3], sizes = [2, 8, 1], strides = [1, 1, 1]} : vector<2x8x8xf32> to vector<2x8x1xf32>
    %50 = vector.extract_strided_slice %31 {offsets = [0, 3, 0], sizes = [2, 1, 384], strides = [1, 1, 1]} : vector<2x8x384xf32> to vector<2x1x384xf32>
    %51 = vector.broadcast %49 : vector<2x8x1xf32> to vector<2x8x384xf32>
    %52 = vector.broadcast %50 : vector<2x1x384xf32> to vector<2x8x384xf32>
    %53 = arith.mulf %51, %52 : vector<2x8x384xf32>
    %54 = arith.addf %48, %53 : vector<2x8x384xf32>
    %55 = vector.extract_strided_slice %30 {offsets = [0, 0, 4], sizes = [2, 8, 1], strides = [1, 1, 1]} : vector<2x8x8xf32> to vector<2x8x1xf32>
    %56 = vector.extract_strided_slice %31 {offsets = [0, 4, 0], sizes = [2, 1, 384], strides = [1, 1, 1]} : vector<2x8x384xf32> to vector<2x1x384xf32>
    %57 = vector.broadcast %55 : vector<2x8x1xf32> to vector<2x8x384xf32>
    %58 = vector.broadcast %56 : vector<2x1x384xf32> to vector<2x8x384xf32>
    %59 = arith.mulf %57, %58 : vector<2x8x384xf32>
    %60 = arith.addf %54, %59 : vector<2x8x384xf32>
    %61 = vector.extract_strided_slice %30 {offsets = [0, 0, 5], sizes = [2, 8, 1], strides = [1, 1, 1]} : vector<2x8x8xf32> to vector<2x8x1xf32>
    %62 = vector.extract_strided_slice %31 {offsets = [0, 5, 0], sizes = [2, 1, 384], strides = [1, 1, 1]} : vector<2x8x384xf32> to vector<2x1x384xf32>
    %63 = vector.broadcast %61 : vector<2x8x1xf32> to vector<2x8x384xf32>
    %64 = vector.broadcast %62 : vector<2x1x384xf32> to vector<2x8x384xf32>
    %65 = arith.mulf %63, %64 : vector<2x8x384xf32>
    %66 = arith.addf %60, %65 : vector<2x8x384xf32>
    %67 = vector.extract_strided_slice %30 {offsets = [0, 0, 6], sizes = [2, 8, 1], strides = [1, 1, 1]} : vector<2x8x8xf32> to vector<2x8x1xf32>
    %68 = vector.extract_strided_slice %31 {offsets = [0, 6, 0], sizes = [2, 1, 384], strides = [1, 1, 1]} : vector<2x8x384xf32> to vector<2x1x384xf32>
    %69 = vector.broadcast %67 : vector<2x8x1xf32> to vector<2x8x384xf32>
    %70 = vector.broadcast %68 : vector<2x1x384xf32> to vector<2x8x384xf32>
    %71 = arith.mulf %69, %70 : vector<2x8x384xf32>
    %72 = arith.addf %66, %71 : vector<2x8x384xf32>
    %73 = vector.extract_strided_slice %30 {offsets = [0, 0, 7], sizes = [2, 8, 1], strides = [1, 1, 1]} : vector<2x8x8xf32> to vector<2x8x1xf32>
    %74 = vector.extract_strided_slice %31 {offsets = [0, 7, 0], sizes = [2, 1, 384], strides = [1, 1, 1]} : vector<2x8x384xf32> to vector<2x1x384xf32>
    %75 = vector.broadcast %73 : vector<2x8x1xf32> to vector<2x8x384xf32>
    %76 = vector.broadcast %74 : vector<2x1x384xf32> to vector<2x8x384xf32>
    %77 = arith.mulf %75, %76 : vector<2x8x384xf32>
    %78 = arith.addf %72, %77 : vector<2x8x384xf32>
    %79 = vector.shape_cast %78 : vector<2x8x384xf32> to vector<16x384xf32>
    %cst_18 = arith.constant dense<0.000000e+00> : vector<16x384xf32>
    %80 = tpu.matmul %79, %26, %cst_18 {dimension_numbers = #tpu.dot_dimension_numbers<[1], [0], [0], [1], [0, 0, 1, 1], [], []>} : vector<16x384xf32>, vector<384x384xf32>, vector<16x384xf32> -> vector<16x384xf32>
    %81 = arith.addf %80, %29 : vector<16x384xf32>
    %cst_19 = arith.constant 0.000000e+00 : f32
    %82 = vector.broadcast %cst_19 : f32 to vector<16x384xf32>
    %83 = arith.maximumf %81, %82 : vector<16x384xf32>
    %c1_i32 = arith.constant 1 : i32
    %84 = vector.shape_cast %83 : vector<16x384xf32> to vector<2x8x384xf32>
    %85 = vector.extract_strided_slice %30 {offsets = [0, 0, 0], sizes = [2, 8, 1], strides = [1, 1, 1]} : vector<2x8x8xf32> to vector<2x8x1xf32>
    %86 = vector.extract_strided_slice %84 {offsets = [0, 0, 0], sizes = [2, 1, 384], strides = [1, 1, 1]} : vector<2x8x384xf32> to vector<2x1x384xf32>
    %87 = vector.broadcast %85 : vector<2x8x1xf32> to vector<2x8x384xf32>
    %88 = vector.broadcast %86 : vector<2x1x384xf32> to vector<2x8x384xf32>
    %89 = arith.mulf %87, %88 : vector<2x8x384xf32>
    %90 = vector.extract_strided_slice %30 {offsets = [0, 0, 1], sizes = [2, 8, 1], strides = [1, 1, 1]} : vector<2x8x8xf32> to vector<2x8x1xf32>
    %91 = vector.extract_strided_slice %84 {offsets = [0, 1, 0], sizes = [2, 1, 384], strides = [1, 1, 1]} : vector<2x8x384xf32> to vector<2x1x384xf32>
    %92 = vector.broadcast %90 : vector<2x8x1xf32> to vector<2x8x384xf32>
    %93 = vector.broadcast %91 : vector<2x1x384xf32> to vector<2x8x384xf32>
    %94 = arith.mulf %92, %93 : vector<2x8x384xf32>
    %95 = arith.addf %89, %94 : vector<2x8x384xf32>
    %96 = vector.extract_strided_slice %30 {offsets = [0, 0, 2], sizes = [2, 8, 1], strides = [1, 1, 1]} : vector<2x8x8xf32> to vector<2x8x1xf32>
    %97 = vector.extract_strided_slice %84 {offsets = [0, 2, 0], sizes = [2, 1, 384], strides = [1, 1, 1]} : vector<2x8x384xf32> to vector<2x1x384xf32>
    %98 = vector.broadcast %96 : vector<2x8x1xf32> to vector<2x8x384xf32>
    %99 = vector.broadcast %97 : vector<2x1x384xf32> to vector<2x8x384xf32>
    %100 = arith.mulf %98, %99 : vector<2x8x384xf32>
    %101 = arith.addf %95, %100 : vector<2x8x384xf32>
    %102 = vector.extract_strided_slice %30 {offsets = [0, 0, 3], sizes = [2, 8, 1], strides = [1, 1, 1]} : vector<2x8x8xf32> to vector<2x8x1xf32>
    %103 = vector.extract_strided_slice %84 {offsets = [0, 3, 0], sizes = [2, 1, 384], strides = [1, 1, 1]} : vector<2x8x384xf32> to vector<2x1x384xf32>
    %104 = vector.broadcast %102 : vector<2x8x1xf32> to vector<2x8x384xf32>
    %105 = vector.broadcast %103 : vector<2x1x384xf32> to vector<2x8x384xf32>
    %106 = arith.mulf %104, %105 : vector<2x8x384xf32>
    %107 = arith.addf %101, %106 : vector<2x8x384xf32>
    %108 = vector.extract_strided_slice %30 {offsets = [0, 0, 4], sizes = [2, 8, 1], strides = [1, 1, 1]} : vector<2x8x8xf32> to vector<2x8x1xf32>
    %109 = vector.extract_strided_slice %84 {offsets = [0, 4, 0], sizes = [2, 1, 384], strides = [1, 1, 1]} : vector<2x8x384xf32> to vector<2x1x384xf32>
    %110 = vector.broadcast %108 : vector<2x8x1xf32> to vector<2x8x384xf32>
    %111 = vector.broadcast %109 : vector<2x1x384xf32> to vector<2x8x384xf32>
    %112 = arith.mulf %110, %111 : vector<2x8x384xf32>
    %113 = arith.addf %107, %112 : vector<2x8x384xf32>
    %114 = vector.extract_strided_slice %30 {offsets = [0, 0, 5], sizes = [2, 8, 1], strides = [1, 1, 1]} : vector<2x8x8xf32> to vector<2x8x1xf32>
    %115 = vector.extract_strided_slice %84 {offsets = [0, 5, 0], sizes = [2, 1, 384], strides = [1, 1, 1]} : vector<2x8x384xf32> to vector<2x1x384xf32>
    %116 = vector.broadcast %114 : vector<2x8x1xf32> to vector<2x8x384xf32>
    %117 = vector.broadcast %115 : vector<2x1x384xf32> to vector<2x8x384xf32>
    %118 = arith.mulf %116, %117 : vector<2x8x384xf32>
    %119 = arith.addf %113, %118 : vector<2x8x384xf32>
    %120 = vector.extract_strided_slice %30 {offsets = [0, 0, 6], sizes = [2, 8, 1], strides = [1, 1, 1]} : vector<2x8x8xf32> to vector<2x8x1xf32>
    %121 = vector.extract_strided_slice %84 {offsets = [0, 6, 0], sizes = [2, 1, 384], strides = [1, 1, 1]} : vector<2x8x384xf32> to vector<2x1x384xf32>
    %122 = vector.broadcast %120 : vector<2x8x1xf32> to vector<2x8x384xf32>
    %123 = vector.broadcast %121 : vector<2x1x384xf32> to vector<2x8x384xf32>
    %124 = arith.mulf %122, %123 : vector<2x8x384xf32>
    %125 = arith.addf %119, %124 : vector<2x8x384xf32>
    %126 = vector.extract_strided_slice %30 {offsets = [0, 0, 7], sizes = [2, 8, 1], strides = [1, 1, 1]} : vector<2x8x8xf32> to vector<2x8x1xf32>
    %127 = vector.extract_strided_slice %84 {offsets = [0, 7, 0], sizes = [2, 1, 384], strides = [1, 1, 1]} : vector<2x8x384xf32> to vector<2x1x384xf32>
    %128 = vector.broadcast %126 : vector<2x8x1xf32> to vector<2x8x384xf32>
    %129 = vector.broadcast %127 : vector<2x1x384xf32> to vector<2x8x384xf32>
    %130 = arith.mulf %128, %129 : vector<2x8x384xf32>
    %131 = arith.addf %125, %130 : vector<2x8x384xf32>
    %132 = vector.shape_cast %131 : vector<2x8x384xf32> to vector<16x384xf32>
    %cst_20 = arith.constant dense<0.000000e+00> : vector<16x384xf32>
    %133 = tpu.matmul %132, %26, %cst_20 {dimension_numbers = #tpu.dot_dimension_numbers<[1], [0], [0], [1], [0, 0, 1, 1], [], []>} : vector<16x384xf32>, vector<384x384xf32>, vector<16x384xf32> -> vector<16x384xf32>
    %134 = arith.addf %133, %29 : vector<16x384xf32>
    %cst_21 = arith.constant 0.000000e+00 : f32
    %135 = vector.broadcast %cst_21 : f32 to vector<16x384xf32>
    %136 = arith.maximumf %134, %135 : vector<16x384xf32>
    %137 = vector.shape_cast %136 : vector<16x384xf32> to vector<2x8x384xf32>
    %c0_22 = arith.constant 0 : index
    %c0_23 = arith.constant 0 : index
    %c0_24 = arith.constant 0 : index
    %138 = vector.load %arg7[%c0_22, %c0_23, %c0_24] : memref<2x8x384xf32, #tpu.memory_space<vmem>>, vector<2x8x384xf32>
    tpu.vector_store %arg7[%c0_22, %c0_23, %c0_24], %137 {strides = array<i32>} : memref<2x8x384xf32, #tpu.memory_space<vmem>>, vector<2x8x384xf32>,
    return
  }
  func.func @transform_0(%arg0: i32) -> (i32, i32, i32) {
    %c0_i32 = arith.constant 0 : i32
    %c0_i32_0 = arith.constant 0 : i32
    %c0_i32_1 = arith.constant 0 : i32
    return %arg0, %c0_i32, %c0_i32_0 : i32, i32, i32
  }
  func.func @transform_1(%arg0: i32) -> (i32, i32, i32) {
    %c0_i32 = arith.constant 0 : i32
    %c0_i32_0 = arith.constant 0 : i32
    %c0_i32_1 = arith.constant 0 : i32
    return %arg0, %c0_i32, %c0_i32_0 : i32, i32, i32
  }
  func.func @transform_2(%arg0: i32) -> (i32, i32) {
    %c0_i32 = arith.constant 0 : i32
    %c0_i32_0 = arith.constant 0 : i32
    %c0_i32_1 = arith.constant 0 : i32
    return %c0_i32, %c0_i32_0 : i32, i32
  }
  func.func @transform_3(%arg0: i32) -> (i32, i32) {
    %c0_i32 = arith.constant 0 : i32
    %c0_i32_0 = arith.constant 0 : i32
    %c0_i32_1 = arith.constant 0 : i32
    return %c0_i32, %c0_i32_0 : i32, i32
  }
  func.func @transform_4(%arg0: i32) -> (i32, i32) {
    %c0_i32 = arith.constant 0 : i32
    %c0_i32_0 = arith.constant 0 : i32
    %c0_i32_1 = arith.constant 0 : i32
    return %c0_i32, %c0_i32_0 : i32, i32
  }
  func.func @transform_5(%arg0: i32) -> (i32, i32) {
    %c0_i32 = arith.constant 0 : i32
    %c0_i32_0 = arith.constant 0 : i32
    %c0_i32_1 = arith.constant 0 : i32
    return %c0_i32, %c0_i32_0 : i32, i32
  }
  func.func @transform_6(%arg0: i32) -> (i32, i32, i32) {
    %c0_i32 = arith.constant 0 : i32
    %c0_i32_0 = arith.constant 0 : i32
    %c0_i32_1 = arith.constant 0 : i32
    return %arg0, %c0_i32, %c0_i32_0 : i32, i32, i32
  }
}

</mosaic_0001>

<bundles_post_ra>
// kernel: tpu_custom_call.1
= control target key start
LH: loop header
LB: loop body
LE: loop exit
PB: predicated region body
PF: predicated region fallthrough
CT: control target
= control target key end

     0   :  { %11 = vsyncpa [#allocation3], 0  ;;  %s3307_s0 = inlined_call_operand.hbm [shape: f32[2,8,32], index: 0, kind: input, shape index: {}]   ;;  %s3308_s1 = inlined_call_operand.hbm [shape: f32[2,8,8], index: 1, kind: input, shape index: {}]   ;;  %s3309_s2 = inlined_call_operand.hbm [shape: f32[32,384], index: 2, kind: input, shape index: {}]   ;;  %s3310_s3 = inlined_call_operand.vmem [shape: f32[1,384], index: 3, kind: input, shape index: {}]   ;;  %s3311_s4 = inlined_call_operand.hbm [shape: f32[384,384], index: 4, kind: input, shape index: {}]   ;;  %s3312_s5 = inlined_call_operand.vmem [shape: f32[1,384], index: 5, kind: input, shape index: {}]   ;;  %s3313_s6 = inlined_call_operand.hbm [shape: f32[2,8,384], index: 6, kind: output, shape index: {}]  }
   0x1   :  { %12 = vsyncpa [#allocation6], 0 }
   0x2   :  { %13 = vsyncpa [#allocation9], 0 }
   0x3   :  { %14 = vsyncpa [#allocation4], 0  ;;  %s2463_s21 = smov [#allocation5]   ;;  %s2464_s23 = smov [#allocation2]  }
   0x4   :  { %s32_s22 = sshll.u32 %s2463_s21, 4  ;;  %s20_s24 = sshll.u32 %s2464_s23, 4  ;;  %s33_s22 = int_to_ptr.vmem [resolvable:$true] %s32_s22  ;;  %s2516_s24 = int_to_ptr.vmem [resolvable:$true] %s20_s24 }
   0x5   :  { %s2345_s27 = scalar_lea.hbm %s3308_s1, 256 }
   0x6   :  { %p2346_p0 = scmp.ne.s32.totalorder %s3308_s1, %s2345_s27  ;;  %p2349_p1 = scmp.lt.u32.totalorder %s2345_s27, %s3308_s1 }
   0x8   :  { %p2351_p2 = pnand %p2349_p1, %p2346_p0 }
   0xa   :  { %2354 = shalt.err (!%p2351_p2)
}
   0xb   :  { %s2355_s8 = scalar_lea.vmem %s33_s22, 256  ;;  %p2360_p4 = scmp.lt.s32.totalorder %s33_s22, %s33_s22 }
   0xc   :  { %p2356_p3 = scmp.ne.s32.totalorder %s33_s22, %s2355_s8  ;;  %p2361_p5 = scmp.lt.s32.totalorder %s2355_s8, %s2355_s8 }
   0xe   :  { %p2362_p6 = por %p2361_p5, %p2360_p4 }
  0x10   :  { %p2363_p7 = pnand %p2362_p6, %p2356_p3 }
  0x12   :  { %2366 = shalt.err (!%p2363_p7)
}
  0x13   :  { %s2465_s9 = smov 128   ;;  %s2466_s10 = smov 8  }
  0x14   :  { %38 = dma.hbm_to_vmem [thread:$0]  %s3308_s1, 256, %s33_s22, [#allocation6], %s2465_s9, %s2465_s9, %s2466_s10  }
  0x15   :  { %s2367_s15 = scalar_lea.hbm %s3307_s0, 256 }
  0x16   :  { %p2368_p8 = scmp.ne.s32.totalorder %s3307_s0, %s2367_s15  ;;  %p2371_p9 = scmp.lt.u32.totalorder %s2367_s15, %s3307_s0 }
  0x18   :  { %p2373_p10 = pnand %p2371_p9, %p2368_p8 }
  0x1a   :  { %2376 = shalt.err (!%p2373_p10)
}
  0x1b   :  { %s2377_s20 = scalar_lea.vmem %s2516_s24, 256  ;;  %p2382_p12 = scmp.lt.s32.totalorder %s2516_s24, %s2516_s24 }
  0x1c   :  { %p2378_p11 = scmp.ne.s32.totalorder %s2516_s24, %s2377_s20  ;;  %p2383_p13 = scmp.lt.s32.totalorder %s2377_s20, %s2377_s20 }
  0x1e   :  { %p2384_p0 = por %p2383_p13, %p2382_p12 }
  0x20   :  { %p2385_p1 = pnand %p2384_p0, %p2378_p11 }
  0x22   :  { %2388 = shalt.err (!%p2385_p1)
}
  0x23   :  { %26 = dma.hbm_to_vmem [thread:$0]  %s3307_s0, 256, %s2516_s24, [#allocation3], %s2465_s9, %s2465_s9, %s2466_s10  }
  0x24   :  { %s2467_s22 = smov [#allocation7]   ;;  %s2389_s27 = scalar_lea.hbm %s3309_s2, 1536 }
  0x25   :  { %s44_s23 = sshll.u32 %s2467_s22, 4  ;;  %p2390_p2 = scmp.ne.s32.totalorder %s3309_s2, %s2389_s27  ;;  %s45_s23 = int_to_ptr.vmem [resolvable:$true] %s44_s23 }
  0x26   :  { %p2393_p3 = scmp.lt.u32.totalorder %s2389_s27, %s3309_s2 }
  0x28   :  { %p2395_p4 = pnand %p2393_p3, %p2390_p2 }
  0x2a   :  { %2398 = shalt.err (!%p2395_p4)
}
  0x2b   :  { %s2399_s8 = scalar_lea.vmem %s45_s23, 1536  ;;  %p2404_p6 = scmp.lt.s32.totalorder %s45_s23, %s45_s23 }
  0x2c   :  { %p2400_p5 = scmp.ne.s32.totalorder %s45_s23, %s2399_s8  ;;  %p2405_p7 = scmp.lt.s32.totalorder %s2399_s8, %s2399_s8 }
  0x2e   :  { %p2406_p8 = por %p2405_p7, %p2404_p6 }
  0x30   :  { %p2407_p9 = pnand %p2406_p8, %p2400_p5 }
  0x32   :  { %2410 = shalt.err (!%p2407_p9)
}
  0x33   :  { %s2468_s0 = smov 384   ;;  %s2469_s24 = smov 24  }
  0x34   :  { %50 = dma.hbm_to_vmem [thread:$0]  %s3309_s2, 1536, %s45_s23, [#allocation6], %s2468_s0, %s2468_s0, %s2469_s24  }
  0x35   :  { %s2470_s11 = smov [#allocation8]   ;;  %s2411_s15 = scalar_lea.hbm %s3311_s4, 18432 }
  0x36   :  { %s58_s12 = sshll.u32 %s2470_s11, 4  ;;  %p2412_p10 = scmp.ne.s32.totalorder %s3311_s4, %s2411_s15  ;;  %s59_s12 = int_to_ptr.vmem [resolvable:$true] %s58_s12 }
  0x37   :  { %p2415_p11 = scmp.lt.u32.totalorder %s2411_s15, %s3311_s4 }
  0x39   :  { %p2417_p12 = pnand %p2415_p11, %p2412_p10 }
  0x3b   :  { %2420 = shalt.err (!%p2417_p12)
}
  0x3c   :  { %s2421_s20 = scalar_lea.vmem %s59_s12, 18432  ;;  %p2426_p0 = scmp.lt.s32.totalorder %s59_s12, %s59_s12 }
  0x3d   :  { %p2422_p13 = scmp.ne.s32.totalorder %s59_s12, %s2421_s20  ;;  %p2427_p1 = scmp.lt.s32.totalorder %s2421_s20, %s2421_s20 }
  0x3f   :  { %p2428_p2 = por %p2427_p1, %p2426_p0 }
  0x41   :  { %p2429_p3 = pnand %p2428_p2, %p2422_p13 }
  0x43   :  { %2432 = shalt.err (!%p2429_p3)
}
  0x44   :  { %64 = dma.hbm_to_vmem [thread:$0]  %s3311_s4, 18432, %s59_s12, [#allocation9], %s2468_s0, %s2468_s0, %s2469_s24  }
  0x45   :  { %2455 = dma.done.wait [#allocation3], 256  }
  0x46   :  { %2456 = vsyncadd [#allocation3], 4294967040 }
  0x47   :  { %2457 = dma.done.wait [#allocation6], 1792  }
  0x48   :  { %2458 = vsyncadd [#allocation6], 4294965504 }
  0x49   :  { %2459 = dma.done.wait [#allocation9], 18432  }
  0x4a   :  { %2460 = vsyncadd [#allocation9], 4294948864  ;;  %vm81_vm0 = vcmask 261120   ;;  %v79_v0 = vld [vmem:[#allocation2] sm:$0xff]  ;;  %v80_v1 = vld [vmem:[#allocation2 + $0x8] sm:$0xff]  ;;  %v3314_v21 = vmov 0.0  }
  0x4b   :  { %v82_v2 = vsel %vm81_vm0, %v79_v0, 0.0  ;;  %v85_v3 = vsel %vm81_vm0, %v80_v1, 0.0  ;;  %v124_v14 = vld [vmem:[#allocation7 + $0x8] sm:$0xff]  ;;  %v127_v15 = vld [vmem:[#allocation7 + $0x20] sm:$0xff]  ;;  %v126_v18 = vld [vmem:[#allocation7 + $0x18] sm:$0xff]  ;;  %222 = vmatprep.mubr.f32.mxu0 %v3314_v21  ;;  %v2472_v34 = vmov 1  }
  0x4c   :  { %83 = vadd.xlane.f32.xlu0 %v82_v2  ;;  %v123_v16 = vld [vmem:[#allocation7] sm:$0xff]  ;;  %v1951_v17 = vpack.c.bf16 %v127_v15, %v124_v14  ;;  %v130_v19 = vld [vmem:[#allocation7 + $0x38] sm:$0xff]  ;;  %v133_v20 = vld [vmem:[#allocation7 + $0x50] sm:$0xff]  ;;  %2322 = vset.pattern.permute.xlu1 %v2472_v34  ;;  %v2473_v37 = vmov 0   ;;  %v2474_v39 = vmov 2   ;;  %v2475_v41 = vmov 3  }
  0x4d   :  { %v1953_v22 = vpack.c.bf16 %v126_v18, %v123_v16  ;;  %v1955_v23 = vpack.c.bf16 %v133_v20, %v130_v19  ;;  %v125_v24 = vld [vmem:[#allocation7 + $0x10] sm:$0xff]  ;;  %v128_v25 = vld [vmem:[#allocation7 + $0x28] sm:$0xff]  ;;  %v131_v30 = vld [vmem:[#allocation7 + $0x40] sm:$0xff]  ;;  %2321 = vset.pattern.permute.xlu0 %v2473_v37  ;;  %v2476_v42 = vmov 4   ;;  %v2477_v43 = vmov 7  }
  0x4e   :  { %v129_v26 = vld [vmem:[#allocation7 + $0x30] sm:$0xff]  ;;  %1952 = vmatprep.subr.bf16.mxu0 %v1951_v17  ;;  %v1959_v27 = vpack.c.bf16 %v128_v25, %v125_v24  ;;  %v132_v28 = vld [vmem:[#allocation7 + $0x48] sm:$0xff]  ;;  %v134_v31 = vld [vmem:[#allocation7 + $0x58] sm:$0xff]  ;;  %v2478_v44 = vmov 5   ;;  %v2479_v45 = vmov 6  }
  0x4f   :  { %1954 = vmatpush1.bf16.msra.mxu0 %v1953_v22  ;;  %v1957_v29 = vpack.c.bf16 %v132_v28, %v129_v26  ;;  %v1963_v32 = vpack.c.bf16 %v134_v31, %v131_v30  ;;  %v471_v33 = vld [vmem:[#allocation5] sm:$0xff]  ;;  %v311_v35 = vld [vmem:[#allocation8 + $0x8] sm:$0xff]  ;;  %v314_v36 = vld [vmem:[#allocation8 + $0x20] sm:$0xff] }
  0x50   :  { %86 = vadd.xlane.f32.xlu0 %v85_v3  ;;  %1956 = vmatprep.subr.bf16.mxu0 %v1955_v23  ;;  %v2590_v38 = vpack.c.bf16 %v314_v36, %v311_v35  ;;  %v472_v40 = vld [vmem:[#allocation5 + $0x8] sm:$0xff]  ;;  %v360_v46 = vld [vmem:[#allocation8 + $0x190] sm:$0xff]  ;;  %v363_v47 = vld [vmem:[#allocation8 + $0x1a8] sm:$0xff] }
  0x51   :  { %1960 = vmatprep.subr.bf16.mxu1 %v1959_v27  ;;  %v2593_v48 = vpack.c.bf16 %v363_v47, %v360_v46  ;;  %v313_v2 = vld [vmem:[#allocation8 + $0x18] sm:$0xff]  ;;  %v312_v14 = vld [vmem:[#allocation8 + $0x10] sm:$0xff]  ;;  %v315_v15 = vld [vmem:[#allocation8 + $0x28] sm:$0xff] }
  0x52   :  { %1962 = vmatpush3.bf16.msra.mxu1 %v1959_v27  ;;  %v317_v3 = vld [vmem:[#allocation8 + $0x38] sm:$0xff]  ;;  %v326_v16 = vld [vmem:[#allocation8 + $0x80] sm:$0xff]  ;;  %v2607_v23 = vpack.c.bf16 %v315_v15, %v312_v14  ;;  %v332_v30 = vld [vmem:[#allocation8 + $0xb0] sm:$0xff] }
  0x53   :  { %1958 = vmatpush1.bf16.msra.mxu0 %v1957_v29  ;;  %1964 = vmatprep.subr.bf16.mxu1 %v1963_v32  ;;  %v366_v17 = vld [vmem:[#allocation8 + $0x1c0] sm:$0xff]  ;;  %v369_v18 = vld [vmem:[#allocation8 + $0x1d8] sm:$0xff]  ;;  %v372_v31 = vld [vmem:[#allocation8 + $0x1f0] sm:$0xff] }
  0x54   :  { %1968 = vmatprep.subr.bf16.mxu0 %v2590_v38  ;;  %v325_v22 = vld [vmem:[#allocation8 + $0x78] sm:$0xff]  ;;  %3387 = vst [vmem:[#allocation17_spill] sm:$0xff] %v2607_v23  ;;  %v2613_v27 = vpack.c.bf16 %v369_v18, %v366_v17  ;;  %v318_v28 = vld [vmem:[#allocation8 + $0x40] sm:$0xff]  ;;  %v331_v36 = vld [vmem:[#allocation8 + $0xa8] sm:$0xff] }
  0x55   :  { %v329_v26 = vld [vmem:[#allocation8 + $0x98] sm:$0xff]  ;;  %v334_v46 = vld [vmem:[#allocation8 + $0xc0] sm:$0xff]  ;;  %v368_v14 = vld [vmem:[#allocation8 + $0x1d0] sm:$0xff] }
  0x56   :  { %1966 = vmatpush3.bf16.msra.mxu1 %v1963_v32  ;;  %3389 = vst [vmem:[#allocation19_spill] sm:$0xff] %v2613_v27  ;;  %v321_v29 = vld [vmem:[#allocation8 + $0x58] sm:$0xff]  ;;  %v375_v32 = vld [vmem:[#allocation8 + $0x208] sm:$0xff]  ;;  %v2624_v35 = vpack.c.bf16 %v332_v30, %v329_v26  ;;  %v364_v17 = vld [vmem:[#allocation8 + $0x1b0] sm:$0xff] }
  0x57   :  { %2064 = vmatprep.subr.bf16.mxu1 %v2593_v48  ;;  %v337_v47 = vld [vmem:[#allocation8 + $0xd8] sm:$0xff]  ;;  %v367_v18 = vld [vmem:[#allocation8 + $0x1c8] sm:$0xff]  ;;  %v370_v26 = vld [vmem:[#allocation8 + $0x1e0] sm:$0xff] }
  0x58   :  { %3392 = vst [vmem:[#allocation22_spill] sm:$0xff] %v2624_v35  ;;  %v377_v30 = vld [vmem:[#allocation8 + $0x218] sm:$0xff] }
  0x66   :  { %475 = vperm.xlu0 %2321, %v471_v33  }
  0x6a   :  { %2330 = vset.pattern.permute.xlu0 %v2472_v34  ;;  %v2621_v34 = vpack.c.bf16 %v321_v29, %v318_v28  ;;  %v373_v28 = vld [vmem:[#allocation8 + $0x1f8] sm:$0xff] }
  0x6b   :  { %518 = vperm.xlu0 %2330, %v472_v40   ;;  %v2677_v29 = vpack.c.bf16 %v373_v28, %v370_v26  ;;  %v342_v26 = vld [vmem:[#allocation8 + $0x100] sm:$0xff]  ;;  %v345_v28 = vld [vmem:[#allocation8 + $0x118] sm:$0xff] }
  0x6c   :  { %3391 = vst [vmem:[#allocation21_spill] sm:$0xff] %v2621_v34 }
  0x6d   :  { %3409 = vst [vmem:[#allocation39_spill] sm:$0xff] %v2677_v29 }
  0x6f   :  { %2333 = vset.pattern.permute.xlu0 %v2476_v42 }
  0x70   :  { %650 = vperm.xlu0 %2333, %v472_v40  }
  0x74   :  { %2336 = vset.pattern.permute.xlu0 %v2477_v43 }
  0x75   :  { %782 = vperm.xlu0 %2336, %v472_v40  }
  0xd9   :  { %v84_v4 = vpop.xlane.xlu0 %83 }
  0xda   :  { %v89_v5 = vmul.f32 0.03125, %v84_v4  ;;  %v320_v4 = vld [vmem:[#allocation8 + $0x50] sm:$0xff] }
  0xdc   :  { %v2579_v6 = vsub.f32 %v79_v0, %v89_v5 }
  0xdd   :  { %v87_v7 = vpop.xlane.xlu0 %86 }
  0xde   :  { %v90_v8 = vmul.f32 0.03125, %v87_v7  ;;  %v93_v9 = vmul.f32 %v2579_v6, %v2579_v6 }
  0xe0   :  { %v2583_v10 = vsub.f32 %v80_v1, %v90_v8  ;;  %v95_v11 = vsel %vm81_vm0, %v93_v9, 0.0  ;;  %v310_v1 = vld [vmem:[#allocation8] sm:$0xff]  ;;  %v316_v8 = vld [vmem:[#allocation8 + $0x30] sm:$0xff]  ;;  %v319_v9 = vld [vmem:[#allocation8 + $0x48] sm:$0xff] }
  0xe1   :  { %96 = vadd.xlane.f32.xlu1 %v95_v11  ;;  %v2596_v7 = vpack.c.bf16 %v313_v2, %v310_v1  ;;  %v2605_v20 = vpack.c.bf16 %v319_v9, %v316_v8  ;;  %v352_v1 = vld [vmem:[#allocation8 + $0x150] sm:$0xff]  ;;  %v355_v2 = vld [vmem:[#allocation8 + $0x168] sm:$0xff]  ;;  %v358_v9 = vld [vmem:[#allocation8 + $0x180] sm:$0xff] }
  0xe2   :  { %v94_v12 = vmul.f32 %v2583_v10, %v2583_v10 }
  0xe3   :  { %3386 = vst [vmem:[#allocation16_spill] sm:$0xff] %v2605_v20 }
  0xe4   :  { %v98_v13 = vsel %vm81_vm0, %v94_v12, 0.0  ;;  %v2599_v12 = vpack.c.bf16 %v320_v4, %v317_v3  ;;  %v359_v3 = vld [vmem:[#allocation8 + $0x188] sm:$0xff]  ;;  %v362_v4 = vld [vmem:[#allocation8 + $0x1a0] sm:$0xff] }
  0xe5   :  { %99 = vadd.xlane.f32.xlu1 %v98_v13  ;;  %v323_v13 = vld [vmem:[#allocation8 + $0x68] sm:$0xff]  ;;  %v2662_v8 = vpack.c.bf16 %v362_v4, %v359_v3  ;;  %v389_v4 = vld [vmem:[#allocation8 + $0x278] sm:$0xff] }
  0xe6   :  { %3385 = vst [vmem:[#allocation15_spill] sm:$0xff] %v2599_v12  ;;  %v2611_v25 = vpack.c.bf16 %v326_v16, %v323_v13  ;;  %v365_v13 = vld [vmem:[#allocation8 + $0x1b8] sm:$0xff] }
  0xe7   :  { %3404 = vst [vmem:[#allocation34_spill] sm:$0xff] %v2662_v8  ;;  %v2668_v16 = vpack.c.bf16 %v368_v14, %v365_v13  ;;  %v393_v14 = vld [vmem:[#allocation8 + $0x298] sm:$0xff] }
  0xe8   :  { %3388 = vst [vmem:[#allocation18_spill] sm:$0xff] %v2611_v25 }
  0xe9   :  { %3406 = vst [vmem:[#allocation36_spill] sm:$0xff] %v2668_v16 }
  0xf6   :  { %514 = vperm.xlu1 %2322, %v471_v33  }
  0xfa   :  { %2323 = vset.pattern.permute.xlu1 %v2474_v39 }
  0xfb   :  { %558 = vperm.xlu1 %2323, %v471_v33  }
  0xff   :  { %2324 = vset.pattern.permute.xlu1 %v2475_v41 }
 0x100   :  { %602 = vperm.xlu1 %2324, %v471_v33  }
 0x104   :  { %2325 = vset.pattern.permute.xlu1 %v2476_v42  ;;  %v338_v42 = vld [vmem:[#allocation8 + $0xe0] sm:$0xff] }
 0x105   :  { %646 = vperm.xlu1 %2325, %v471_v33  }
 0x109   :  { %2326 = vset.pattern.permute.xlu1 %v2478_v44 }
 0x10a   :  { %690 = vperm.xlu1 %2326, %v471_v33  }
 0x10e   :  { %2327 = vset.pattern.permute.xlu1 %v2479_v45 }
 0x10f   :  { %734 = vperm.xlu1 %2327, %v471_v33  }
 0x113   :  { %2328 = vset.pattern.permute.xlu1 %v2477_v43 }
 0x114   :  { %778 = vperm.xlu1 %2328, %v471_v33  }
 0x118   :  { %2329 = vset.pattern.permute.xlu1 %v2473_v37  ;;  %v2627_v37 = vpack.c.bf16 %v375_v32, %v372_v31  ;;  %v380_v31 = vld [vmem:[#allocation8 + $0x230] sm:$0xff]  ;;  %v378_v32 = vld [vmem:[#allocation8 + $0x220] sm:$0xff] }
 0x119   :  { %480 = vperm.xlu1 %2329, %v472_v40  }
 0x11a   :  { %3393 = vst [vmem:[#allocation23_spill] sm:$0xff] %v2627_v37 }
 0x11d   :  { %2331 = vset.pattern.permute.xlu1 %v2474_v39  ;;  %v324_v39 = vld [vmem:[#allocation8 + $0x70] sm:$0xff] }
 0x11e   :  { %562 = vperm.xlu1 %2331, %v472_v40  }
 0x122   :  { %2332 = vset.pattern.permute.xlu1 %v2475_v41  ;;  %v335_v41 = vld [vmem:[#allocation8 + $0xc8] sm:$0xff] }
 0x123   :  { %606 = vperm.xlu1 %2332, %v472_v40  }
 0x127   :  { %2334 = vset.pattern.permute.xlu1 %v2478_v44 }
 0x128   :  { %694 = vperm.xlu1 %2334, %v472_v40  }
 0x12c   :  { %2335 = vset.pattern.permute.xlu1 %v2479_v45  ;;  %v2636_v45 = vpack.c.bf16 %v338_v42, %v335_v41 }
 0x12d   :  { %738 = vperm.xlu1 %2335, %v472_v40   ;;  %v327_v40 = vld [vmem:[#allocation8 + $0x88] sm:$0xff] }
 0x12e   :  { %v2633_v44 = vpack.c.bf16 %v327_v40, %v324_v39  ;;  %3396 = vst [vmem:[#allocation26_spill] sm:$0xff] %v2636_v45  ;;  %v376_v39 = vld [vmem:[#allocation8 + $0x210] sm:$0xff]  ;;  %v379_v40 = vld [vmem:[#allocation8 + $0x228] sm:$0xff] }
 0x12f   :  { %v2685_v42 = vpack.c.bf16 %v379_v40, %v376_v39  ;;  %v399_v40 = vld [vmem:[#allocation8 + $0x2c8] sm:$0xff] }
 0x130   :  { %3395 = vst [vmem:[#allocation25_spill] sm:$0xff] %v2633_v44 }
 0x131   :  { %3412 = vst [vmem:[#allocation42_spill] sm:$0xff] %v2685_v42 }
 0x16e   :  { %v97_v49 = vpop.xlane.xlu1 %96 }
 0x16f   :  { %v101_v50 = vmul.f32 0.032258064, %v97_v49  ;;  %v341_v49 = vld [vmem:[#allocation8 + $0xf8] sm:$0xff] }
 0x171   :  { %2337 = vrsqrt.f32 %v101_v50  ;;  %vm105_vm1 = vcmp.eq.f32.partialorder %v101_v50, inf  ;;  %v108_v55 = vand.u32 2147483648, %v101_v50  ;;  %vm107_vm2 = vcmp.eq.f32.partialorder %v101_v50, 0.0 }
 0x172   :  { %v100_v51 = vpop.xlane.xlu1 %99 }
 0x173   :  { %v102_v52 = vmul.f32 0.032258064, %v100_v51  ;;  %v2640_v51 = vpack.c.bf16 %v337_v47, %v334_v46  ;;  %v330_v46 = vld [vmem:[#allocation8 + $0xa0] sm:$0xff]  ;;  %v333_v47 = vld [vmem:[#allocation8 + $0xb8] sm:$0xff] }
 0x175   :  { %2339 = vrsqrt.f32 %v102_v52  ;;  %vm112_vm3 = vcmp.eq.f32.partialorder %v102_v52, inf  ;;  %v115_v58 = vand.u32 2147483648, %v102_v52  ;;  %vm114_vm4 = vcmp.eq.f32.partialorder %v102_v52, 0.0  ;;  %3397 = vst [vmem:[#allocation27_spill] sm:$0xff] %v2640_v51 }
 0x17b   :  { %v2338_v53 = vpop.eup %2337 }
 0x17c   :  { %v104_v54 = vmul.f32 %v2338_v53, %v101_v50  ;;  %v340_v53 = vld [vmem:[#allocation8 + $0xf0] sm:$0xff] }
 0x17e   :  { %v106_v56 = vsel %vm105_vm1, %v101_v50, %v104_v54  ;;  %v344_v50 = vld [vmem:[#allocation8 + $0x110] sm:$0xff]  ;;  %v343_v54 = vld [vmem:[#allocation8 + $0x108] sm:$0xff] }
 0x17f   :  { %v2340_v57 = vpop.eup %2339  ;;  %v109_v59 = vsel %vm107_vm2, %v108_v55, %v106_v56  ;;  %v347_v55 = vld [vmem:[#allocation8 + $0x128] sm:$0xff]  ;;  %v350_v56 = vld [vmem:[#allocation8 + $0x140] sm:$0xff] }
 0x180   :  { %v111_v60 = vmul.f32 %v2340_v57, %v102_v52  ;;  %v117_v61 = vadd.f32 1e-06, %v109_v59  ;;  %v2647_v57 = vpack.c.bf16 %v343_v54, %v340_v53  ;;  %v346_v59 = vld [vmem:[#allocation8 + $0x120] sm:$0xff]  ;;  %v384_v54 = vld [vmem:[#allocation8 + $0x250] sm:$0xff] }
 0x181   :  { %v386_v53 = vld [vmem:[#allocation8 + $0x260] sm:$0xff] }
 0x182   :  { %v113_v62 = vsel %vm112_vm3, %v102_v52, %v111_v60  ;;  %2341 = vrcp.f32 %v117_v61  ;;  %v2644_v52 = vpack.c.bf16 %v344_v50, %v341_v49  ;;  %3399 = vst [vmem:[#allocation29_spill] sm:$0xff] %v2647_v57  ;;  %v349_v60 = vld [vmem:[#allocation8 + $0x138] sm:$0xff]  ;;  %v2688_v49 = vpack.c.bf16 %v333_v47, %v330_v46  ;;  %v383_v50 = vld [vmem:[#allocation8 + $0x248] sm:$0xff]  ;;  %v394_v46 = vld [vmem:[#allocation8 + $0x2a0] sm:$0xff] }
 0x183   :  { %v116_v63 = vsel %vm114_vm4, %v115_v58, %v113_v62  ;;  %v2650_v58 = vpack.c.bf16 %v350_v56, %v347_v55  ;;  %v353_v61 = vld [vmem:[#allocation8 + $0x158] sm:$0xff]  ;;  %v356_v62 = vld [vmem:[#allocation8 + $0x170] sm:$0xff]  ;;  %v2693_v55 = vpack.c.bf16 %v386_v53, %v383_v50  ;;  %v387_v56 = vld [vmem:[#allocation8 + $0x268] sm:$0xff] }
 0x184   :  { %v118_v0 = vadd.f32 1e-06, %v116_v63  ;;  %3398 = vst [vmem:[#allocation28_spill] sm:$0xff] %v2644_v52  ;;  %v2653_v63 = vpack.c.bf16 %v349_v60, %v346_v59  ;;  %3413 = vst [vmem:[#allocation43_spill] sm:$0xff] %v2688_v49  ;;  %v382_v59 = vld [vmem:[#allocation8 + $0x240] sm:$0xff]  ;;  %v385_v60 = vld [vmem:[#allocation8 + $0x258] sm:$0xff] }
 0x185   :  { %3400 = vst [vmem:[#allocation30_spill] sm:$0xff] %v2650_v58  ;;  %3414 = vst [vmem:[#allocation44_spill] sm:$0xff] %v2693_v55  ;;  %v397_v47 = vld [vmem:[#allocation8 + $0x2b8] sm:$0xff] }
 0x186   :  { %2343 = vrcp.f32 %v118_v0  ;;  %3401 = vst [vmem:[#allocation31_spill] sm:$0xff] %v2653_v63  ;;  %v2656_v0 = vpack.c.bf16 %v356_v62, %v353_v61  ;;  %v2695_v61 = vpack.c.bf16 %v387_v56, %v384_v54  ;;  %v2697_v62 = vpack.c.bf16 %v385_v60, %v382_v59  ;;  %v348_v54 = vld [vmem:[#allocation8 + $0x130] sm:$0xff]  ;;  %v351_v56 = vld [vmem:[#allocation8 + $0x148] sm:$0xff]  ;;  %v401_v60 = vld [vmem:[#allocation8 + $0x2d8] sm:$0xff] }
 0x187   :  { %v2721_v53 = vpack.c.bf16 %v397_v47, %v394_v46  ;;  %v2724_v59 = vpack.c.bf16 %v351_v56, %v348_v54  ;;  %v411_v47 = vld [vmem:[#allocation8 + $0x328] sm:$0xff]  ;;  %v2747_v56 = vpop.permute.xlu1 %514 }
 0x188   :  { %3402 = vst [vmem:[#allocation32_spill] sm:$0xff] %v2656_v0  ;;  %3415 = vst [vmem:[#allocation45_spill] sm:$0xff] %v2695_v61 }
 0x189   :  { %3416 = vst [vmem:[#allocation46_spill] sm:$0xff] %v2697_v62  ;;  %3424 = vst [vmem:[#allocation54_spill] sm:$0xff] %v2721_v53 }
 0x18a   :  { %3425 = vst [vmem:[#allocation55_spill] sm:$0xff] %v2724_v59 }
 0x18c   :  { %v2342_v5 = vpop.eup %2341 }
 0x18d   :  { %v121_v11 = vmul.f32 %v2342_v5, %v2579_v6  ;;  %v322_v6 = vld [vmem:[#allocation8 + $0x60] sm:$0xff]  ;;  %v2659_v5 = vpack.c.bf16 %v355_v2, %v352_v1  ;;  %v336_v1 = vld [vmem:[#allocation8 + $0xd0] sm:$0xff]  ;;  %v339_v2 = vld [vmem:[#allocation8 + $0xe8] sm:$0xff] }
 0x18e   :  { %v2618_v33 = vpack.c.bf16 %v325_v22, %v322_v6  ;;  %v374_v6 = vld [vmem:[#allocation8 + $0x200] sm:$0xff]  ;;  %v2671_v22 = vpack.c.bf16 %v367_v18, %v364_v17  ;;  %v2700_v3 = vpack.c.bf16 %v339_v2, %v336_v1  ;;  %v388_v17 = vld [vmem:[#allocation8 + $0x270] sm:$0xff]  ;;  %v391_v18 = vld [vmem:[#allocation8 + $0x288] sm:$0xff] }
 0x18f   :  { %1748 = vmatmul.mubr.msk.f32.vlgmr.msra.gmra.mrb[0].mxu0 %vm81_vm0, %v121_v11  ;;  %1878 = vmatprep.mubr.msk.f32.mxu1 %vm81_vm0, %v121_v11  ;;  %3403 = vst [vmem:[#allocation33_spill] sm:$0xff] %v2659_v5  ;;  %v361_v11 = vld [vmem:[#allocation8 + $0x198] sm:$0xff]  ;;  %v404_v1 = vld [vmem:[#allocation8 + $0x2f0] sm:$0xff]  ;;  %v402_v2 = vld [vmem:[#allocation8 + $0x2e0] sm:$0xff] }
 0x190   :  { %v2344_v19 = vpop.eup %2343  ;;  %228 = vmatprep.mubr.f32.mxu0 %v3314_v21  ;;  %1970 = vmatpush1.bf16.msra.mxu0 %v2596_v7  ;;  %3390 = vst [vmem:[#allocation20_spill] sm:$0xff] %v2618_v33  ;;  %v2665_v15 = vpack.c.bf16 %v361_v11, %v358_v9  ;;  %3407 = vst [vmem:[#allocation37_spill] sm:$0xff] %v2671_v22  ;;  %v392_v9 = vld [vmem:[#allocation8 + $0x290] sm:$0xff]  ;;  %v390_v11 = vld [vmem:[#allocation8 + $0x280] sm:$0xff] }
 0x191   :  { %v122_v24 = vmul.f32 %v2344_v19, %v2583_v10  ;;  %1972 = vmatprep.subr.bf16.mxu0 %v2599_v12  ;;  %v328_v10 = vld [vmem:[#allocation8 + $0x90] sm:$0xff]  ;;  %v371_v19 = vld [vmem:[#allocation8 + $0x1e8] sm:$0xff]  ;;  %3417 = vst [vmem:[#allocation47_spill] sm:$0xff] %v2700_v3  ;;  %v2705_v13 = vpack.c.bf16 %v392_v9, %v389_v4  ;;  %v2729_v4 = vpack.c.bf16 %v404_v1, %v401_v60  ;;  %v405_v9 = vld [vmem:[#allocation8 + $0x2f8] sm:$0xff]  ;;  %v2749_v60 = vpop.permute.xlu1 %558 }
 0x192   :  { %v2630_v43 = vpack.c.bf16 %v331_v36, %v328_v10  ;;  %3405 = vst [vmem:[#allocation35_spill] sm:$0xff] %v2665_v15  ;;  %v2681_v10 = vpack.c.bf16 %v380_v31, %v377_v30  ;;  %v381_v36 = vld [vmem:[#allocation8 + $0x238] sm:$0xff]  ;;  %v2712_v30 = vpack.c.bf16 %v345_v28, %v342_v26  ;;  %v395_v31 = vld [vmem:[#allocation8 + $0x2a8] sm:$0xff]  ;;  %v354_v26 = vld [vmem:[#allocation8 + $0x160] sm:$0xff] }
 0x193   :  { %1749 = vmatmul.mubr.msk.f32.gmra.mrb[2].mxu0 %vm81_vm0, %v122_v24  ;;  %1879 = vmatmul.mubr.msk.f32.vlgmr.msra.gmra.mrb[0].mxu1 %vm81_vm0, %v122_v24  ;;  %v2674_v24 = vpack.c.bf16 %v374_v6, %v371_v19  ;;  %v2683_v41 = vpack.c.bf16 %v381_v36, %v378_v32  ;;  %3418 = vst [vmem:[#allocation48_spill] sm:$0xff] %v2705_v13  ;;  %v398_v32 = vld [vmem:[#allocation8 + $0x2c0] sm:$0xff]  ;;  %v396_v36 = vld [vmem:[#allocation8 + $0x2b0] sm:$0xff]  ;;  %3426 = vst [vmem:[#allocation56_spill] sm:$0xff] %v2729_v4 }
 0x194   :  { %1974 = vmatpush1.bf16.msra.mxu0 %v2605_v20  ;;  %2066 = vmatpush3.bf16.msra.mxu1 %v2607_v23  ;;  %3394 = vst [vmem:[#allocation24_spill] sm:$0xff] %v2630_v43  ;;  %3410 = vst [vmem:[#allocation40_spill] sm:$0xff] %v2681_v10  ;;  %v2707_v19 = vpack.c.bf16 %v393_v14, %v390_v11  ;;  %v2709_v6 = vpack.c.bf16 %v391_v18, %v388_v17  ;;  %v400_v11 = vld [vmem:[#allocation8 + $0x2d0] sm:$0xff]  ;;  %v403_v14 = vld [vmem:[#allocation8 + $0x2e8] sm:$0xff] }
 0x195   :  { %1976 = vmatprep.subr.bf16.mxu0 %v2611_v25  ;;  %2068 = vmatprep.subr.bf16.mxu1 %v2613_v27  ;;  %3408 = vst [vmem:[#allocation38_spill] sm:$0xff] %v2674_v24  ;;  %3411 = vst [vmem:[#allocation41_spill] sm:$0xff] %v2683_v41  ;;  %v2717_v39 = vpack.c.bf16 %v398_v32, %v395_v31  ;;  %v2719_v50 = vpack.c.bf16 %v399_v40, %v396_v36  ;;  %v357_v28 = vld [vmem:[#allocation8 + $0x178] sm:$0xff]  ;;  %v407_v32 = vld [vmem:[#allocation8 + $0x308] sm:$0xff]  ;;  %v2751_v1 = vpop.permute.xlu1 %602 }
 0x196   :  { %3419 = vst [vmem:[#allocation49_spill] sm:$0xff] %v2707_v19  ;;  %3420 = vst [vmem:[#allocation50_spill] sm:$0xff] %v2709_v6  ;;  %v2731_v17 = vpack.c.bf16 %v405_v9, %v402_v2  ;;  %v2733_v18 = vpack.c.bf16 %v403_v14, %v400_v11  ;;  %v2736_v31 = vpack.c.bf16 %v357_v28, %v354_v26  ;;  %v410_v36 = vld [vmem:[#allocation8 + $0x320] sm:$0xff]  ;;  %v408_v40 = vld [vmem:[#allocation8 + $0x310] sm:$0xff]  ;;  %v137_v11 = vlaneseq }
 0x197   :  { %3421 = vst [vmem:[#allocation51_spill] sm:$0xff] %v2712_v30  ;;  %3422 = vst [vmem:[#allocation52_spill] sm:$0xff] %v2717_v39  ;;  %v2741_v46 = vpack.c.bf16 %v410_v36, %v407_v32  ;;  %v2743_v54 = vpack.c.bf16 %v411_v47, %v408_v40  ;;  %v135_v32 = vld [vmem:[%s3310_s3] sm:$0x7]  ;;  %v424_v25 = vld [vmem:[#allocation8 + $0x390] sm:$0xff] }
 0x198   :  { %1978 = vmatpush1.bf16.msra.mxu0 %v2618_v33  ;;  %2070 = vmatpush3.bf16.msra.mxu1 %v2621_v34  ;;  %3423 = vst [vmem:[#allocation53_spill] sm:$0xff] %v2719_v50  ;;  %3427 = vst [vmem:[#allocation57_spill] sm:$0xff] %v2731_v17  ;;  %v138_v14 = vshrl.u32 %v137_v11, 7  ;;  %v426_v33 = vld [vmem:[#allocation8 + $0x3a0] sm:$0xff] }
 0x199   :  { %1980 = vmatprep.subr.bf16.mxu0 %v2624_v35  ;;  %2072 = vmatprep.subr.bf16.mxu1 %v2627_v37  ;;  %3428 = vst [vmem:[#allocation58_spill] sm:$0xff] %v2733_v18  ;;  %3429 = vst [vmem:[#allocation59_spill] sm:$0xff] %v2736_v31  ;;  %v2753_v2 = vpop.permute.xlu1 %646 }
 0x19a   :  { %3430 = vst [vmem:[#allocation60_spill] sm:$0xff] %v2741_v46  ;;  %v2759_v28 = vsub.s32 1, %v138_v14  ;;  %v2766_v40 = vsub.s32 0, %v138_v14 }
 0x19c   :  { %1982 = vmatpush1.bf16.msra.mxu0 %v2630_v43  ;;  %2074 = vmatpush3.bf16.msra.mxu1 %v2633_v44  ;;  %v2769_v47 = vrot.slane %v135_v32, %v2759_v28  ;;  %v2803_v43 = vsub.s32 7, %v138_v14 }
 0x19d   :  { %1984 = vmatprep.subr.bf16.mxu0 %v2636_v45  ;;  %2076 = vmatprep.subr.bf16.mxu1 %v2683_v41  ;;  %v2755_v9 = vpop.permute.xlu1 %690  ;;  %v428_v45 = vld [vmem:[#allocation8 + $0x3b0] sm:$0xff] }
 0x1a0   :  { %1986 = vmatpush1.bf16.msra.mxu0 %v2640_v51  ;;  %2078 = vmatpush3.bf16.msra.mxu1 %v2688_v49  ;;  %v425_v49 = vld [vmem:[#allocation8 + $0x398] sm:$0xff] }
 0x1a1   :  { %1988 = vmatprep.subr.bf16.mxu0 %v2644_v52  ;;  %2080 = vmatprep.subr.bf16.mxu1 %v2695_v61  ;;  %v2757_v26 = vpop.permute.xlu1 %734 }
 0x1a4   :  { %1990 = vmatpush1.bf16.msra.mxu0 %v2647_v57  ;;  %2082 = vmatpush3.bf16.msra.mxu1 %v2700_v3  ;;  %v423_v57 = vld [vmem:[#allocation8 + $0x388] sm:$0xff] }
 0x1a5   :  { %1992 = vmatprep.subr.bf16.mxu0 %v2650_v58  ;;  %2084 = vmatprep.subr.bf16.mxu1 %v2707_v19  ;;  %v2764_v36 = vpop.permute.xlu1 %778  ;;  %v420_v58 = vld [vmem:[#allocation8 + $0x370] sm:$0xff]  ;;  %v418_v19 = vld [vmem:[#allocation8 + $0x360] sm:$0xff] }
 0x1a6   :  { %v2819_v34 = vpack.c.bf16 %v423_v57, %v420_v58 }
 0x1a8   :  { %1994 = vmatpush1.bf16.msra.mxu0 %v2653_v63  ;;  %2086 = vmatpush3.bf16.msra.mxu1 %v2712_v30  ;;  %v2792_v63 = vsub.s32 5, %v138_v14  ;;  %v2796_v30 = vsub.s32 6, %v138_v14  ;;  %3431 = vst [vmem:[#allocation61_spill] sm:$0xff] %v2819_v34 }
 0x1a9   :  { %1996 = vmatprep.subr.bf16.mxu0 %v2656_v0  ;;  %2088 = vmatprep.subr.bf16.mxu1 %v2719_v50  ;;  %v2794_v50 = vsub.s32 4, %v138_v14 }
 0x1ac   :  { %1998 = vmatpush1.bf16.msra.mxu0 %v2659_v5  ;;  %2090 = vmatpush3.bf16.msra.mxu1 %v2724_v59  ;;  %v419_v5 = vld [vmem:[#allocation8 + $0x368] sm:$0xff]  ;;  %v2787_v59 = vpop.permute.xlu0 %475 }
 0x1ad   :  { %2000 = vmatprep.subr.bf16.mxu0 %v2662_v8  ;;  %2092 = vmatprep.subr.bf16.mxu1 %v2731_v17  ;;  %v415_v8 = vld [vmem:[#allocation8 + $0x348] sm:$0xff]  ;;  %v422_v17 = vld [vmem:[#allocation8 + $0x380] sm:$0xff] }
 0x1ae   :  { %v2817_v37 = vpack.c.bf16 %v422_v17, %v419_v5 }
 0x1b0   :  { %2002 = vmatpush1.bf16.msra.mxu0 %v2665_v15  ;;  %2094 = vmatpush3.bf16.msra.mxu1 %v2736_v31 }
 0x1b1   :  { %2004 = vmatprep.subr.bf16.mxu0 %v2668_v16  ;;  %2096 = vmatprep.subr.bf16.mxu1 %v2743_v54  ;;  %v2785_v16 = vsub.s32 3, %v138_v14 }
 0x1b4   :  { %2006 = vmatpush1.bf16.msra.mxu0 %v2671_v22  ;;  %v417_v22 = vld [vmem:[#allocation8 + $0x358] sm:$0xff] }
 0x1b5   :  { %2008 = vmatprep.subr.bf16.mxu0 %v2674_v24  ;;  %v414_v24 = vld [vmem:[#allocation8 + $0x340] sm:$0xff] }
 0x1b6   :  { %v2809_v35 = vpack.c.bf16 %v417_v22, %v414_v24 }
 0x1b8   :  { %2010 = vmatpush1.bf16.msra.mxu0 %v2677_v29 }
 0x1b9   :  { %2012 = vmatprep.subr.bf16.mxu0 %v2681_v10 }
 0x1bc   :  { %2014 = vmatpush1.bf16.msra.mxu0 %v2685_v42 }
 0x1bd   :  { %2016 = vmatprep.subr.bf16.mxu0 %v2693_v55 }
 0x1c0   :  { %2018 = vmatpush1.bf16.msra.mxu0 %v2697_v62  ;;  %v416_v62 = vld [vmem:[#allocation8 + $0x350] sm:$0xff] }
 0x1c1   :  { %2020 = vmatprep.subr.bf16.mxu0 %v2705_v13  ;;  %v413_v13 = vld [vmem:[#allocation8 + $0x338] sm:$0xff] }
 0x1c2   :  { %v2807_v44 = vpack.c.bf16 %v416_v62, %v413_v13  ;;  %v2827_v13 = vpack.c.bf16 %v428_v45, %v425_v49 }
 0x1c4   :  { %2022 = vmatpush1.bf16.msra.mxu0 %v2709_v6  ;;  %v409_v6 = vld [vmem:[#allocation8 + $0x318] sm:$0xff]  ;;  %3433 = vst [vmem:[#allocation63_spill] sm:$0xff] %v2827_v13 }
 0x1c5   :  { %2024 = vmatprep.subr.bf16.mxu0 %v2717_v39  ;;  %v406_v39 = vld [vmem:[#allocation8 + $0x300] sm:$0xff] }
 0x1c6   :  { %v2805_v41 = vpack.c.bf16 %v409_v6, %v406_v39  ;;  %v427_v6 = vld [vmem:[#allocation8 + $0x3a8] sm:$0xff] }
 0x1c8   :  { %2026 = vmatpush1.bf16.msra.mxu0 %v2721_v53  ;;  %v2779_v53 = vsub.s32 2, %v138_v14  ;;  %v429_v14 = vld [vmem:[#allocation8 + $0x3b8] sm:$0xff] }
 0x1c9   :  { %2028 = vmatprep.subr.bf16.mxu0 %v2729_v4  ;;  %v2777_v4 = vpop.permute.xlu1 %480 }
 0x1ca   :  { %v148_v3 = vrot.slane %v135_v32, %v2779_v53 }
 0x1cc   :  { %2030 = vmatpush1.bf16.msra.mxu0 %v2733_v18  ;;  %v2772_v18 = vrot.slane %v135_v32, %v2766_v40 }
 0x1cd   :  { %2032 = vmatprep.subr.bf16.mxu0 %v2741_v46  ;;  %v2811_v32 = vpop.permute.xlu1 %562 }
 0x262   :  { %v224_v21 = vpop.f32.mrb[0].mxu0 }
 0x263   :  { %v226_v46 = vpop.f32.mrb[1].mxu0  ;;  %v2790_v0 = vadd.f32 %v224_v21, %v2772_v18  ;;  %v421_v21 = vld [vmem:[#allocation8 + $0x378] sm:$0xff] }
 0x264   :  { %v2775_v11 = vadd.f32 %v226_v46, %v2769_v47  ;;  %v412_v46 = vld [vmem:[#allocation8 + $0x330] sm:$0xff]  ;;  %v2825_v24 = vpack.c.bf16 %v421_v21, %v418_v19  ;;  %v2840_v19 = vpack.c.bf16 %v427_v6, %v424_v25  ;;  %v2855_v21 = vpop.permute.xlu1 %606 }
 0x265   :  { %v486_v62 = vrot.slane %v2790_v0, %v2766_v40  ;;  %v524_v22 = vrot.slane %v2790_v0, %v2759_v28  ;;  %v568_v58 = vrot.slane %v2790_v0, %v2779_v53  ;;  %v612_v17 = vrot.slane %v2790_v0, %v2785_v16 }
 0x266   :  { %v230_v55 = vpop.f32.mrb[2].mxu0  ;;  %v1880_v42 = vpop.f32.mrb[0].mxu1  ;;  %v490_v10 = vrot.slane %v2775_v11, %v2766_v40  ;;  %v528_v29 = vrot.slane %v2775_v11, %v2759_v28  ;;  %v572_v61 = vrot.slane %v2775_v11, %v2779_v53  ;;  %3432 = vst [vmem:[#allocation62_spill] sm:$0xff] %v2825_v24  ;;  %v660_v57 = vrot.slane %v2775_v11, %v2794_v50 }
 0x267   :  { %v232_v15 = vpop.f32.mrb[3].mxu0  ;;  %v301_v31 = vpop.f32.mrb[1].mxu1  ;;  %v2829_v39 = vadd.f32 %v1880_v42, %v148_v3  ;;  %v2849_v49 = vadd.f32 %v230_v55, %v2772_v18  ;;  %v545_v25 = vmul.f32 %v524_v22, %v2747_v56  ;;  %v589_v6 = vmul.f32 %v568_v58, %v2749_v60 }
 0x268   :  { %v508_v52 = vmul.f32 %v490_v10, %v2787_v59  ;;  %v546_v51 = vmul.f32 %v528_v29, %v2747_v56  ;;  %v616_v29 = vrot.slane %v2775_v11, %v2785_v16  ;;  %v2815_v10 = vpack.c.bf16 %v415_v8, %v412_v46 }
 0x269   :  { %v590_v5 = vmul.f32 %v572_v61, %v2749_v60  ;;  %v2838_v46 = vpack.c.bf16 %v429_v14, %v426_v33  ;;  %v2843_v45 = vadd.f32 %v232_v15, %v2769_v47  ;;  %v748_v61 = vrot.slane %v2775_v11, %v2796_v30 }
 0x26a   :  { %v552_v8 = vadd.f32 %v546_v51, %v508_v52  ;;  %v634_v51 = vmul.f32 %v616_v29, %v2751_v1  ;;  %v704_v52 = vrot.slane %v2775_v11, %v2792_v63  ;;  %v507_v33 = vmul.f32 %v486_v62, %v2787_v59 }
 0x26b   :  { %v506_v15 = vrot.slane %v2829_v39, %v2766_v40  ;;  %v2859_v47 = vadd.f32 %v301_v31, %v148_v3  ;;  %v678_v14 = vmul.f32 %v660_v57, %v2753_v2  ;;  %v656_v62 = vrot.slane %v2790_v0, %v2794_v50 }
 0x26c   :  { %v596_v42 = vadd.f32 %v590_v5, %v552_v8  ;;  %v551_v18 = vadd.f32 %v545_v25, %v507_v33  ;;  %v722_v8 = vmul.f32 %v704_v52, %v2755_v9  ;;  %v792_v5 = vrot.slane %v2775_v11, %v2803_v43 }
 0x26d   :  { %v502_v3 = vrot.slane %v2843_v45, %v2766_v40  ;;  %v766_v31 = vmul.f32 %v748_v61, %v2757_v26  ;;  %v700_v58 = vrot.slane %v2790_v0, %v2792_v63  ;;  %v677_v25 = vmul.f32 %v656_v62, %v2753_v2 }
 0x26e   :  { %v640_v29 = vadd.f32 %v634_v51, %v596_v42  ;;  %v595_v57 = vadd.f32 %v589_v6, %v551_v18  ;;  %v633_v42 = vmul.f32 %v612_v17, %v2751_v1  ;;  %v2876_v51 = vpop.permute.xlu0 %518  ;;  %v744_v52 = vrot.slane %v2790_v0, %v2796_v30  ;;  %v2888_v18 = vpop.permute.xlu1 %694 }
 0x26f   :  { %v788_v11 = vrot.slane %v2790_v0, %v2803_v43  ;;  %v511_v61 = vmul.f32 %v502_v3, %v2777_v4  ;;  %v540_v17 = vrot.slane %v2843_v45, %v2759_v28  ;;  %v668_v62 = vrot.slane %v2849_v49, %v2794_v50 }
 0x270   :  { %v684_v22 = vadd.f32 %v678_v14, %v640_v29  ;;  %v639_v29 = vadd.f32 %v633_v42, %v595_v57  ;;  %v584_v14 = vrot.slane %v2843_v45, %v2779_v53  ;;  %v810_v0 = vmul.f32 %v792_v5, %v2764_v36 }
 0x271   :  { %v721_v3 = vmul.f32 %v700_v58, %v2755_v9  ;;  %v549_v57 = vmul.f32 %v540_v17, %v2876_v51  ;;  %v628_v42 = vrot.slane %v2843_v45, %v2785_v16  ;;  %v765_v20 = vmul.f32 %v744_v52, %v2757_v26 }
 0x272   :  { %v728_v33 = vadd.f32 %v722_v8, %v684_v22  ;;  %v683_v8 = vadd.f32 %v677_v25, %v639_v29  ;;  %v809_v27 = vmul.f32 %v788_v11, %v2764_v36  ;;  %v672_v6 = vrot.slane %v2843_v45, %v2794_v50 }
 0x273   :  { %v593_v5 = vmul.f32 %v584_v14, %v2811_v32  ;;  %v716_v58 = vrot.slane %v2843_v45, %v2792_v63  ;;  %v498_v25 = vrot.slane %v2849_v49, %v2766_v40  ;;  %v536_v52 = vrot.slane %v2849_v49, %v2759_v28 }
 0x274   :  { %v772_v22 = vadd.f32 %v766_v31, %v728_v33  ;;  %v727_v23 = vadd.f32 %v721_v3, %v683_v8  ;;  %v555_v31 = vadd.f32 %v549_v57, %v511_v61  ;;  %v2906_v33 = vpop.permute.xlu0 %650  ;;  %v580_v11 = vrot.slane %v2849_v49, %v2779_v53 }
 0x275   :  { %v637_v17 = vmul.f32 %v628_v42, %v2855_v21  ;;  %v760_v14 = vrot.slane %v2843_v45, %v2796_v30  ;;  %v548_v8 = vmul.f32 %v536_v52, %v2876_v51  ;;  %v624_v3 = vrot.slane %v2849_v49, %v2785_v16 }
 0x276   :  { %v816_v55 = vadd.f32 %v810_v0, %v772_v22  ;;  %v771_v29 = vadd.f32 %v765_v20, %v727_v23  ;;  %v599_v61 = vadd.f32 %v593_v5, %v555_v31  ;;  %v512_v22 = vmul.f32 %v506_v15, %v2777_v4  ;;  %v2918_v0 = vpop.permute.xlu1 %738 }
 0x277   :  { %v681_v20 = vmul.f32 %v672_v6, %v2906_v33  ;;  %v725_v23 = vmul.f32 %v716_v58, %v2888_v18  ;;  %v804_v42 = vrot.slane %v2843_v45, %v2803_v43  ;;  %v592_v15 = vmul.f32 %v580_v11, %v2811_v32 }
 0x278   :  { %885 = vmatprep.mubr.f32.mxu0 %v816_v55  ;;  %1039 = vmatprep.mubr.f32.mxu1 %v816_v55  ;;  %v510_v55 = vmul.f32 %v498_v25, %v2777_v4  ;;  %v815_v57 = vadd.f32 %v809_v27, %v771_v29  ;;  %v643_v12 = vadd.f32 %v637_v17, %v599_v61  ;;  %v2934_v6 = vpop.permute.xlu0 %782 }
 0x279   :  { %v494_v5 = vrot.slane %v2859_v47, %v2766_v40  ;;  %v769_v52 = vmul.f32 %v760_v14, %v2918_v0  ;;  %v712_v27 = vrot.slane %v2849_v49, %v2792_v63  ;;  %v636_v58 = vmul.f32 %v624_v3, %v2855_v21 }
 0x27a   :  { %v554_v31 = vadd.f32 %v548_v8, %v510_v55  ;;  %886 = vmatmul.mubr.f32.vlgmr.msra.gmra.mrb[4].mxu0 %v815_v57  ;;  %1040 = vmatmul.mubr.f32.vlgmr.msra.gmra.mrb[2].mxu1 %v815_v57  ;;  %v687_v25 = vadd.f32 %v681_v20, %v643_v12  ;;  %v532_v12 = vrot.slane %v2859_v47, %v2759_v28 }
 0x27b   :  { %2034 = vmatpush1.bf16.msra.mxu0 %v2805_v41  ;;  %2098 = vmatpush3.bf16.msra.mxu1 %v2743_v54  ;;  %v509_v11 = vmul.f32 %v494_v5, %v2787_v59  ;;  %v576_v61 = vrot.slane %v2859_v47, %v2779_v53  ;;  %v3434_v17 = vrot.slane %v2829_v39, %v2759_v28 }
 0x27c   :  { %v598_v45 = vadd.f32 %v592_v15, %v554_v31  ;;  %v731_v29 = vadd.f32 %v725_v23, %v687_v25  ;;  %2036 = vmatprep.subr.bf16.mxu0 %v2807_v44  ;;  %2100 = vmatprep.subr.bf16.mxu1 %v2809_v35  ;;  %v680_v55 = vmul.f32 %v668_v62, %v2906_v33 }
 0x27d   :  { %v550_v14 = vmul.f32 %v3434_v17, %v2876_v51  ;;  %v756_v3 = vrot.slane %v2849_v49, %v2796_v30  ;;  %v813_v20 = vmul.f32 %v804_v42, %v2934_v6  ;;  %v547_v23 = vmul.f32 %v532_v12, %v2747_v56  ;;  %v431_v12 = vld [vmem:[#allocation8 + $0x3c8] sm:$0xff] }
 0x27e   :  { %v642_v8 = vadd.f32 %v636_v58, %v598_v45  ;;  %v775_v57 = vadd.f32 %v769_v52, %v731_v29  ;;  %v620_v31 = vrot.slane %v2859_v47, %v2785_v16  ;;  %v724_v5 = vmul.f32 %v712_v27, %v2888_v18 }
 0x27f   :  { %v800_v25 = vrot.slane %v2849_v49, %v2803_v43  ;;  %2038 = vmatpush1.bf16.msra.mxu0 %v2815_v10  ;;  %2102 = vmatpush3.bf16.msra.mxu1 %v2809_v35  ;;  %v553_v45 = vadd.f32 %v547_v23, %v509_v11  ;;  %v591_v52 = vmul.f32 %v576_v61, %v2749_v60 }
 0x280   :  { %v686_v15 = vadd.f32 %v680_v55, %v642_v8  ;;  %v819_v62 = vadd.f32 %v813_v20, %v775_v57  ;;  %v664_v42 = vrot.slane %v2859_v47, %v2794_v50  ;;  %2040 = vmatprep.subr.bf16.mxu0 %v2817_v37  ;;  %v556_v58 = vadd.f32 %v550_v14, %v512_v22  ;;  %v434_v55 = vld [vmem:[#allocation8 + $0x3e0] sm:$0xff]  ;;  %v432_v8 = vld [vmem:[#allocation8 + $0x3d0] sm:$0xff]  ;;  %v435_v22 = vld [vmem:[#allocation8 + $0x3e8] sm:$0xff] }
 0x281   :  { %v632_v27 = vrot.slane %v2829_v39, %v2785_v16  ;;  %v768_v49 = vmul.f32 %v756_v3, %v2918_v0  ;;  %2104 = vmatprep.subr.bf16.mxu1 %v2819_v34  ;;  %v597_v11 = vadd.f32 %v591_v52, %v553_v45  ;;  %v635_v61 = vmul.f32 %v620_v31, %v2751_v1 }
 0x282   :  { %v730_v29 = vadd.f32 %v724_v5, %v686_v15  ;;  %891 = vmatprep.mubr.f32.mxu0 %v819_v62  ;;  %1044 = vmatprep.mubr.f32.mxu1 %v819_v62  ;;  %v708_v17 = vrot.slane %v2859_v47, %v2792_v63  ;;  %v3435_v14 = vrot.slane %v2829_v39, %v2779_v53 }
 0x283   :  { %v812_v20 = vmul.f32 %v800_v25, %v2934_v6  ;;  %2042 = vmatpush1.bf16.msra.mxu0 %v2825_v24  ;;  %2106 = vmatpush3.bf16.msra.mxu1 %v2819_v34  ;;  %v641_v23 = vadd.f32 %v635_v61, %v597_v11  ;;  %v679_v31 = vmul.f32 %v664_v42, %v2753_v2  ;;  %v430_v25 = vld [vmem:[#allocation8 + $0x3c0] sm:$0xff]  ;;  %v440_v61 = vld [vmem:[#allocation8 + $0x410] sm:$0xff] }
 0x284   :  { %v594_v57 = vmul.f32 %v3435_v14, %v2811_v32  ;;  %v774_v3 = vadd.f32 %v768_v49, %v730_v29  ;;  %v752_v15 = vrot.slane %v2859_v47, %v2796_v30  ;;  %2044 = vmatprep.subr.bf16.mxu0 %v2827_v13  ;;  %2108 = vmatprep.subr.bf16.mxu1 %v2838_v46  ;;  %v433_v29 = vld [vmem:[#allocation8 + $0x3d8] sm:$0xff]  ;;  %v438_v24 = vld [vmem:[#allocation8 + $0x400] sm:$0xff] }
 0x285   :  { %v2985_v45 = vpack.c.bf16 %v434_v55, %v431_v12  ;;  %v2987_v52 = vpack.c.bf16 %v435_v22, %v432_v8  ;;  %v437_v49 = vld [vmem:[#allocation8 + $0x3f8] sm:$0xff]  ;;  %v685_v14 = vadd.f32 %v679_v31, %v641_v23  ;;  %v723_v11 = vmul.f32 %v708_v17, %v2755_v9  ;;  %v436_v22 = vld [vmem:[#allocation8 + $0x3f0] sm:$0xff]  ;;  %v446_v31 = vld [vmem:[#allocation8 + $0x440] sm:$0xff] }
 0x286   :  { %v600_v5 = vadd.f32 %v594_v57, %v556_v58  ;;  %v818_v62 = vadd.f32 %v812_v20, %v774_v3  ;;  %v796_v42 = vrot.slane %v2859_v47, %v2803_v43  ;;  %v441_v13 = vld [vmem:[#allocation8 + $0x418] sm:$0xff]  ;;  %v638_v34 = vmul.f32 %v632_v27, %v2855_v21  ;;  %v439_v57 = vld [vmem:[#allocation8 + $0x408] sm:$0xff] }
 0x287   :  { %v676_v58 = vrot.slane %v2829_v39, %v2794_v50  ;;  %v729_v12 = vadd.f32 %v723_v11, %v685_v14  ;;  %v767_v55 = vmul.f32 %v752_v15, %v2757_v26  ;;  %2046 = vmatpush1.bf16.msra.mxu0 %v2840_v19  ;;  %2110 = vmatpush3.bf16.msra.mxu1 %v2838_v46  ;;  %v443_v3 = vld [vmem:[#allocation8 + $0x428] sm:$0xff]  ;;  %v444_v15 = vld [vmem:[#allocation8 + $0x430] sm:$0xff]  ;;  %v442_v11 = vld [vmem:[#allocation8 + $0x420] sm:$0xff] }
 0x288   :  { %892 = vmatmul.mubr.f32.gmra.mrb[6].mxu0 %v818_v62  ;;  %1045 = vmatmul.mubr.f32.gmra.mrb[4].mxu1 %v818_v62  ;;  %v2998_v17 = vpack.c.bf16 %v433_v29, %v430_v25  ;;  %v644_v47 = vadd.f32 %v638_v34, %v600_v5  ;;  %v3002_v27 = vpack.c.bf16 %v440_v61, %v437_v49  ;;  %v447_v62 = vld [vmem:[#allocation8 + $0x448] sm:$0xff]  ;;  %v3439_v25 = vmov 0.0   ;;  %v449_v61 = vld [vmem:[#allocation8 + $0x458] sm:$0xff] }
 0x289   :  { %2048 = vmatprep.subr.bf16.mxu0 %v2985_v45  ;;  %2112 = vmatprep.subr.bf16.mxu1 %v2987_v52  ;;  %v3004_v8 = vpack.c.bf16 %v441_v13, %v438_v24  ;;  %v773_v20 = vadd.f32 %v767_v55, %v729_v12  ;;  %v811_v23 = vmul.f32 %v796_v42, %v2764_v36  ;;  %v445_v42 = vld [vmem:[#allocation8 + $0x438] sm:$0xff]  ;;  %v450_v12 = vld [vmem:[#allocation8 + $0x460] sm:$0xff] }
 0x28a   :  { %3436 = vst [vmem:[#allocation64_spill] sm:$0xff] %v2998_v17  ;;  %3437 = vst [vmem:[#allocation65_spill] sm:$0xff] %v3002_v27  ;;  %962 = vmatprep.mubr.f32.mxu0 %v3439_v25  ;;  %v720_v34 = vrot.slane %v2829_v39, %v2792_v63  ;;  %v682_v5 = vmul.f32 %v676_v58, %v2906_v33  ;;  %v3013_v24 = vpack.c.bf16 %v439_v57, %v436_v22  ;;  %v452_v58 = vld [vmem:[#allocation8 + $0x470] sm:$0xff]  ;;  %v453_v55 = vld [vmem:[#allocation8 + $0x478] sm:$0xff] }
 0x28b   :  { %3438 = vst [vmem:[#allocation66_spill] sm:$0xff] %v3004_v8  ;;  %v817_v29 = vadd.f32 %v811_v23, %v773_v20  ;;  %2050 = vmatpush1.bf16.msra.mxu0 %v2998_v17  ;;  %2114 = vmatpush3.bf16.msra.mxu1 %v2987_v52  ;;  %v3017_v49 = vpack.c.bf16 %v446_v31, %v443_v3  ;;  %v448_v31 = vld [vmem:[#allocation8 + $0x450] sm:$0xff] }
 0x28c   :  { %3440 = vst [vmem:[#allocation67_spill] sm:$0xff] %v3013_v24  ;;  %v688_v13 = vadd.f32 %v682_v5, %v644_v47  ;;  %2052 = vmatprep.subr.bf16.mxu0 %v3002_v27  ;;  %2116 = vmatprep.subr.bf16.mxu1 %v3004_v8  ;;  %v3019_v14 = vpack.c.bf16 %v447_v62, %v444_v15  ;;  %v451_v15 = vld [vmem:[#allocation8 + $0x468] sm:$0xff] }
 0x28d   :  { %3441 = vst [vmem:[#allocation68_spill] sm:$0xff] %v3017_v49  ;;  %1913 = vmatprep.mubr.f32.mxu1 %v817_v29  ;;  %v726_v20 = vmul.f32 %v720_v34, %v2888_v18  ;;  %v764_v47 = vrot.slane %v2829_v39, %v2796_v30  ;;  %v3026_v22 = vpack.c.bf16 %v445_v42, %v442_v11 }
 0x28e   :  { %3442 = vst [vmem:[#allocation69_spill] sm:$0xff] %v3019_v14  ;;  %v3030_v3 = vpack.c.bf16 %v452_v58, %v449_v61  ;;  %v3032_v23 = vpack.c.bf16 %v453_v55, %v450_v12  ;;  %v808_v34 = vrot.slane %v2829_v39, %v2803_v43  ;;  %v3039_v5 = vpack.c.bf16 %v451_v15, %v448_v31  ;;  %v3447_v39 = vld [vmem:[#allocation15_spill] sm:$0xff]  ;;  %v3448_v61 = vld [vmem:[#allocation17_spill] sm:$0xff]  ;;  %v3450_v12 = vld [vmem:[#allocation16_spill] sm:$0xff] }
 0x28f   :  { %2054 = vmatpush1.bf16.msra.mxu0 %v3013_v24  ;;  %2118 = vmatpush3.bf16.msra.mxu1 %v3004_v8  ;;  %3443 = vst [vmem:[#allocation70_spill] sm:$0xff] %v3026_v22  ;;  %v732_v57 = vadd.f32 %v726_v20, %v688_v13  ;;  %v770_v62 = vmul.f32 %v764_v47, %v2918_v0  ;;  %v3449_v58 = vld [vmem:[#allocation19_spill] sm:$0xff]  ;;  %v3451_v55 = vld [vmem:[#allocation18_spill] sm:$0xff]  ;;  %v3457_v47 = vld [vmem:[#allocation41_spill] sm:$0xff] }
 0x290   :  { %2056 = vmatprep.subr.bf16.mxu0 %v3017_v49  ;;  %2120 = vmatprep.subr.bf16.mxu1 %v3019_v14  ;;  %3444 = vst [vmem:[#allocation71_spill] sm:$0xff] %v3030_v3  ;;  %3445 = vst [vmem:[#allocation72_spill] sm:$0xff] %v3032_v23  ;;  %v814_v11 = vmul.f32 %v808_v34, %v2934_v6  ;;  %v3455_v20 = vld [vmem:[#allocation22_spill] sm:$0xff]  ;;  %v3460_v15 = vld [vmem:[#allocation43_spill] sm:$0xff] }
 0x291   :  { %3446 = vst [vmem:[#allocation73_spill] sm:$0xff] %v3039_v5  ;;  %v776_v13 = vadd.f32 %v770_v62, %v732_v57  ;;  %v3458_v57 = vld [vmem:[#allocation24_spill] sm:$0xff]  ;;  %v3459_v31 = vld [vmem:[#allocation26_spill] sm:$0xff]  ;;  %v3461_v62 = vld [vmem:[#allocation45_spill] sm:$0xff] }
 0x292   :  { %v3462_v34 = vld [vmem:[#allocation27_spill] sm:$0xff] }
 0x293   :  { %2058 = vmatpush1.bf16.msra.mxu0 %v3026_v22  ;;  %2122 = vmatpush3.bf16.msra.mxu1 %v3019_v14  ;;  %v820_v42 = vadd.f32 %v814_v11, %v776_v13  ;;  %v3463_v13 = vld [vmem:[#allocation28_spill] sm:$0xff]  ;;  %v3464_v11 = vld [vmem:[#allocation47_spill] sm:$0xff] }
 0x294   :  { %2060 = vmatprep.subr.bf16.mxu0 %v3030_v3  ;;  %2124 = vmatprep.subr.bf16.mxu1 %v3032_v23 }
 0x297   :  { %2062 = vmatpush1.bf16.msra.mxu0 %v3039_v5  ;;  %2126 = vmatpush3.bf16.msra.mxu1 %v3032_v23 }
 0x298   :  { %2128 = vmatprep.subr.bf16.mxu1 %v2590_v38  ;;  %2224 = vmatprep.subr.bf16.mxu0 %v2593_v48  ;;  %v3452_v38 = vld [vmem:[#allocation21_spill] sm:$0xff]  ;;  %v3453_v48 = vld [vmem:[#allocation23_spill] sm:$0xff] }
 0x29a   :  { %963 = vmatmul.mubr.f32.vlgmr.msra.gmra.mrb[4].mxu0 %v817_v29  ;;  %1914 = vmatmul.mubr.f32.vlgmr.msra.gmra.mrb[6].mxu1 %v820_v42  ;;  %v3454_v29 = vld [vmem:[#allocation20_spill] sm:$0xff] }
 0x29b   :  { %968 = vmatprep.mubr.f32.mxu0 %v3439_v25  ;;  %2130 = vmatpush1.bf16.msra.mxu1 %v2596_v7  ;;  %v3456_v7 = vld [vmem:[#allocation25_spill] sm:$0xff] }
 0x29c   :  { %2132 = vmatprep.subr.bf16.mxu1 %v3447_v39  ;;  %2226 = vmatpush3.bf16.msra.mxu0 %v3448_v61  ;;  %v3466_v39 = vld [vmem:[#allocation29_spill] sm:$0xff]  ;;  %v3467_v61 = vld [vmem:[#allocation30_spill] sm:$0xff] }
 0x29d   :  { %2228 = vmatprep.subr.bf16.mxu0 %v3449_v58  ;;  %v3468_v58 = vld [vmem:[#allocation51_spill] sm:$0xff] }
 0x29e   :  { %969 = vmatmul.mubr.f32.gmra.mrb[6].mxu0 %v820_v42  ;;  %v3465_v42 = vld [vmem:[#allocation49_spill] sm:$0xff] }
 0x29f   :  { %2134 = vmatpush1.bf16.msra.mxu1 %v3450_v12  ;;  %v3469_v12 = vld [vmem:[#allocation53_spill] sm:$0xff] }
 0x2a0   :  { %2136 = vmatprep.subr.bf16.mxu1 %v3451_v55  ;;  %2230 = vmatpush3.bf16.msra.mxu0 %v3452_v38  ;;  %v3470_v55 = vld [vmem:[#allocation31_spill] sm:$0xff]  ;;  %v3471_v38 = vld [vmem:[#allocation32_spill] sm:$0xff] }
 0x2a1   :  { %2232 = vmatprep.subr.bf16.mxu0 %v3453_v48  ;;  %v3472_v48 = vld [vmem:[#allocation55_spill] sm:$0xff] }
 0x2a3   :  { %2138 = vmatpush1.bf16.msra.mxu1 %v3454_v29  ;;  %v3473_v29 = vld [vmem:[#allocation57_spill] sm:$0xff] }
 0x2a4   :  { %2140 = vmatprep.subr.bf16.mxu1 %v3455_v20  ;;  %2234 = vmatpush3.bf16.msra.mxu0 %v3456_v7  ;;  %v3474_v20 = vld [vmem:[#allocation33_spill] sm:$0xff]  ;;  %v3475_v7 = vld [vmem:[#allocation34_spill] sm:$0xff] }
 0x2a5   :  { %2236 = vmatprep.subr.bf16.mxu0 %v3457_v47  ;;  %v3476_v47 = vld [vmem:[#allocation59_spill] sm:$0xff] }
 0x2a7   :  { %2142 = vmatpush1.bf16.msra.mxu1 %v3458_v57  ;;  %v3477_v57 = vld [vmem:[#allocation35_spill] sm:$0xff] }
 0x2a8   :  { %2144 = vmatprep.subr.bf16.mxu1 %v3459_v31  ;;  %2238 = vmatpush3.bf16.msra.mxu0 %v3460_v15  ;;  %v3478_v31 = vld [vmem:[#allocation36_spill] sm:$0xff]  ;;  %v3479_v15 = vld [vmem:[#allocation37_spill] sm:$0xff] }
 0x2a9   :  { %2240 = vmatprep.subr.bf16.mxu0 %v3461_v62  ;;  %v3480_v62 = vld [vmem:[#allocation38_spill] sm:$0xff] }
 0x2ab   :  { %2146 = vmatpush1.bf16.msra.mxu1 %v3462_v34  ;;  %v3481_v34 = vld [vmem:[#allocation39_spill] sm:$0xff] }
 0x2ac   :  { %2148 = vmatprep.subr.bf16.mxu1 %v3463_v13  ;;  %2242 = vmatpush3.bf16.msra.mxu0 %v3464_v11  ;;  %v3482_v13 = vld [vmem:[#allocation40_spill] sm:$0xff]  ;;  %v3483_v11 = vld [vmem:[#allocation42_spill] sm:$0xff] }
 0x2ad   :  { %2244 = vmatprep.subr.bf16.mxu0 %v3465_v42  ;;  %v3484_v42 = vld [vmem:[#allocation44_spill] sm:$0xff] }
 0x2af   :  { %2150 = vmatpush1.bf16.msra.mxu1 %v3466_v39  ;;  %v3485_v39 = vld [vmem:[#allocation46_spill] sm:$0xff] }
 0x2b0   :  { %2152 = vmatprep.subr.bf16.mxu1 %v3467_v61  ;;  %2246 = vmatpush3.bf16.msra.mxu0 %v3468_v58  ;;  %v3486_v61 = vld [vmem:[#allocation48_spill] sm:$0xff]  ;;  %v3487_v58 = vld [vmem:[#allocation50_spill] sm:$0xff] }
 0x2b1   :  { %2248 = vmatprep.subr.bf16.mxu0 %v3469_v12  ;;  %v3488_v12 = vld [vmem:[#allocation52_spill] sm:$0xff] }
 0x2b3   :  { %2154 = vmatpush1.bf16.msra.mxu1 %v3470_v55  ;;  %v3489_v55 = vld [vmem:[#allocation54_spill] sm:$0xff] }
 0x2b4   :  { %2156 = vmatprep.subr.bf16.mxu1 %v3471_v38  ;;  %2250 = vmatpush3.bf16.msra.mxu0 %v3472_v48  ;;  %v3490_v38 = vld [vmem:[#allocation56_spill] sm:$0xff]  ;;  %v3491_v48 = vld [vmem:[#allocation58_spill] sm:$0xff] }
 0x2b5   :  { %2252 = vmatprep.subr.bf16.mxu0 %v3473_v29  ;;  %v3492_v29 = vld [vmem:[#allocation60_spill] sm:$0xff] }
 0x2b7   :  { %2158 = vmatpush1.bf16.msra.mxu1 %v3474_v20 }
 0x2b8   :  { %2160 = vmatprep.subr.bf16.mxu1 %v3475_v7  ;;  %2254 = vmatpush3.bf16.msra.mxu0 %v3476_v47 }
 0x2b9   :  { %2256 = vmatprep.subr.bf16.mxu0 %v2743_v54 }
 0x2bb   :  { %2162 = vmatpush1.bf16.msra.mxu1 %v3477_v57 }
 0x2bc   :  { %2164 = vmatprep.subr.bf16.mxu1 %v3478_v31 }
 0x2bf   :  { %2166 = vmatpush1.bf16.msra.mxu1 %v3479_v15 }
 0x2c0   :  { %2168 = vmatprep.subr.bf16.mxu1 %v3480_v62  ;;  %v454_v62 = vld [vmem:[%s3312_s5] sm:$0x7]  ;;  %s2480_s5 = smov [#allocation10]  }
 0x2c1   :  { %s1734_s23 = sshll.u32 %s2480_s5, 4  ;;  %s1735_s23 = int_to_ptr.vmem [resolvable:$true] %s1734_s23 }
 0x2c2   :  { %s2433_s25 = scalar_lea.vmem %s1735_s23, 768  ;;  %p2438_p5 = scmp.lt.s32.totalorder %s1735_s23, %s1735_s23 }
 0x2c3   :  { %2170 = vmatpush1.bf16.msra.mxu1 %v3481_v34  ;;  %v3101_v34 = vrot.slane %v454_v62, %v2779_v53  ;;  %p2434_p4 = scmp.ne.s32.totalorder %s1735_s23, %s2433_s25  ;;  %p2439_p6 = scmp.lt.s32.totalorder %s2433_s25, %s2433_s25 }
 0x2c4   :  { %2172 = vmatprep.subr.bf16.mxu1 %v3482_v13  ;;  %v3104_v13 = vrot.slane %v454_v62, %v2766_v40 }
 0x2c5   :  { %3493 = vst [vmem:[#allocation15_spill] sm:$0xff] %v3101_v34  ;;  %p2440_p7 = por %p2439_p6, %p2438_p5 }
 0x2c6   :  { %3494 = vst [vmem:[#allocation17_spill] sm:$0xff] %v3104_v13 }
 0x2c7   :  { %2174 = vmatpush1.bf16.msra.mxu1 %v3483_v11  ;;  %v3107_v11 = vrot.slane %v454_v62, %v2759_v28  ;;  %p2441_p8 = pnand %p2440_p7, %p2434_p4 }
 0x2c8   :  { %2176 = vmatprep.subr.bf16.mxu1 %v3484_v42 }
 0x2c9   :  { %3495 = vst [vmem:[#allocation19_spill] sm:$0xff] %v3107_v11 }
 0x2cb   :  { %2178 = vmatpush1.bf16.msra.mxu1 %v3485_v39 }
 0x2cc   :  { %2180 = vmatprep.subr.bf16.mxu1 %v3486_v61 }
 0x2cf   :  { %2182 = vmatpush1.bf16.msra.mxu1 %v3487_v58 }
 0x2d0   :  { %2184 = vmatprep.subr.bf16.mxu1 %v3488_v12 }
 0x2d3   :  { %2186 = vmatpush1.bf16.msra.mxu1 %v3489_v55 }
 0x2d4   :  { %2188 = vmatprep.subr.bf16.mxu1 %v3490_v38 }
 0x2d7   :  { %2190 = vmatpush1.bf16.msra.mxu1 %v3491_v48 }
 0x2d8   :  { %2192 = vmatprep.subr.bf16.mxu1 %v3492_v29 }
 0x34d   :  { %v1790_v20 = vpop.f32.mrb[2].mxu1 }
 0x34e   :  { %v1791_v7 = vpop.f32.mrb[3].mxu1 }
 0x34f   :  { %v1792_v47 = vadd.f32 %v1791_v7, %v1790_v20 }
 0x351   :  { %v1042_v58 = vadd.f32 %v1792_v47, %v3101_v34 }
 0x35b   :  { %v1793_v57 = vpop.f32.mrb[4].mxu1 }
 0x35c   :  { %v1794_v31 = vpop.f32.mrb[5].mxu1 }
 0x35d   :  { %v1795_v15 = vadd.f32 %v1794_v31, %v1793_v57 }
 0x35f   :  { %v1047_v42 = vadd.f32 %v1795_v15, %v3101_v34 }
 0x36d   :  { %v964_v39 = vpop.f32.mrb[4].mxu0  ;;  %v1915_v61 = vpop.f32.mrb[6].mxu1 }
 0x36e   :  { %v2287_v12 = vadd.f32 %v964_v39, %v3104_v13  ;;  %v3112_v55 = vadd.f32 %v1915_v61, %v1047_v42  ;;  %v966_v38 = vpop.f32.mrb[5].mxu0  ;;  %v1116_v48 = vpop.f32.mrb[7].mxu1 }
 0x36f   :  { %v2288_v29 = vadd.f32 %v966_v38, %v3107_v11  ;;  %v1117_v20 = vadd.f32 %v1116_v48, %v1042_v58 }
 0x370   :  { %v1125_v7 = vmax.f32 %v2287_v12, 0.0 }
 0x371   :  { %v1126_v57 = vmax.f32 %v2288_v29, 0.0  ;;  %v970_v31 = vpop.f32.mrb[6].mxu0  ;;  %v3122_v38 = vmax.f32 %v1117_v20, 0.0 }
 0x372   :  { %v2289_v62 = vadd.f32 %v970_v31, %v3104_v13  ;;  %v972_v5 = vpop.f32.mrb[7].mxu0  ;;  %v1134_v15 = vrot.slane %v1125_v7, %v2766_v40  ;;  %v1164_v23 = vrot.slane %v1125_v7, %v2759_v28  ;;  %v1380_v27 = vrot.slane %v1125_v7, %v2803_v43 }
 0x373   :  { %v2290_v47 = vadd.f32 %v972_v5, %v3107_v11  ;;  %v1138_v42 = vrot.slane %v1126_v57, %v2766_v40  ;;  %v1168_v39 = vrot.slane %v1126_v57, %v2759_v28  ;;  %v1204_v61 = vrot.slane %v1126_v57, %v2779_v53 }
 0x374   :  { %v1240_v58 = vrot.slane %v1126_v57, %v2785_v16  ;;  %v1276_v12 = vrot.slane %v1126_v57, %v2794_v50  ;;  %v1312_v31 = vrot.slane %v1126_v57, %v2792_v63  ;;  %v1200_v5 = vrot.slane %v1125_v7, %v2779_v53 }
 0x375   :  { %v1156_v48 = vmul.f32 %v1138_v42, %v2787_v59  ;;  %v1186_v29 = vmul.f32 %v1168_v39, %v2747_v56  ;;  %v3130_v11 = vmax.f32 %v2289_v62, 0.0  ;;  %v3132_v13 = vmax.f32 %v2290_v47, 0.0 }
 0x376   :  { %v1222_v34 = vmul.f32 %v1204_v61, %v2749_v60  ;;  %v1348_v20 = vrot.slane %v1126_v57, %v2796_v30  ;;  %v1258_v22 = vmul.f32 %v1240_v58, %v2751_v1  ;;  %v1155_v14 = vmul.f32 %v1134_v15, %v2787_v59 }
 0x377   :  { %v1192_v3 = vadd.f32 %v1186_v29, %v1156_v48  ;;  %v1185_v42 = vmul.f32 %v1164_v23, %v2747_v56  ;;  %v1294_v39 = vmul.f32 %v1276_v12, %v2753_v2  ;;  %v1384_v49 = vrot.slane %v1126_v57, %v2803_v43 }
 0x378   :  { %v1236_v62 = vrot.slane %v1125_v7, %v2785_v16  ;;  %v1272_v47 = vrot.slane %v1125_v7, %v2794_v50  ;;  %v1330_v61 = vmul.f32 %v1312_v31, %v2755_v9  ;;  %v1221_v48 = vmul.f32 %v1200_v5, %v2749_v60 }
 0x379   :  { %v1228_v24 = vadd.f32 %v1222_v34, %v1192_v3  ;;  %v1191_v8 = vadd.f32 %v1185_v42, %v1155_v14  ;;  %v1366_v58 = vmul.f32 %v1348_v20, %v2757_v26  ;;  %v1308_v23 = vrot.slane %v1125_v7, %v2792_v63 }
 0x37a   :  { %v1257_v15 = vmul.f32 %v1236_v62, %v2751_v1  ;;  %v1344_v12 = vrot.slane %v1125_v7, %v2796_v30  ;;  %v1150_v3 = vrot.slane %v3132_v13, %v2766_v40  ;;  %v1402_v34 = vmul.f32 %v1384_v49, %v2764_v36 }
 0x37b   :  { %v1264_v29 = vadd.f32 %v1258_v22, %v1228_v24  ;;  %v1227_v57 = vadd.f32 %v1221_v48, %v1191_v8  ;;  %v1293_v14 = vmul.f32 %v1272_v47, %v2753_v2  ;;  %v1180_v31 = vrot.slane %v3132_v13, %v2759_v28 }
 0x37c   :  { %v1216_v5 = vrot.slane %v3132_v13, %v2779_v53  ;;  %v1159_v24 = vmul.f32 %v1150_v3, %v2777_v4  ;;  %v1252_v8 = vrot.slane %v3132_v13, %v2785_v16  ;;  %v1329_v22 = vmul.f32 %v1308_v23, %v2755_v9 }
 0x37d   :  { %v1300_v20 = vadd.f32 %v1294_v39, %v1264_v29  ;;  %v1263_v42 = vadd.f32 %v1257_v15, %v1227_v57  ;;  %v1365_v7 = vmul.f32 %v1344_v12, %v2757_v26  ;;  %v1189_v49 = vmul.f32 %v1180_v31, %v2876_v51 }
 0x37e   :  { %v1288_v62 = vrot.slane %v3132_v13, %v2794_v50  ;;  %v1401_v17 = vmul.f32 %v1380_v27, %v2764_v36  ;;  %v1225_v39 = vmul.f32 %v1216_v5, %v2811_v32  ;;  %v1261_v29 = vmul.f32 %v1252_v8, %v2855_v21 }
 0x37f   :  { %v1336_v47 = vadd.f32 %v1330_v61, %v1300_v20  ;;  %v1299_v48 = vadd.f32 %v1293_v14, %v1263_v42  ;;  %v1195_v15 = vadd.f32 %v1189_v49, %v1159_v24  ;;  %v1324_v57 = vrot.slane %v3132_v13, %v2792_v63 }
 0x380   :  { %v1360_v23 = vrot.slane %v3132_v13, %v2796_v30  ;;  %v1396_v31 = vrot.slane %v3132_v13, %v2803_v43  ;;  %v1146_v61 = vrot.slane %v3130_v11, %v2766_v40  ;;  %v1297_v14 = vmul.f32 %v1288_v62, %v2906_v33 }
 0x381   :  { %v1372_v12 = vadd.f32 %v1366_v58, %v1336_v47  ;;  %v1335_v3 = vadd.f32 %v1329_v22, %v1299_v48  ;;  %v1231_v27 = vadd.f32 %v1225_v39, %v1195_v15  ;;  %v1176_v5 = vrot.slane %v3130_v11, %v2759_v28 }
 0x382   :  { %v1212_v20 = vrot.slane %v3130_v11, %v2779_v53  ;;  %v1158_v58 = vmul.f32 %v1146_v61, %v2777_v4  ;;  %v1248_v8 = vrot.slane %v3130_v11, %v2785_v16  ;;  %v1333_v22 = vmul.f32 %v1324_v57, %v2888_v18 }
 0x383   :  { %v1408_v42 = vadd.f32 %v1402_v34, %v1372_v12  ;;  %v1371_v24 = vadd.f32 %v1365_v7, %v1335_v3  ;;  %v1267_v13 = vadd.f32 %v1261_v29, %v1231_v27  ;;  %v1188_v49 = vmul.f32 %v1176_v5, %v2876_v51 }
 0x384   :  { %v1284_v62 = vrot.slane %v3130_v11, %v2794_v50  ;;  %v1369_v48 = vmul.f32 %v1360_v23, %v2918_v0  ;;  %v1405_v34 = vmul.f32 %v1396_v31, %v2934_v6  ;;  %v1224_v15 = vmul.f32 %v1212_v20, %v2811_v32 }
 0x385   :  { %1477 = vmatprep.mubr.f32.mxu1 %v1408_v42  ;;  %1631 = vmatprep.mubr.f32.mxu0 %v1408_v42  ;;  %v1407_v47 = vadd.f32 %v1401_v17, %v1371_v24  ;;  %v1303_v7 = vadd.f32 %v1297_v14, %v1267_v13  ;;  %v1194_v39 = vadd.f32 %v1188_v49, %v1158_v58 }
 0x386   :  { %v1260_v29 = vmul.f32 %v1248_v8, %v2855_v21  ;;  %v1320_v57 = vrot.slane %v3130_v11, %v2792_v63  ;;  %v1356_v12 = vrot.slane %v3130_v11, %v2796_v30  ;;  %v1142_v17 = vrot.slane %v3122_v38, %v2766_v40 }
 0x387   :  { %1478 = vmatmul.mubr.f32.vlgmr.msra.gmra.mrb[8].mxu1 %v1407_v47  ;;  %1632 = vmatmul.mubr.f32.vlgmr.msra.gmra.mrb[8].mxu0 %v1407_v47  ;;  %v1339_v23 = vadd.f32 %v1333_v22, %v1303_v7  ;;  %v1230_v3 = vadd.f32 %v1224_v15, %v1194_v39  ;;  %v1296_v31 = vmul.f32 %v1284_v62, %v2906_v33  ;;  %v3496_v47 = vld [vmem:[#allocation61_spill] sm:$0xff]  ;;  %v3497_v39 = vld [vmem:[#allocation62_spill] sm:$0xff] }
 0x388   :  { %2194 = vmatpush1.bf16.msra.mxu1 %v2805_v41  ;;  %2258 = vmatpush3.bf16.msra.mxu0 %v2743_v54  ;;  %v1392_v61 = vrot.slane %v3130_v11, %v2803_v43  ;;  %v1157_v27 = vmul.f32 %v1142_v17, %v2787_v59  ;;  %v1172_v14 = vrot.slane %v3122_v38, %v2759_v28 }
 0x389   :  { %2196 = vmatprep.subr.bf16.mxu1 %v2807_v44  ;;  %2260 = vmatprep.subr.bf16.mxu0 %v2809_v35  ;;  %v1375_v5 = vadd.f32 %v1369_v48, %v1339_v23  ;;  %v1266_v41 = vadd.f32 %v1260_v29, %v1230_v3  ;;  %v1208_v54 = vrot.slane %v3122_v38, %v2779_v53  ;;  %v3214_v44 = vmax.f32 %v3112_v55, 0.0  ;;  %v3498_v29 = vld [vmem:[#allocation63_spill] sm:$0xff] }
 0x38a   :  { %v1244_v20 = vrot.slane %v3122_v38, %v2785_v16  ;;  %v1332_v42 = vmul.f32 %v1320_v57, %v2888_v18  ;;  %v1368_v11 = vmul.f32 %v1356_v12, %v2918_v0  ;;  %v1187_v59 = vmul.f32 %v1172_v14, %v2747_v56  ;;  %v3504_v14 = vld [vmem:[#allocation69_spill] sm:$0xff] }
 0x38b   :  { %v1411_v24 = vadd.f32 %v1405_v34, %v1375_v5  ;;  %v1302_v58 = vadd.f32 %v1296_v31, %v1266_v41  ;;  %v1280_v8 = vrot.slane %v3122_v38, %v2794_v50  ;;  %v1404_v13 = vmul.f32 %v1392_v61, %v2934_v6 }
 0x38c   :  { %2198 = vmatpush1.bf16.msra.mxu1 %v2815_v10  ;;  %2262 = vmatpush3.bf16.msra.mxu0 %v2809_v35  ;;  %v1193_v22 = vadd.f32 %v1187_v59, %v1157_v27  ;;  %v1223_v55 = vmul.f32 %v1208_v54, %v2749_v60  ;;  %v1316_v49 = vrot.slane %v3122_v38, %v2792_v63  ;;  %v3505_v54 = vld [vmem:[#allocation70_spill] sm:$0xff] }
 0x38d   :  { %2200 = vmatprep.subr.bf16.mxu1 %v2817_v37  ;;  %1483 = vmatprep.mubr.f32.mxu1 %v1411_v24  ;;  %v1338_v56 = vadd.f32 %v1332_v42, %v1302_v58  ;;  %v1259_v10 = vmul.f32 %v1244_v20, %v2751_v1  ;;  %v1352_v35 = vrot.slane %v3122_v38, %v2796_v30 }
 0x38e   :  { %1636 = vmatprep.mubr.f32.mxu0 %v1411_v24  ;;  %v1229_v62 = vadd.f32 %v1223_v55, %v1193_v22  ;;  %2264 = vmatprep.subr.bf16.mxu0 %v3496_v47  ;;  %v1154_v48 = vrot.slane %v3214_v44, %v2766_v40  ;;  %v1184_v60 = vrot.slane %v3214_v44, %v2759_v28 }
 0x38f   :  { %v1220_v37 = vrot.slane %v3214_v44, %v2779_v53  ;;  %v1374_v34 = vadd.f32 %v1368_v11, %v1338_v56  ;;  %v1295_v7 = vmul.f32 %v1280_v8, %v2753_v2  ;;  %v1256_v1 = vrot.slane %v3214_v44, %v2785_v16  ;;  %v3508_v11 = vld [vmem:[#allocation73_spill] sm:$0xff] }
 0x390   :  { %2202 = vmatpush1.bf16.msra.mxu1 %v3497_v39  ;;  %2266 = vmatpush3.bf16.msra.mxu0 %v3496_v47  ;;  %v1265_v15 = vadd.f32 %v1259_v10, %v1229_v62  ;;  %v1160_v28 = vmul.f32 %v1154_v48, %v2777_v4  ;;  %v1190_v40 = vmul.f32 %v1184_v60, %v2876_v51  ;;  %v3510_v56 = vld [vmem:[#allocation17_spill] sm:$0xff]  ;;  %v3511_v48 = vld [vmem:[#allocation19_spill] sm:$0xff] }
 0x391   :  { %2204 = vmatprep.subr.bf16.mxu1 %v3498_v29  ;;  %2268 = vmatprep.subr.bf16.mxu0 %v2838_v46  ;;  %v1410_v53 = vadd.f32 %v1404_v13, %v1374_v34  ;;  %v1331_v57 = vmul.f32 %v1316_v49, %v2755_v9  ;;  %v1388_v12 = vrot.slane %v3122_v38, %v2803_v43  ;;  %v3509_v13 = vld [vmem:[#allocation15_spill] sm:$0xff] }
 0x392   :  { %v1301_v2 = vadd.f32 %v1295_v7, %v1265_v15  ;;  %v1196_v17 = vadd.f32 %v1190_v40, %v1160_v28  ;;  %v1226_v23 = vmul.f32 %v1220_v37, %v2811_v32  ;;  %v1367_v16 = vmul.f32 %v1352_v35, %v2757_v26 }
 0x393   :  { %1484 = vmatmul.mubr.f32.gmra.mrb[10].mxu1 %v1410_v53  ;;  %1637 = vmatmul.mubr.f32.gmra.mrb[10].mxu0 %v1410_v53  ;;  %v1292_v3 = vrot.slane %v3214_v44, %v2794_v50  ;;  %v1262_v51 = vmul.f32 %v1256_v1, %v2855_v21  ;;  %v1403_v38 = vmul.f32 %v1388_v12, %v2764_v36  ;;  %v3500_v21 = vld [vmem:[#allocation65_spill] sm:$0xff] }
 0x394   :  { %v1337_v4 = vadd.f32 %v1331_v57, %v1301_v2  ;;  %2206 = vmatpush1.bf16.msra.mxu1 %v2840_v19  ;;  %2270 = vmatpush3.bf16.msra.mxu0 %v2838_v46  ;;  %v1232_v9 = vadd.f32 %v1226_v23, %v1196_v17  ;;  %v1328_v19 = vrot.slane %v3214_v44, %v2792_v63  ;;  %v3499_v46 = vld [vmem:[#allocation64_spill] sm:$0xff] }
 0x395   :  { %2208 = vmatprep.subr.bf16.mxu1 %v2985_v45  ;;  %2272 = vmatprep.subr.bf16.mxu0 %v2987_v52  ;;  %v1298_v50 = vmul.f32 %v1292_v3, %v2906_v33  ;;  %v3501_v45 = vld [vmem:[#allocation66_spill] sm:$0xff]  ;;  %v1364_v27 = vrot.slane %v3214_v44, %v2796_v30  ;;  %v3502_v33 = vld [vmem:[#allocation67_spill] sm:$0xff]  ;;  %v3503_v63 = vld [vmem:[#allocation68_spill] sm:$0xff]  ;;  %v1400_v41 = vrot.slane %v3214_v44, %v2803_v43 }
 0x396   :  { %v1373_v32 = vadd.f32 %v1367_v16, %v1337_v4  ;;  %1554 = vmatprep.mubr.f32.mxu1 %v3439_v25  ;;  %v1268_v26 = vadd.f32 %v1262_v51, %v1232_v9  ;;  %v1334_v36 = vmul.f32 %v1328_v19, %v2888_v18  ;;  %v3506_v18 = vld [vmem:[#allocation71_spill] sm:$0xff]  ;;  %v3507_v30 = vld [vmem:[#allocation72_spill] sm:$0xff] }
 0x397   :  { %v1370_v5 = vmul.f32 %v1364_v27, %v2918_v0  ;;  %v1406_v42 = vmul.f32 %v1400_v41, %v2934_v6 }
 0x398   :  { %v1409_v31 = vadd.f32 %v1403_v38, %v1373_v32  ;;  %2210 = vmatpush1.bf16.msra.mxu1 %v3499_v46  ;;  %2274 = vmatpush3.bf16.msra.mxu0 %v2987_v52  ;;  %v1304_v61 = vadd.f32 %v1298_v50, %v1268_v26 }
 0x399   :  { %2212 = vmatprep.subr.bf16.mxu1 %v3500_v21  ;;  %2276 = vmatprep.subr.bf16.mxu0 %v3501_v45 }
 0x39a   :  { %1948 = vmatprep.mubr.f32.mxu0 %v1409_v31  ;;  %v1340_v52 = vadd.f32 %v1334_v36, %v1304_v61 }
 0x39c   :  { %2214 = vmatpush1.bf16.msra.mxu1 %v3502_v33  ;;  %2278 = vmatpush3.bf16.msra.mxu0 %v3501_v45  ;;  %v1376_v20 = vadd.f32 %v1370_v5, %v1340_v52 }
 0x39d   :  { %2216 = vmatprep.subr.bf16.mxu1 %v3503_v63  ;;  %2280 = vmatprep.subr.bf16.mxu0 %v3504_v14 }
 0x39e   :  { %v1412_v59 = vadd.f32 %v1406_v42, %v1376_v20 }
 0x3a0   :  { %2218 = vmatpush1.bf16.msra.mxu1 %v3505_v54  ;;  %2282 = vmatpush3.bf16.msra.mxu0 %v3504_v14 }
 0x3a1   :  { %2220 = vmatprep.subr.bf16.mxu1 %v3506_v18  ;;  %2284 = vmatprep.subr.bf16.mxu0 %v3507_v30 }
 0x3a4   :  { %2222 = vmatpush1.bf16.msra.mxu1 %v3508_v11  ;;  %2286 = vmatpush3.bf16.msra.mxu0 %v3507_v30 }
 0x3a7   :  { %1555 = vmatmul.mubr.f32.vlgmr.msra.gmra.mrb[8].mxu1 %v1409_v31  ;;  %1949 = vmatmul.mubr.f32.vlgmr.msra.gmra.mrb[12].mxu0 %v1412_v59 }
 0x3a8   :  { %1560 = vmatprep.mubr.f32.mxu1 %v3439_v25 }
 0x3ab   :  { %1561 = vmatmul.mubr.f32.gmra.mrb[10].mxu1 %v1412_v59 }
 0x45a   :  { %v1846_v43 = vpop.f32.mrb[8].mxu0 }
 0x45b   :  { %v1847_v0 = vpop.f32.mrb[9].mxu0 }
 0x45c   :  { %v1848_v44 = vadd.f32 %v1847_v0, %v1846_v43 }
 0x45e   :  { %v1634_v49 = vadd.f32 %v1848_v44, %v3509_v13 }
 0x466   :  { %v1849_v24 = vpop.f32.mrb[10].mxu0 }
 0x467   :  { %v1850_v58 = vpop.f32.mrb[11].mxu0 }
 0x468   :  { %v1851_v8 = vadd.f32 %v1850_v58, %v1849_v24 }
 0x46a   :  { %v1639_v22 = vadd.f32 %v1851_v8, %v3509_v13 }
 0x47a   :  { %v1556_v55 = vpop.f32.mrb[8].mxu1  ;;  %v1950_v6 = vpop.f32.mrb[12].mxu0 }
 0x47b   :  { %v2291_v10 = vadd.f32 %v1556_v55, %v3510_v56  ;;  %v1714_v35 = vadd.f32 %v1950_v6, %v1639_v22  ;;  %v1558_v62 = vpop.f32.mrb[9].mxu1  ;;  %v1708_v47 = vpop.f32.mrb[13].mxu0 }
 0x47c   :  { %v2292_v25 = vadd.f32 %v1558_v62, %v3511_v48  ;;  %v1709_v60 = vadd.f32 %v1708_v47, %v1634_v49 }
 0x47d   :  { %v1717_v37 = vmax.f32 %v2291_v10, 0.0  ;;  %v1722_v34 = vmax.f32 %v1714_v35, 0.0 }
 0x47e   :  { %v1718_v7 = vmax.f32 %v2292_v25, 0.0  ;;  %v1719_v39 = vmax.f32 %v1709_v60, 0.0  ;;  %v1562_v1 = vpop.f32.mrb[10].mxu1 }
 0x47f   :  { %1723 = vst [vmem:[#allocation10] sm:$0xff] %v1717_v37  ;;  %1728 = vst [vmem:[#allocation10 + $0x28] sm:$0xff] %v1722_v34  ;;  %v2293_v15 = vadd.f32 %v1562_v1, %v3510_v56  ;;  %v1564_v29 = vpop.f32.mrb[11].mxu1 }
 0x480   :  { %1724 = vst [vmem:[#allocation10 + $0x8] sm:$0xff] %v1718_v7  ;;  %1725 = vst [vmem:[#allocation10 + $0x10] sm:$0xff] %v1719_v39  ;;  %v2294_v28 = vadd.f32 %v1564_v29, %v3511_v48 }
 0x481   :  { %v1720_v40 = vmax.f32 %v2293_v15, 0.0 }
 0x482   :  { %v1721_v53 = vmax.f32 %v2294_v28, 0.0 }
 0x483   :  { %1726 = vst [vmem:[#allocation10 + $0x18] sm:$0xff] %v1720_v40 }
 0x484   :  { %1727 = vst [vmem:[#allocation10 + $0x20] sm:$0xff] %v1721_v53 }
 0x485   :  { %2444 = shalt.err (!%p2441_p8)
}
 0x486   :  { %s2445_s28 = scalar_lea.hbm %s3313_s6, 768 }
 0x487   :  { %p2446_p9 = scmp.ne.s32.totalorder %s3313_s6, %s2445_s28  ;;  %p2449_p10 = scmp.lt.u32.totalorder %s2445_s28, %s3313_s6 }
 0x489   :  { %p2451_p11 = pnand %p2449_p10, %p2446_p9 }
 0x48b   :  { %2454 = shalt.err (!%p2451_p11)
}
 0x48c   :  { %1740 = dma.vmem_to_hbm [thread:$0]  %s1735_s23, 768, %s3313_s6, [#allocation4], %s2468_s0, %s2468_s0, %s2469_s24  }
 0x48d   :  { %2461 = dma.done.wait [#allocation4], 768  }
 0x48e   :  { %2462 = vsyncadd [#allocation4], 4294966528 }
 0x48f   :  { %1744 = vsyncpa [#allocation3], 1 }
 0x490   :  { %1745 = vsyncpa [#allocation6], 1 }
 0x491   :  { %1746 = vsyncpa [#allocation9], 1 }
 0x492   :  { %1747 = vsyncpa [#allocation4], 1 }

// kernel: tpu_custom_call.1
= control target key start
LH: loop header
LB: loop body
LE: loop exit
PB: predicated region body
PF: predicated region fallthrough
CT: control target
= control target key end

     0   :  { %11 = vsyncpa [#allocation3], 0  ;;  %s3307_s0 = inlined_call_operand.hbm [shape: f32[2,8,32], index: 0, kind: input, shape index: {}]   ;;  %s3308_s1 = inlined_call_operand.hbm [shape: f32[2,8,8], index: 1, kind: input, shape index: {}]   ;;  %s3309_s2 = inlined_call_operand.hbm [shape: f32[32,384], index: 2, kind: input, shape index: {}]   ;;  %s3310_s3 = inlined_call_operand.vmem [shape: f32[1,384], index: 3, kind: input, shape index: {}]   ;;  %s3311_s4 = inlined_call_operand.hbm [shape: f32[384,384], index: 4, kind: input, shape index: {}]   ;;  %s3312_s5 = inlined_call_operand.vmem [shape: f32[1,384], index: 5, kind: input, shape index: {}]   ;;  %s3313_s6 = inlined_call_operand.hbm [shape: f32[2,8,384], index: 6, kind: output, shape index: {}]  }
   0x1   :  { %12 = vsyncpa [#allocation6], 0 }
   0x2   :  { %13 = vsyncpa [#allocation9], 0 }
   0x3   :  { %14 = vsyncpa [#allocation4], 0  ;;  %s2463_s21 = smov [#allocation5]   ;;  %s2464_s23 = smov [#allocation2]  }
   0x4   :  { %s32_s22 = sshll.u32 %s2463_s21, 4  ;;  %s20_s24 = sshll.u32 %s2464_s23, 4  ;;  %s33_s22 = int_to_ptr.vmem [resolvable:$true] %s32_s22  ;;  %s2516_s24 = int_to_ptr.vmem [resolvable:$true] %s20_s24 }
   0x5   :  { %s2345_s27 = scalar_lea.hbm %s3308_s1, 256 }
   0x6   :  { %p2346_p0 = scmp.ne.s32.totalorder %s3308_s1, %s2345_s27  ;;  %p2349_p1 = scmp.lt.u32.totalorder %s2345_s27, %s3308_s1 }
   0x8   :  { %p2351_p2 = pnand %p2349_p1, %p2346_p0 }
   0xa   :  { %2354 = shalt.err (!%p2351_p2)
}
   0xb   :  { %s2355_s8 = scalar_lea.vmem %s33_s22, 256  ;;  %p2360_p4 = scmp.lt.s32.totalorder %s33_s22, %s33_s22 }
   0xc   :  { %p2356_p3 = scmp.ne.s32.totalorder %s33_s22, %s2355_s8  ;;  %p2361_p5 = scmp.lt.s32.totalorder %s2355_s8, %s2355_s8 }
   0xe   :  { %p2362_p6 = por %p2361_p5, %p2360_p4 }
  0x10   :  { %p2363_p7 = pnand %p2362_p6, %p2356_p3 }
  0x12   :  { %2366 = shalt.err (!%p2363_p7)
}
  0x13   :  { %s2465_s9 = smov 128   ;;  %s2466_s10 = smov 8  }
  0x14   :  { %38 = dma.hbm_to_vmem [thread:$0]  %s3308_s1, 256, %s33_s22, [#allocation6], %s2465_s9, %s2465_s9, %s2466_s10  }
  0x15   :  { %s2367_s15 = scalar_lea.hbm %s3307_s0, 256 }
  0x16   :  { %p2368_p8 = scmp.ne.s32.totalorder %s3307_s0, %s2367_s15  ;;  %p2371_p9 = scmp.lt.u32.totalorder %s2367_s15, %s3307_s0 }
  0x18   :  { %p2373_p10 = pnand %p2371_p9, %p2368_p8 }
  0x1a   :  { %2376 = shalt.err (!%p2373_p10)
}
  0x1b   :  { %s2377_s20 = scalar_lea.vmem %s2516_s24, 256  ;;  %p2382_p12 = scmp.lt.s32.totalorder %s2516_s24, %s2516_s24 }
  0x1c   :  { %p2378_p11 = scmp.ne.s32.totalorder %s2516_s24, %s2377_s20  ;;  %p2383_p13 = scmp.lt.s32.totalorder %s2377_s20, %s2377_s20 }
  0x1e   :  { %p2384_p0 = por %p2383_p13, %p2382_p12 }
  0x20   :  { %p2385_p1 = pnand %p2384_p0, %p2378_p11 }
  0x22   :  { %2388 = shalt.err (!%p2385_p1)
}
  0x23   :  { %26 = dma.hbm_to_vmem [thread:$0]  %s3307_s0, 256, %s2516_s24, [#allocation3], %s2465_s9, %s2465_s9, %s2466_s10  }
  0x24   :  { %s2467_s22 = smov [#allocation7]   ;;  %s2389_s27 = scalar_lea.hbm %s3309_s2, 1536 }
  0x25   :  { %s44_s23 = sshll.u32 %s2467_s22, 4  ;;  %p2390_p2 = scmp.ne.s32.totalorder %s3309_s2, %s2389_s27  ;;  %s45_s23 = int_to_ptr.vmem [resolvable:$true] %s44_s23 }
  0x26   :  { %p2393_p3 = scmp.lt.u32.totalorder %s2389_s27, %s3309_s2 }
  0x28   :  { %p2395_p4 = pnand %p2393_p3, %p2390_p2 }
  0x2a   :  { %2398 = shalt.err (!%p2395_p4)
}
  0x2b   :  { %s2399_s8 = scalar_lea.vmem %s45_s23, 1536  ;;  %p2404_p6 = scmp.lt.s32.totalorder %s45_s23, %s45_s23 }
  0x2c   :  { %p2400_p5 = scmp.ne.s32.totalorder %s45_s23, %s2399_s8  ;;  %p2405_p7 = scmp.lt.s32.totalorder %s2399_s8, %s2399_s8 }
  0x2e   :  { %p2406_p8 = por %p2405_p7, %p2404_p6 }
  0x30   :  { %p2407_p9 = pnand %p2406_p8, %p2400_p5 }
  0x32   :  { %2410 = shalt.err (!%p2407_p9)
}
  0x33   :  { %s2468_s0 = smov 384   ;;  %s2469_s24 = smov 24  }
  0x34   :  { %50 = dma.hbm_to_vmem [thread:$0]  %s3309_s2, 1536, %s45_s23, [#allocation6], %s2468_s0, %s2468_s0, %s2469_s24  }
  0x35   :  { %s2470_s11 = smov [#allocation8]   ;;  %s2411_s15 = scalar_lea.hbm %s3311_s4, 18432 }
  0x36   :  { %s58_s12 = sshll.u32 %s2470_s11, 4  ;;  %p2412_p10 = scmp.ne.s32.totalorder %s3311_s4, %s2411_s15  ;;  %s59_s12 = int_to_ptr.vmem [resolvable:$true] %s58_s12 }
  0x37   :  { %p2415_p11 = scmp.lt.u32.totalorder %s2411_s15, %s3311_s4 }
  0x39   :  { %p2417_p12 = pnand %p2415_p11, %p2412_p10 }
  0x3b   :  { %2420 = shalt.err (!%p2417_p12)
}
  0x3c   :  { %s2421_s20 = scalar_lea.vmem %s59_s12, 18432  ;;  %p2426_p0 = scmp.lt.s32.totalorder %s59_s12, %s59_s12 }
  0x3d   :  { %p2422_p13 = scmp.ne.s32.totalorder %s59_s12, %s2421_s20  ;;  %p2427_p1 = scmp.lt.s32.totalorder %s2421_s20, %s2421_s20 }
  0x3f   :  { %p2428_p2 = por %p2427_p1, %p2426_p0 }
  0x41   :  { %p2429_p3 = pnand %p2428_p2, %p2422_p13 }
  0x43   :  { %2432 = shalt.err (!%p2429_p3)
}
  0x44   :  { %64 = dma.hbm_to_vmem [thread:$0]  %s3311_s4, 18432, %s59_s12, [#allocation9], %s2468_s0, %s2468_s0, %s2469_s24  }
  0x45   :  { %2455 = dma.done.wait [#allocation3], 256  }
  0x46   :  { %2456 = vsyncadd [#allocation3], 4294967040 }
  0x47   :  { %2457 = dma.done.wait [#allocation6], 1792  }
  0x48   :  { %2458 = vsyncadd [#allocation6], 4294965504 }
  0x49   :  { %2459 = dma.done.wait [#allocation9], 18432  }
  0x4a   :  { %2460 = vsyncadd [#allocation9], 4294948864  ;;  %vm81_vm0 = vcmask 261120   ;;  %v79_v0 = vld [vmem:[#allocation2] sm:$0xff]  ;;  %v80_v1 = vld [vmem:[#allocation2 + $0x8] sm:$0xff]  ;;  %v3314_v21 = vmov 0.0  }
  0x4b   :  { %v82_v2 = vsel %vm81_vm0, %v79_v0, 0.0  ;;  %v85_v3 = vsel %vm81_vm0, %v80_v1, 0.0  ;;  %v124_v14 = vld [vmem:[#allocation7 + $0x8] sm:$0xff]  ;;  %v127_v15 = vld [vmem:[#allocation7 + $0x20] sm:$0xff]  ;;  %v126_v18 = vld [vmem:[#allocation7 + $0x18] sm:$0xff]  ;;  %222 = vmatprep.mubr.f32.mxu0 %v3314_v21  ;;  %v2472_v34 = vmov 1  }
  0x4c   :  { %83 = vadd.xlane.f32.xlu0 %v82_v2  ;;  %v123_v16 = vld [vmem:[#allocation7] sm:$0xff]  ;;  %v1951_v17 = vpack.c.bf16 %v127_v15, %v124_v14  ;;  %v130_v19 = vld [vmem:[#allocation7 + $0x38] sm:$0xff]  ;;  %v133_v20 = vld [vmem:[#allocation7 + $0x50] sm:$0xff]  ;;  %2322 = vset.pattern.permute.xlu1 %v2472_v34  ;;  %v2473_v37 = vmov 0   ;;  %v2474_v39 = vmov 2   ;;  %v2475_v41 = vmov 3  }
  0x4d   :  { %v1953_v22 = vpack.c.bf16 %v126_v18, %v123_v16  ;;  %v1955_v23 = vpack.c.bf16 %v133_v20, %v130_v19  ;;  %v125_v24 = vld [vmem:[#allocation7 + $0x10] sm:$0xff]  ;;  %v128_v25 = vld [vmem:[#allocation7 + $0x28] sm:$0xff]  ;;  %v131_v30 = vld [vmem:[#allocation7 + $0x40] sm:$0xff]  ;;  %2321 = vset.pattern.permute.xlu0 %v2473_v37  ;;  %v2476_v42 = vmov 4   ;;  %v2477_v43 = vmov 7  }
  0x4e   :  { %v129_v26 = vld [vmem:[#allocation7 + $0x30] sm:$0xff]  ;;  %1952 = vmatprep.subr.bf16.mxu0 %v1951_v17  ;;  %v1959_v27 = vpack.c.bf16 %v128_v25, %v125_v24  ;;  %v132_v28 = vld [vmem:[#allocation7 + $0x48] sm:$0xff]  ;;  %v134_v31 = vld [vmem:[#allocation7 + $0x58] sm:$0xff]  ;;  %v2478_v44 = vmov 5   ;;  %v2479_v45 = vmov 6  }
  0x4f   :  { %1954 = vmatpush1.bf16.msra.mxu0 %v1953_v22  ;;  %v1957_v29 = vpack.c.bf16 %v132_v28, %v129_v26  ;;  %v1963_v32 = vpack.c.bf16 %v134_v31, %v131_v30  ;;  %v471_v33 = vld [vmem:[#allocation5] sm:$0xff]  ;;  %v311_v35 = vld [vmem:[#allocation8 + $0x8] sm:$0xff]  ;;  %v314_v36 = vld [vmem:[#allocation8 + $0x20] sm:$0xff] }
  0x50   :  { %86 = vadd.xlane.f32.xlu0 %v85_v3  ;;  %1956 = vmatprep.subr.bf16.mxu0 %v1955_v23  ;;  %v2590_v38 = vpack.c.bf16 %v314_v36, %v311_v35  ;;  %v472_v40 = vld [vmem:[#allocation5 + $0x8] sm:$0xff]  ;;  %v360_v46 = vld [vmem:[#allocation8 + $0x190] sm:$0xff]  ;;  %v363_v47 = vld [vmem:[#allocation8 + $0x1a8] sm:$0xff] }
  0x51   :  { %1960 = vmatprep.subr.bf16.mxu1 %v1959_v27  ;;  %v2593_v48 = vpack.c.bf16 %v363_v47, %v360_v46  ;;  %v313_v2 = vld [vmem:[#allocation8 + $0x18] sm:$0xff]  ;;  %v312_v14 = vld [vmem:[#allocation8 + $0x10] sm:$0xff]  ;;  %v315_v15 = vld [vmem:[#allocation8 + $0x28] sm:$0xff] }
  0x52   :  { %1962 = vmatpush3.bf16.msra.mxu1 %v1959_v27  ;;  %v317_v3 = vld [vmem:[#allocation8 + $0x38] sm:$0xff]  ;;  %v326_v16 = vld [vmem:[#allocation8 + $0x80] sm:$0xff]  ;;  %v2607_v23 = vpack.c.bf16 %v315_v15, %v312_v14  ;;  %v332_v30 = vld [vmem:[#allocation8 + $0xb0] sm:$0xff] }
  0x53   :  { %1958 = vmatpush1.bf16.msra.mxu0 %v1957_v29  ;;  %1964 = vmatprep.subr.bf16.mxu1 %v1963_v32  ;;  %v366_v17 = vld [vmem:[#allocation8 + $0x1c0] sm:$0xff]  ;;  %v369_v18 = vld [vmem:[#allocation8 + $0x1d8] sm:$0xff]  ;;  %v372_v31 = vld [vmem:[#allocation8 + $0x1f0] sm:$0xff] }
  0x54   :  { %1968 = vmatprep.subr.bf16.mxu0 %v2590_v38  ;;  %v325_v22 = vld [vmem:[#allocation8 + $0x78] sm:$0xff]  ;;  %3387 = vst [vmem:[#allocation17_spill] sm:$0xff] %v2607_v23  ;;  %v2613_v27 = vpack.c.bf16 %v369_v18, %v366_v17  ;;  %v318_v28 = vld [vmem:[#allocation8 + $0x40] sm:$0xff]  ;;  %v331_v36 = vld [vmem:[#allocation8 + $0xa8] sm:$0xff] }
  0x55   :  { %v329_v26 = vld [vmem:[#allocation8 + $0x98] sm:$0xff]  ;;  %v334_v46 = vld [vmem:[#allocation8 + $0xc0] sm:$0xff]  ;;  %v368_v14 = vld [vmem:[#allocation8 + $0x1d0] sm:$0xff] }
  0x56   :  { %1966 = vmatpush3.bf16.msra.mxu1 %v1963_v32  ;;  %3389 = vst [vmem:[#allocation19_spill] sm:$0xff] %v2613_v27  ;;  %v321_v29 = vld [vmem:[#allocation8 + $0x58] sm:$0xff]  ;;  %v375_v32 = vld [vmem:[#allocation8 + $0x208] sm:$0xff]  ;;  %v2624_v35 = vpack.c.bf16 %v332_v30, %v329_v26  ;;  %v364_v17 = vld [vmem:[#allocation8 + $0x1b0] sm:$0xff] }
  0x57   :  { %2064 = vmatprep.subr.bf16.mxu1 %v2593_v48  ;;  %v337_v47 = vld [vmem:[#allocation8 + $0xd8] sm:$0xff]  ;;  %v367_v18 = vld [vmem:[#allocation8 + $0x1c8] sm:$0xff]  ;;  %v370_v26 = vld [vmem:[#allocation8 + $0x1e0] sm:$0xff] }
  0x58   :  { %3392 = vst [vmem:[#allocation22_spill] sm:$0xff] %v2624_v35  ;;  %v377_v30 = vld [vmem:[#allocation8 + $0x218] sm:$0xff] }
  0x66   :  { %475 = vperm.xlu0 %2321, %v471_v33  }
  0x6a   :  { %2330 = vset.pattern.permute.xlu0 %v2472_v34  ;;  %v2621_v34 = vpack.c.bf16 %v321_v29, %v318_v28  ;;  %v373_v28 = vld [vmem:[#allocation8 + $0x1f8] sm:$0xff] }
  0x6b   :  { %518 = vperm.xlu0 %2330, %v472_v40   ;;  %v2677_v29 = vpack.c.bf16 %v373_v28, %v370_v26  ;;  %v342_v26 = vld [vmem:[#allocation8 + $0x100] sm:$0xff]  ;;  %v345_v28 = vld [vmem:[#allocation8 + $0x118] sm:$0xff] }
  0x6c   :  { %3391 = vst [vmem:[#allocation21_spill] sm:$0xff] %v2621_v34 }
  0x6d   :  { %3409 = vst [vmem:[#allocation39_spill] sm:$0xff] %v2677_v29 }
  0x6f   :  { %2333 = vset.pattern.permute.xlu0 %v2476_v42 }
  0x70   :  { %650 = vperm.xlu0 %2333, %v472_v40  }
  0x74   :  { %2336 = vset.pattern.permute.xlu0 %v2477_v43 }
  0x75   :  { %782 = vperm.xlu0 %2336, %v472_v40  }
  0xd9   :  { %v84_v4 = vpop.xlane.xlu0 %83 }
  0xda   :  { %v89_v5 = vmul.f32 0.03125, %v84_v4  ;;  %v320_v4 = vld [vmem:[#allocation8 + $0x50] sm:$0xff] }
  0xdc   :  { %v2579_v6 = vsub.f32 %v79_v0, %v89_v5 }
  0xdd   :  { %v87_v7 = vpop.xlane.xlu0 %86 }
  0xde   :  { %v90_v8 = vmul.f32 0.03125, %v87_v7  ;;  %v93_v9 = vmul.f32 %v2579_v6, %v2579_v6 }
  0xe0   :  { %v2583_v10 = vsub.f32 %v80_v1, %v90_v8  ;;  %v95_v11 = vsel %vm81_vm0, %v93_v9, 0.0  ;;  %v310_v1 = vld [vmem:[#allocation8] sm:$0xff]  ;;  %v316_v8 = vld [vmem:[#allocation8 + $0x30] sm:$0xff]  ;;  %v319_v9 = vld [vmem:[#allocation8 + $0x48] sm:$0xff] }
  0xe1   :  { %96 = vadd.xlane.f32.xlu1 %v95_v11  ;;  %v2596_v7 = vpack.c.bf16 %v313_v2, %v310_v1  ;;  %v2605_v20 = vpack.c.bf16 %v319_v9, %v316_v8  ;;  %v352_v1 = vld [vmem:[#allocation8 + $0x150] sm:$0xff]  ;;  %v355_v2 = vld [vmem:[#allocation8 + $0x168] sm:$0xff]  ;;  %v358_v9 = vld [vmem:[#allocation8 + $0x180] sm:$0xff] }
  0xe2   :  { %v94_v12 = vmul.f32 %v2583_v10, %v2583_v10 }
  0xe3   :  { %3386 = vst [vmem:[#allocation16_spill] sm:$0xff] %v2605_v20 }
  0xe4   :  { %v98_v13 = vsel %vm81_vm0, %v94_v12, 0.0  ;;  %v2599_v12 = vpack.c.bf16 %v320_v4, %v317_v3  ;;  %v359_v3 = vld [vmem:[#allocation8 + $0x188] sm:$0xff]  ;;  %v362_v4 = vld [vmem:[#allocation8 + $0x1a0] sm:$0xff] }
  0xe5   :  { %99 = vadd.xlane.f32.xlu1 %v98_v13  ;;  %v323_v13 = vld [vmem:[#allocation8 + $0x68] sm:$0xff]  ;;  %v2662_v8 = vpack.c.bf16 %v362_v4, %v359_v3  ;;  %v389_v4 = vld [vmem:[#allocation8 + $0x278] sm:$0xff] }
  0xe6   :  { %3385 = vst [vmem:[#allocation15_spill] sm:$0xff] %v2599_v12  ;;  %v2611_v25 = vpack.c.bf16 %v326_v16, %v323_v13  ;;  %v365_v13 = vld [vmem:[#allocation8 + $0x1b8] sm:$0xff] }
  0xe7   :  { %3404 = vst [vmem:[#allocation34_spill] sm:$0xff] %v2662_v8  ;;  %v2668_v16 = vpack.c.bf16 %v368_v14, %v365_v13  ;;  %v393_v14 = vld [vmem:[#allocation8 + $0x298] sm:$0xff] }
  0xe8   :  { %3388 = vst [vmem:[#allocation18_spill] sm:$0xff] %v2611_v25 }
  0xe9   :  { %3406 = vst [vmem:[#allocation36_spill] sm:$0xff] %v2668_v16 }
  0xf6   :  { %514 = vperm.xlu1 %2322, %v471_v33  }
  0xfa   :  { %2323 = vset.pattern.permute.xlu1 %v2474_v39 }
  0xfb   :  { %558 = vperm.xlu1 %2323, %v471_v33  }
  0xff   :  { %2324 = vset.pattern.permute.xlu1 %v2475_v41 }
 0x100   :  { %602 = vperm.xlu1 %2324, %v471_v33  }
 0x104   :  { %2325 = vset.pattern.permute.xlu1 %v2476_v42  ;;  %v338_v42 = vld [vmem:[#allocation8 + $0xe0] sm:$0xff] }
 0x105   :  { %646 = vperm.xlu1 %2325, %v471_v33  }
 0x109   :  { %2326 = vset.pattern.permute.xlu1 %v2478_v44 }
 0x10a   :  { %690 = vperm.xlu1 %2326, %v471_v33  }
 0x10e   :  { %2327 = vset.pattern.permute.xlu1 %v2479_v45 }
 0x10f   :  { %734 = vperm.xlu1 %2327, %v471_v33  }
 0x113   :  { %2328 = vset.pattern.permute.xlu1 %v2477_v43 }
 0x114   :  { %778 = vperm.xlu1 %2328, %v471_v33  }
 0x118   :  { %2329 = vset.pattern.permute.xlu1 %v2473_v37  ;;  %v2627_v37 = vpack.c.bf16 %v375_v32, %v372_v31  ;;  %v380_v31 = vld [vmem:[#allocation8 + $0x230] sm:$0xff]  ;;  %v378_v32 = vld [vmem:[#allocation8 + $0x220] sm:$0xff] }
 0x119   :  { %480 = vperm.xlu1 %2329, %v472_v40  }
 0x11a   :  { %3393 = vst [vmem:[#allocation23_spill] sm:$0xff] %v2627_v37 }
 0x11d   :  { %2331 = vset.pattern.permute.xlu1 %v2474_v39  ;;  %v324_v39 = vld [vmem:[#allocation8 + $0x70] sm:$0xff] }
 0x11e   :  { %562 = vperm.xlu1 %2331, %v472_v40  }
 0x122   :  { %2332 = vset.pattern.permute.xlu1 %v2475_v41  ;;  %v335_v41 = vld [vmem:[#allocation8 + $0xc8] sm:$0xff] }
 0x123   :  { %606 = vperm.xlu1 %2332, %v472_v40  }
 0x127   :  { %2334 = vset.pattern.permute.xlu1 %v2478_v44 }
 0x128   :  { %694 = vperm.xlu1 %2334, %v472_v40  }
 0x12c   :  { %2335 = vset.pattern.permute.xlu1 %v2479_v45  ;;  %v2636_v45 = vpack.c.bf16 %v338_v42, %v335_v41 }
 0x12d   :  { %738 = vperm.xlu1 %2335, %v472_v40   ;;  %v327_v40 = vld [vmem:[#allocation8 + $0x88] sm:$0xff] }
 0x12e   :  { %v2633_v44 = vpack.c.bf16 %v327_v40, %v324_v39  ;;  %3396 = vst [vmem:[#allocation26_spill] sm:$0xff] %v2636_v45  ;;  %v376_v39 = vld [vmem:[#allocation8 + $0x210] sm:$0xff]  ;;  %v379_v40 = vld [vmem:[#allocation8 + $0x228] sm:$0xff] }
 0x12f   :  { %v2685_v42 = vpack.c.bf16 %v379_v40, %v376_v39  ;;  %v399_v40 = vld [vmem:[#allocation8 + $0x2c8] sm:$0xff] }
 0x130   :  { %3395 = vst [vmem:[#allocation25_spill] sm:$0xff] %v2633_v44 }
 0x131   :  { %3412 = vst [vmem:[#allocation42_spill] sm:$0xff] %v2685_v42 }
 0x16e   :  { %v97_v49 = vpop.xlane.xlu1 %96 }
 0x16f   :  { %v101_v50 = vmul.f32 0.032258064, %v97_v49  ;;  %v341_v49 = vld [vmem:[#allocation8 + $0xf8] sm:$0xff] }
 0x171   :  { %2337 = vrsqrt.f32 %v101_v50  ;;  %vm105_vm1 = vcmp.eq.f32.partialorder %v101_v50, inf  ;;  %v108_v55 = vand.u32 2147483648, %v101_v50  ;;  %vm107_vm2 = vcmp.eq.f32.partialorder %v101_v50, 0.0 }
 0x172   :  { %v100_v51 = vpop.xlane.xlu1 %99 }
 0x173   :  { %v102_v52 = vmul.f32 0.032258064, %v100_v51  ;;  %v2640_v51 = vpack.c.bf16 %v337_v47, %v334_v46  ;;  %v330_v46 = vld [vmem:[#allocation8 + $0xa0] sm:$0xff]  ;;  %v333_v47 = vld [vmem:[#allocation8 + $0xb8] sm:$0xff] }
 0x175   :  { %2339 = vrsqrt.f32 %v102_v52  ;;  %vm112_vm3 = vcmp.eq.f32.partialorder %v102_v52, inf  ;;  %v115_v58 = vand.u32 2147483648, %v102_v52  ;;  %vm114_vm4 = vcmp.eq.f32.partialorder %v102_v52, 0.0  ;;  %3397 = vst [vmem:[#allocation27_spill] sm:$0xff] %v2640_v51 }
 0x17b   :  { %v2338_v53 = vpop.eup %2337 }
 0x17c   :  { %v104_v54 = vmul.f32 %v2338_v53, %v101_v50  ;;  %v340_v53 = vld [vmem:[#allocation8 + $0xf0] sm:$0xff] }
 0x17e   :  { %v106_v56 = vsel %vm105_vm1, %v101_v50, %v104_v54  ;;  %v344_v50 = vld [vmem:[#allocation8 + $0x110] sm:$0xff]  ;;  %v343_v54 = vld [vmem:[#allocation8 + $0x108] sm:$0xff] }
 0x17f   :  { %v2340_v57 = vpop.eup %2339  ;;  %v109_v59 = vsel %vm107_vm2, %v108_v55, %v106_v56  ;;  %v347_v55 = vld [vmem:[#allocation8 + $0x128] sm:$0xff]  ;;  %v350_v56 = vld [vmem:[#allocation8 + $0x140] sm:$0xff] }
 0x180   :  { %v111_v60 = vmul.f32 %v2340_v57, %v102_v52  ;;  %v117_v61 = vadd.f32 1e-06, %v109_v59  ;;  %v2647_v57 = vpack.c.bf16 %v343_v54, %v340_v53  ;;  %v346_v59 = vld [vmem:[#allocation8 + $0x120] sm:$0xff]  ;;  %v384_v54 = vld [vmem:[#allocation8 + $0x250] sm:$0xff] }
 0x181   :  { %v386_v53 = vld [vmem:[#allocation8 + $0x260] sm:$0xff] }
 0x182   :  { %v113_v62 = vsel %vm112_vm3, %v102_v52, %v111_v60  ;;  %2341 = vrcp.f32 %v117_v61  ;;  %v2644_v52 = vpack.c.bf16 %v344_v50, %v341_v49  ;;  %3399 = vst [vmem:[#allocation29_spill] sm:$0xff] %v2647_v57  ;;  %v349_v60 = vld [vmem:[#allocation8 + $0x138] sm:$0xff]  ;;  %v2688_v49 = vpack.c.bf16 %v333_v47, %v330_v46  ;;  %v383_v50 = vld [vmem:[#allocation8 + $0x248] sm:$0xff]  ;;  %v394_v46 = vld [vmem:[#allocation8 + $0x2a0] sm:$0xff] }
 0x183   :  { %v116_v63 = vsel %vm114_vm4, %v115_v58, %v113_v62  ;;  %v2650_v58 = vpack.c.bf16 %v350_v56, %v347_v55  ;;  %v353_v61 = vld [vmem:[#allocation8 + $0x158] sm:$0xff]  ;;  %v356_v62 = vld [vmem:[#allocation8 + $0x170] sm:$0xff]  ;;  %v2693_v55 = vpack.c.bf16 %v386_v53, %v383_v50  ;;  %v387_v56 = vld [vmem:[#allocation8 + $0x268] sm:$0xff] }
 0x184   :  { %v118_v0 = vadd.f32 1e-06, %v116_v63  ;;  %3398 = vst [vmem:[#allocation28_spill] sm:$0xff] %v2644_v52  ;;  %v2653_v63 = vpack.c.bf16 %v349_v60, %v346_v59  ;;  %3413 = vst [vmem:[#allocation43_spill] sm:$0xff] %v2688_v49  ;;  %v382_v59 = vld [vmem:[#allocation8 + $0x240] sm:$0xff]  ;;  %v385_v60 = vld [vmem:[#allocation8 + $0x258] sm:$0xff] }
 0x185   :  { %3400 = vst [vmem:[#allocation30_spill] sm:$0xff] %v2650_v58  ;;  %3414 = vst [vmem:[#allocation44_spill] sm:$0xff] %v2693_v55  ;;  %v397_v47 = vld [vmem:[#allocation8 + $0x2b8] sm:$0xff] }
 0x186   :  { %2343 = vrcp.f32 %v118_v0  ;;  %3401 = vst [vmem:[#allocation31_spill] sm:$0xff] %v2653_v63  ;;  %v2656_v0 = vpack.c.bf16 %v356_v62, %v353_v61  ;;  %v2695_v61 = vpack.c.bf16 %v387_v56, %v384_v54  ;;  %v2697_v62 = vpack.c.bf16 %v385_v60, %v382_v59  ;;  %v348_v54 = vld [vmem:[#allocation8 + $0x130] sm:$0xff]  ;;  %v351_v56 = vld [vmem:[#allocation8 + $0x148] sm:$0xff]  ;;  %v401_v60 = vld [vmem:[#allocation8 + $0x2d8] sm:$0xff] }
 0x187   :  { %v2721_v53 = vpack.c.bf16 %v397_v47, %v394_v46  ;;  %v2724_v59 = vpack.c.bf16 %v351_v56, %v348_v54  ;;  %v411_v47 = vld [vmem:[#allocation8 + $0x328] sm:$0xff]  ;;  %v2747_v56 = vpop.permute.xlu1 %514 }
 0x188   :  { %3402 = vst [vmem:[#allocation32_spill] sm:$0xff] %v2656_v0  ;;  %3415 = vst [vmem:[#allocation45_spill] sm:$0xff] %v2695_v61 }
 0x189   :  { %3416 = vst [vmem:[#allocation46_spill] sm:$0xff] %v2697_v62  ;;  %3424 = vst [vmem:[#allocation54_spill] sm:$0xff] %v2721_v53 }
 0x18a   :  { %3425 = vst [vmem:[#allocation55_spill] sm:$0xff] %v2724_v59 }
 0x18c   :  { %v2342_v5 = vpop.eup %2341 }
 0x18d   :  { %v121_v11 = vmul.f32 %v2342_v5, %v2579_v6  ;;  %v322_v6 = vld [vmem:[#allocation8 + $0x60] sm:$0xff]  ;;  %v2659_v5 = vpack.c.bf16 %v355_v2, %v352_v1  ;;  %v336_v1 = vld [vmem:[#allocation8 + $0xd0] sm:$0xff]  ;;  %v339_v2 = vld [vmem:[#allocation8 + $0xe8] sm:$0xff] }
 0x18e   :  { %v2618_v33 = vpack.c.bf16 %v325_v22, %v322_v6  ;;  %v374_v6 = vld [vmem:[#allocation8 + $0x200] sm:$0xff]  ;;  %v2671_v22 = vpack.c.bf16 %v367_v18, %v364_v17  ;;  %v2700_v3 = vpack.c.bf16 %v339_v2, %v336_v1  ;;  %v388_v17 = vld [vmem:[#allocation8 + $0x270] sm:$0xff]  ;;  %v391_v18 = vld [vmem:[#allocation8 + $0x288] sm:$0xff] }
 0x18f   :  { %1748 = vmatmul.mubr.msk.f32.vlgmr.msra.gmra.mrb[0].mxu0 %vm81_vm0, %v121_v11  ;;  %1878 = vmatprep.mubr.msk.f32.mxu1 %vm81_vm0, %v121_v11  ;;  %3403 = vst [vmem:[#allocation33_spill] sm:$0xff] %v2659_v5  ;;  %v361_v11 = vld [vmem:[#allocation8 + $0x198] sm:$0xff]  ;;  %v404_v1 = vld [vmem:[#allocation8 + $0x2f0] sm:$0xff]  ;;  %v402_v2 = vld [vmem:[#allocation8 + $0x2e0] sm:$0xff] }
 0x190   :  { %v2344_v19 = vpop.eup %2343  ;;  %228 = vmatprep.mubr.f32.mxu0 %v3314_v21  ;;  %1970 = vmatpush1.bf16.msra.mxu0 %v2596_v7  ;;  %3390 = vst [vmem:[#allocation20_spill] sm:$0xff] %v2618_v33  ;;  %v2665_v15 = vpack.c.bf16 %v361_v11, %v358_v9  ;;  %3407 = vst [vmem:[#allocation37_spill] sm:$0xff] %v2671_v22  ;;  %v392_v9 = vld [vmem:[#allocation8 + $0x290] sm:$0xff]  ;;  %v390_v11 = vld [vmem:[#allocation8 + $0x280] sm:$0xff] }
 0x191   :  { %v122_v24 = vmul.f32 %v2344_v19, %v2583_v10  ;;  %1972 = vmatprep.subr.bf16.mxu0 %v2599_v12  ;;  %v328_v10 = vld [vmem:[#allocation8 + $0x90] sm:$0xff]  ;;  %v371_v19 = vld [vmem:[#allocation8 + $0x1e8] sm:$0xff]  ;;  %3417 = vst [vmem:[#allocation47_spill] sm:$0xff] %v2700_v3  ;;  %v2705_v13 = vpack.c.bf16 %v392_v9, %v389_v4  ;;  %v2729_v4 = vpack.c.bf16 %v404_v1, %v401_v60  ;;  %v405_v9 = vld [vmem:[#allocation8 + $0x2f8] sm:$0xff]  ;;  %v2749_v60 = vpop.permute.xlu1 %558 }
 0x192   :  { %v2630_v43 = vpack.c.bf16 %v331_v36, %v328_v10  ;;  %3405 = vst [vmem:[#allocation35_spill] sm:$0xff] %v2665_v15  ;;  %v2681_v10 = vpack.c.bf16 %v380_v31, %v377_v30  ;;  %v381_v36 = vld [vmem:[#allocation8 + $0x238] sm:$0xff]  ;;  %v2712_v30 = vpack.c.bf16 %v345_v28, %v342_v26  ;;  %v395_v31 = vld [vmem:[#allocation8 + $0x2a8] sm:$0xff]  ;;  %v354_v26 = vld [vmem:[#allocation8 + $0x160] sm:$0xff] }
 0x193   :  { %1749 = vmatmul.mubr.msk.f32.gmra.mrb[2].mxu0 %vm81_vm0, %v122_v24  ;;  %1879 = vmatmul.mubr.msk.f32.vlgmr.msra.gmra.mrb[0].mxu1 %vm81_vm0, %v122_v24  ;;  %v2674_v24 = vpack.c.bf16 %v374_v6, %v371_v19  ;;  %v2683_v41 = vpack.c.bf16 %v381_v36, %v378_v32  ;;  %3418 = vst [vmem:[#allocation48_spill] sm:$0xff] %v2705_v13  ;;  %v398_v32 = vld [vmem:[#allocation8 + $0x2c0] sm:$0xff]  ;;  %v396_v36 = vld [vmem:[#allocation8 + $0x2b0] sm:$0xff]  ;;  %3426 = vst [vmem:[#allocation56_spill] sm:$0xff] %v2729_v4 }
 0x194   :  { %1974 = vmatpush1.bf16.msra.mxu0 %v2605_v20  ;;  %2066 = vmatpush3.bf16.msra.mxu1 %v2607_v23  ;;  %3394 = vst [vmem:[#allocation24_spill] sm:$0xff] %v2630_v43  ;;  %3410 = vst [vmem:[#allocation40_spill] sm:$0xff] %v2681_v10  ;;  %v2707_v19 = vpack.c.bf16 %v393_v14, %v390_v11  ;;  %v2709_v6 = vpack.c.bf16 %v391_v18, %v388_v17  ;;  %v400_v11 = vld [vmem:[#allocation8 + $0x2d0] sm:$0xff]  ;;  %v403_v14 = vld [vmem:[#allocation8 + $0x2e8] sm:$0xff] }
 0x195   :  { %1976 = vmatprep.subr.bf16.mxu0 %v2611_v25  ;;  %2068 = vmatprep.subr.bf16.mxu1 %v2613_v27  ;;  %3408 = vst [vmem:[#allocation38_spill] sm:$0xff] %v2674_v24  ;;  %3411 = vst [vmem:[#allocation41_spill] sm:$0xff] %v2683_v41  ;;  %v2717_v39 = vpack.c.bf16 %v398_v32, %v395_v31  ;;  %v2719_v50 = vpack.c.bf16 %v399_v40, %v396_v36  ;;  %v357_v28 = vld [vmem:[#allocation8 + $0x178] sm:$0xff]  ;;  %v407_v32 = vld [vmem:[#allocation8 + $0x308] sm:$0xff]  ;;  %v2751_v1 = vpop.permute.xlu1 %602 }
 0x196   :  { %3419 = vst [vmem:[#allocation49_spill] sm:$0xff] %v2707_v19  ;;  %3420 = vst [vmem:[#allocation50_spill] sm:$0xff] %v2709_v6  ;;  %v2731_v17 = vpack.c.bf16 %v405_v9, %v402_v2  ;;  %v2733_v18 = vpack.c.bf16 %v403_v14, %v400_v11  ;;  %v2736_v31 = vpack.c.bf16 %v357_v28, %v354_v26  ;;  %v410_v36 = vld [vmem:[#allocation8 + $0x320] sm:$0xff]  ;;  %v408_v40 = vld [vmem:[#allocation8 + $0x310] sm:$0xff]  ;;  %v137_v11 = vlaneseq }
 0x197   :  { %3421 = vst [vmem:[#allocation51_spill] sm:$0xff] %v2712_v30  ;;  %3422 = vst [vmem:[#allocation52_spill] sm:$0xff] %v2717_v39  ;;  %v2741_v46 = vpack.c.bf16 %v410_v36, %v407_v32  ;;  %v2743_v54 = vpack.c.bf16 %v411_v47, %v408_v40  ;;  %v135_v32 = vld [vmem:[%s3310_s3] sm:$0x7]  ;;  %v424_v25 = vld [vmem:[#allocation8 + $0x390] sm:$0xff] }
 0x198   :  { %1978 = vmatpush1.bf16.msra.mxu0 %v2618_v33  ;;  %2070 = vmatpush3.bf16.msra.mxu1 %v2621_v34  ;;  %3423 = vst [vmem:[#allocation53_spill] sm:$0xff] %v2719_v50  ;;  %3427 = vst [vmem:[#allocation57_spill] sm:$0xff] %v2731_v17  ;;  %v138_v14 = vshrl.u32 %v137_v11, 7  ;;  %v426_v33 = vld [vmem:[#allocation8 + $0x3a0] sm:$0xff] }
 0x199   :  { %1980 = vmatprep.subr.bf16.mxu0 %v2624_v35  ;;  %2072 = vmatprep.subr.bf16.mxu1 %v2627_v37  ;;  %3428 = vst [vmem:[#allocation58_spill] sm:$0xff] %v2733_v18  ;;  %3429 = vst [vmem:[#allocation59_spill] sm:$0xff] %v2736_v31  ;;  %v2753_v2 = vpop.permute.xlu1 %646 }
 0x19a   :  { %3430 = vst [vmem:[#allocation60_spill] sm:$0xff] %v2741_v46  ;;  %v2759_v28 = vsub.s32 1, %v138_v14  ;;  %v2766_v40 = vsub.s32 0, %v138_v14 }
 0x19c   :  { %1982 = vmatpush1.bf16.msra.mxu0 %v2630_v43  ;;  %2074 = vmatpush3.bf16.msra.mxu1 %v2633_v44  ;;  %v2769_v47 = vrot.slane %v135_v32, %v2759_v28  ;;  %v2803_v43 = vsub.s32 7, %v138_v14 }
 0x19d   :  { %1984 = vmatprep.subr.bf16.mxu0 %v2636_v45  ;;  %2076 = vmatprep.subr.bf16.mxu1 %v2683_v41  ;;  %v2755_v9 = vpop.permute.xlu1 %690  ;;  %v428_v45 = vld [vmem:[#allocation8 + $0x3b0] sm:$0xff] }
 0x1a0   :  { %1986 = vmatpush1.bf16.msra.mxu0 %v2640_v51  ;;  %2078 = vmatpush3.bf16.msra.mxu1 %v2688_v49  ;;  %v425_v49 = vld [vmem:[#allocation8 + $0x398] sm:$0xff] }
 0x1a1   :  { %1988 = vmatprep.subr.bf16.mxu0 %v2644_v52  ;;  %2080 = vmatprep.subr.bf16.mxu1 %v2695_v61  ;;  %v2757_v26 = vpop.permute.xlu1 %734 }
 0x1a4   :  { %1990 = vmatpush1.bf16.msra.mxu0 %v2647_v57  ;;  %2082 = vmatpush3.bf16.msra.mxu1 %v2700_v3  ;;  %v423_v57 = vld [vmem:[#allocation8 + $0x388] sm:$0xff] }
 0x1a5   :  { %1992 = vmatprep.subr.bf16.mxu0 %v2650_v58  ;;  %2084 = vmatprep.subr.bf16.mxu1 %v2707_v19  ;;  %v2764_v36 = vpop.permute.xlu1 %778  ;;  %v420_v58 = vld [vmem:[#allocation8 + $0x370] sm:$0xff]  ;;  %v418_v19 = vld [vmem:[#allocation8 + $0x360] sm:$0xff] }
 0x1a6   :  { %v2819_v34 = vpack.c.bf16 %v423_v57, %v420_v58 }
 0x1a8   :  { %1994 = vmatpush1.bf16.msra.mxu0 %v2653_v63  ;;  %2086 = vmatpush3.bf16.msra.mxu1 %v2712_v30  ;;  %v2792_v63 = vsub.s32 5, %v138_v14  ;;  %v2796_v30 = vsub.s32 6, %v138_v14  ;;  %3431 = vst [vmem:[#allocation61_spill] sm:$0xff] %v2819_v34 }
 0x1a9   :  { %1996 = vmatprep.subr.bf16.mxu0 %v2656_v0  ;;  %2088 = vmatprep.subr.bf16.mxu1 %v2719_v50  ;;  %v2794_v50 = vsub.s32 4, %v138_v14 }
 0x1ac   :  { %1998 = vmatpush1.bf16.msra.mxu0 %v2659_v5  ;;  %2090 = vmatpush3.bf16.msra.mxu1 %v2724_v59  ;;  %v419_v5 = vld [vmem:[#allocation8 + $0x368] sm:$0xff]  ;;  %v2787_v59 = vpop.permute.xlu0 %475 }
 0x1ad   :  { %2000 = vmatprep.subr.bf16.mxu0 %v2662_v8  ;;  %2092 = vmatprep.subr.bf16.mxu1 %v2731_v17  ;;  %v415_v8 = vld [vmem:[#allocation8 + $0x348] sm:$0xff]  ;;  %v422_v17 = vld [vmem:[#allocation8 + $0x380] sm:$0xff] }
 0x1ae   :  { %v2817_v37 = vpack.c.bf16 %v422_v17, %v419_v5 }
 0x1b0   :  { %2002 = vmatpush1.bf16.msra.mxu0 %v2665_v15  ;;  %2094 = vmatpush3.bf16.msra.mxu1 %v2736_v31 }
 0x1b1   :  { %2004 = vmatprep.subr.bf16.mxu0 %v2668_v16  ;;  %2096 = vmatprep.subr.bf16.mxu1 %v2743_v54  ;;  %v2785_v16 = vsub.s32 3, %v138_v14 }
 0x1b4   :  { %2006 = vmatpush1.bf16.msra.mxu0 %v2671_v22  ;;  %v417_v22 = vld [vmem:[#allocation8 + $0x358] sm:$0xff] }
 0x1b5   :  { %2008 = vmatprep.subr.bf16.mxu0 %v2674_v24  ;;  %v414_v24 = vld [vmem:[#allocation8 + $0x340] sm:$0xff] }
 0x1b6   :  { %v2809_v35 = vpack.c.bf16 %v417_v22, %v414_v24 }
 0x1b8   :  { %2010 = vmatpush1.bf16.msra.mxu0 %v2677_v29 }
 0x1b9   :  { %2012 = vmatprep.subr.bf16.mxu0 %v2681_v10 }
 0x1bc   :  { %2014 = vmatpush1.bf16.msra.mxu0 %v2685_v42 }
 0x1bd   :  { %2016 = vmatprep.subr.bf16.mxu0 %v2693_v55 }
 0x1c0   :  { %2018 = vmatpush1.bf16.msra.mxu0 %v2697_v62  ;;  %v416_v62 = vld [vmem:[#allocation8 + $0x350] sm:$0xff] }
 0x1c1   :  { %2020 = vmatprep.subr.bf16.mxu0 %v2705_v13  ;;  %v413_v13 = vld [vmem:[#allocation8 + $0x338] sm:$0xff] }
 0x1c2   :  { %v2807_v44 = vpack.c.bf16 %v416_v62, %v413_v13  ;;  %v2827_v13 = vpack.c.bf16 %v428_v45, %v425_v49 }
 0x1c4   :  { %2022 = vmatpush1.bf16.msra.mxu0 %v2709_v6  ;;  %v409_v6 = vld [vmem:[#allocation8 + $0x318] sm:$0xff]  ;;  %3433 = vst [vmem:[#allocation63_spill] sm:$0xff] %v2827_v13 }
 0x1c5   :  { %2024 = vmatprep.subr.bf16.mxu0 %v2717_v39  ;;  %v406_v39 = vld [vmem:[#allocation8 + $0x300] sm:$0xff] }
 0x1c6   :  { %v2805_v41 = vpack.c.bf16 %v409_v6, %v406_v39  ;;  %v427_v6 = vld [vmem:[#allocation8 + $0x3a8] sm:$0xff] }
 0x1c8   :  { %2026 = vmatpush1.bf16.msra.mxu0 %v2721_v53  ;;  %v2779_v53 = vsub.s32 2, %v138_v14  ;;  %v429_v14 = vld [vmem:[#allocation8 + $0x3b8] sm:$0xff] }
 0x1c9   :  { %2028 = vmatprep.subr.bf16.mxu0 %v2729_v4  ;;  %v2777_v4 = vpop.permute.xlu1 %480 }
 0x1ca   :  { %v148_v3 = vrot.slane %v135_v32, %v2779_v53 }
 0x1cc   :  { %2030 = vmatpush1.bf16.msra.mxu0 %v2733_v18  ;;  %v2772_v18 = vrot.slane %v135_v32, %v2766_v40 }
 0x1cd   :  { %2032 = vmatprep.subr.bf16.mxu0 %v2741_v46  ;;  %v2811_v32 = vpop.permute.xlu1 %562 }
 0x262   :  { %v224_v21 = vpop.f32.mrb[0].mxu0 }
 0x263   :  { %v226_v46 = vpop.f32.mrb[1].mxu0  ;;  %v2790_v0 = vadd.f32 %v224_v21, %v2772_v18  ;;  %v421_v21 = vld [vmem:[#allocation8 + $0x378] sm:$0xff] }
 0x264   :  { %v2775_v11 = vadd.f32 %v226_v46, %v2769_v47  ;;  %v412_v46 = vld [vmem:[#allocation8 + $0x330] sm:$0xff]  ;;  %v2825_v24 = vpack.c.bf16 %v421_v21, %v418_v19  ;;  %v2840_v19 = vpack.c.bf16 %v427_v6, %v424_v25  ;;  %v2855_v21 = vpop.permute.xlu1 %606 }
 0x265   :  { %v486_v62 = vrot.slane %v2790_v0, %v2766_v40  ;;  %v524_v22 = vrot.slane %v2790_v0, %v2759_v28  ;;  %v568_v58 = vrot.slane %v2790_v0, %v2779_v53  ;;  %v612_v17 = vrot.slane %v2790_v0, %v2785_v16 }
 0x266   :  { %v230_v55 = vpop.f32.mrb[2].mxu0  ;;  %v1880_v42 = vpop.f32.mrb[0].mxu1  ;;  %v490_v10 = vrot.slane %v2775_v11, %v2766_v40  ;;  %v528_v29 = vrot.slane %v2775_v11, %v2759_v28  ;;  %v572_v61 = vrot.slane %v2775_v11, %v2779_v53  ;;  %3432 = vst [vmem:[#allocation62_spill] sm:$0xff] %v2825_v24  ;;  %v660_v57 = vrot.slane %v2775_v11, %v2794_v50 }
 0x267   :  { %v232_v15 = vpop.f32.mrb[3].mxu0  ;;  %v301_v31 = vpop.f32.mrb[1].mxu1  ;;  %v2829_v39 = vadd.f32 %v1880_v42, %v148_v3  ;;  %v2849_v49 = vadd.f32 %v230_v55, %v2772_v18  ;;  %v545_v25 = vmul.f32 %v524_v22, %v2747_v56  ;;  %v589_v6 = vmul.f32 %v568_v58, %v2749_v60 }
 0x268   :  { %v508_v52 = vmul.f32 %v490_v10, %v2787_v59  ;;  %v546_v51 = vmul.f32 %v528_v29, %v2747_v56  ;;  %v616_v29 = vrot.slane %v2775_v11, %v2785_v16  ;;  %v2815_v10 = vpack.c.bf16 %v415_v8, %v412_v46 }
 0x269   :  { %v590_v5 = vmul.f32 %v572_v61, %v2749_v60  ;;  %v2838_v46 = vpack.c.bf16 %v429_v14, %v426_v33  ;;  %v2843_v45 = vadd.f32 %v232_v15, %v2769_v47  ;;  %v748_v61 = vrot.slane %v2775_v11, %v2796_v30 }
 0x26a   :  { %v552_v8 = vadd.f32 %v546_v51, %v508_v52  ;;  %v634_v51 = vmul.f32 %v616_v29, %v2751_v1  ;;  %v704_v52 = vrot.slane %v2775_v11, %v2792_v63  ;;  %v507_v33 = vmul.f32 %v486_v62, %v2787_v59 }
 0x26b   :  { %v506_v15 = vrot.slane %v2829_v39, %v2766_v40  ;;  %v2859_v47 = vadd.f32 %v301_v31, %v148_v3  ;;  %v678_v14 = vmul.f32 %v660_v57, %v2753_v2  ;;  %v656_v62 = vrot.slane %v2790_v0, %v2794_v50 }
 0x26c   :  { %v596_v42 = vadd.f32 %v590_v5, %v552_v8  ;;  %v551_v18 = vadd.f32 %v545_v25, %v507_v33  ;;  %v722_v8 = vmul.f32 %v704_v52, %v2755_v9  ;;  %v792_v5 = vrot.slane %v2775_v11, %v2803_v43 }
 0x26d   :  { %v502_v3 = vrot.slane %v2843_v45, %v2766_v40  ;;  %v766_v31 = vmul.f32 %v748_v61, %v2757_v26  ;;  %v700_v58 = vrot.slane %v2790_v0, %v2792_v63  ;;  %v677_v25 = vmul.f32 %v656_v62, %v2753_v2 }
 0x26e   :  { %v640_v29 = vadd.f32 %v634_v51, %v596_v42  ;;  %v595_v57 = vadd.f32 %v589_v6, %v551_v18  ;;  %v633_v42 = vmul.f32 %v612_v17, %v2751_v1  ;;  %v2876_v51 = vpop.permute.xlu0 %518  ;;  %v744_v52 = vrot.slane %v2790_v0, %v2796_v30  ;;  %v2888_v18 = vpop.permute.xlu1 %694 }
 0x26f   :  { %v788_v11 = vrot.slane %v2790_v0, %v2803_v43  ;;  %v511_v61 = vmul.f32 %v502_v3, %v2777_v4  ;;  %v540_v17 = vrot.slane %v2843_v45, %v2759_v28  ;;  %v668_v62 = vrot.slane %v2849_v49, %v2794_v50 }
 0x270   :  { %v684_v22 = vadd.f32 %v678_v14, %v640_v29  ;;  %v639_v29 = vadd.f32 %v633_v42, %v595_v57  ;;  %v584_v14 = vrot.slane %v2843_v45, %v2779_v53  ;;  %v810_v0 = vmul.f32 %v792_v5, %v2764_v36 }
 0x271   :  { %v721_v3 = vmul.f32 %v700_v58, %v2755_v9  ;;  %v549_v57 = vmul.f32 %v540_v17, %v2876_v51  ;;  %v628_v42 = vrot.slane %v2843_v45, %v2785_v16  ;;  %v765_v20 = vmul.f32 %v744_v52, %v2757_v26 }
 0x272   :  { %v728_v33 = vadd.f32 %v722_v8, %v684_v22  ;;  %v683_v8 = vadd.f32 %v677_v25, %v639_v29  ;;  %v809_v27 = vmul.f32 %v788_v11, %v2764_v36  ;;  %v672_v6 = vrot.slane %v2843_v45, %v2794_v50 }
 0x273   :  { %v593_v5 = vmul.f32 %v584_v14, %v2811_v32  ;;  %v716_v58 = vrot.slane %v2843_v45, %v2792_v63  ;;  %v498_v25 = vrot.slane %v2849_v49, %v2766_v40  ;;  %v536_v52 = vrot.slane %v2849_v49, %v2759_v28 }
 0x274   :  { %v772_v22 = vadd.f32 %v766_v31, %v728_v33  ;;  %v727_v23 = vadd.f32 %v721_v3, %v683_v8  ;;  %v555_v31 = vadd.f32 %v549_v57, %v511_v61  ;;  %v2906_v33 = vpop.permute.xlu0 %650  ;;  %v580_v11 = vrot.slane %v2849_v49, %v2779_v53 }
 0x275   :  { %v637_v17 = vmul.f32 %v628_v42, %v2855_v21  ;;  %v760_v14 = vrot.slane %v2843_v45, %v2796_v30  ;;  %v548_v8 = vmul.f32 %v536_v52, %v2876_v51  ;;  %v624_v3 = vrot.slane %v2849_v49, %v2785_v16 }
 0x276   :  { %v816_v55 = vadd.f32 %v810_v0, %v772_v22  ;;  %v771_v29 = vadd.f32 %v765_v20, %v727_v23  ;;  %v599_v61 = vadd.f32 %v593_v5, %v555_v31  ;;  %v512_v22 = vmul.f32 %v506_v15, %v2777_v4  ;;  %v2918_v0 = vpop.permute.xlu1 %738 }
 0x277   :  { %v681_v20 = vmul.f32 %v672_v6, %v2906_v33  ;;  %v725_v23 = vmul.f32 %v716_v58, %v2888_v18  ;;  %v804_v42 = vrot.slane %v2843_v45, %v2803_v43  ;;  %v592_v15 = vmul.f32 %v580_v11, %v2811_v32 }
 0x278   :  { %885 = vmatprep.mubr.f32.mxu0 %v816_v55  ;;  %1039 = vmatprep.mubr.f32.mxu1 %v816_v55  ;;  %v510_v55 = vmul.f32 %v498_v25, %v2777_v4  ;;  %v815_v57 = vadd.f32 %v809_v27, %v771_v29  ;;  %v643_v12 = vadd.f32 %v637_v17, %v599_v61  ;;  %v2934_v6 = vpop.permute.xlu0 %782 }
 0x279   :  { %v494_v5 = vrot.slane %v2859_v47, %v2766_v40  ;;  %v769_v52 = vmul.f32 %v760_v14, %v2918_v0  ;;  %v712_v27 = vrot.slane %v2849_v49, %v2792_v63  ;;  %v636_v58 = vmul.f32 %v624_v3, %v2855_v21 }
 0x27a   :  { %v554_v31 = vadd.f32 %v548_v8, %v510_v55  ;;  %886 = vmatmul.mubr.f32.vlgmr.msra.gmra.mrb[4].mxu0 %v815_v57  ;;  %1040 = vmatmul.mubr.f32.vlgmr.msra.gmra.mrb[2].mxu1 %v815_v57  ;;  %v687_v25 = vadd.f32 %v681_v20, %v643_v12  ;;  %v532_v12 = vrot.slane %v2859_v47, %v2759_v28 }
 0x27b   :  { %2034 = vmatpush1.bf16.msra.mxu0 %v2805_v41  ;;  %2098 = vmatpush3.bf16.msra.mxu1 %v2743_v54  ;;  %v509_v11 = vmul.f32 %v494_v5, %v2787_v59  ;;  %v576_v61 = vrot.slane %v2859_v47, %v2779_v53  ;;  %v3434_v17 = vrot.slane %v2829_v39, %v2759_v28 }
 0x27c   :  { %v598_v45 = vadd.f32 %v592_v15, %v554_v31  ;;  %v731_v29 = vadd.f32 %v725_v23, %v687_v25  ;;  %2036 = vmatprep.subr.bf16.mxu0 %v2807_v44  ;;  %2100 = vmatprep.subr.bf16.mxu1 %v2809_v35  ;;  %v680_v55 = vmul.f32 %v668_v62, %v2906_v33 }
 0x27d   :  { %v550_v14 = vmul.f32 %v3434_v17, %v2876_v51  ;;  %v756_v3 = vrot.slane %v2849_v49, %v2796_v30  ;;  %v813_v20 = vmul.f32 %v804_v42, %v2934_v6  ;;  %v547_v23 = vmul.f32 %v532_v12, %v2747_v56  ;;  %v431_v12 = vld [vmem:[#allocation8 + $0x3c8] sm:$0xff] }
 0x27e   :  { %v642_v8 = vadd.f32 %v636_v58, %v598_v45  ;;  %v775_v57 = vadd.f32 %v769_v52, %v731_v29  ;;  %v620_v31 = vrot.slane %v2859_v47, %v2785_v16  ;;  %v724_v5 = vmul.f32 %v712_v27, %v2888_v18 }
 0x27f   :  { %v800_v25 = vrot.slane %v2849_v49, %v2803_v43  ;;  %2038 = vmatpush1.bf16.msra.mxu0 %v2815_v10  ;;  %2102 = vmatpush3.bf16.msra.mxu1 %v2809_v35  ;;  %v553_v45 = vadd.f32 %v547_v23, %v509_v11  ;;  %v591_v52 = vmul.f32 %v576_v61, %v2749_v60 }
 0x280   :  { %v686_v15 = vadd.f32 %v680_v55, %v642_v8  ;;  %v819_v62 = vadd.f32 %v813_v20, %v775_v57  ;;  %v664_v42 = vrot.slane %v2859_v47, %v2794_v50  ;;  %2040 = vmatprep.subr.bf16.mxu0 %v2817_v37  ;;  %v556_v58 = vadd.f32 %v550_v14, %v512_v22  ;;  %v434_v55 = vld [vmem:[#allocation8 + $0x3e0] sm:$0xff]  ;;  %v432_v8 = vld [vmem:[#allocation8 + $0x3d0] sm:$0xff]  ;;  %v435_v22 = vld [vmem:[#allocation8 + $0x3e8] sm:$0xff] }
 0x281   :  { %v632_v27 = vrot.slane %v2829_v39, %v2785_v16  ;;  %v768_v49 = vmul.f32 %v756_v3, %v2918_v0  ;;  %2104 = vmatprep.subr.bf16.mxu1 %v2819_v34  ;;  %v597_v11 = vadd.f32 %v591_v52, %v553_v45  ;;  %v635_v61 = vmul.f32 %v620_v31, %v2751_v1 }
 0x282   :  { %v730_v29 = vadd.f32 %v724_v5, %v686_v15  ;;  %891 = vmatprep.mubr.f32.mxu0 %v819_v62  ;;  %1044 = vmatprep.mubr.f32.mxu1 %v819_v62  ;;  %v708_v17 = vrot.slane %v2859_v47, %v2792_v63  ;;  %v3435_v14 = vrot.slane %v2829_v39, %v2779_v53 }
 0x283   :  { %v812_v20 = vmul.f32 %v800_v25, %v2934_v6  ;;  %2042 = vmatpush1.bf16.msra.mxu0 %v2825_v24  ;;  %2106 = vmatpush3.bf16.msra.mxu1 %v2819_v34  ;;  %v641_v23 = vadd.f32 %v635_v61, %v597_v11  ;;  %v679_v31 = vmul.f32 %v664_v42, %v2753_v2  ;;  %v430_v25 = vld [vmem:[#allocation8 + $0x3c0] sm:$0xff]  ;;  %v440_v61 = vld [vmem:[#allocation8 + $0x410] sm:$0xff] }
 0x284   :  { %v594_v57 = vmul.f32 %v3435_v14, %v2811_v32  ;;  %v774_v3 = vadd.f32 %v768_v49, %v730_v29  ;;  %v752_v15 = vrot.slane %v2859_v47, %v2796_v30  ;;  %2044 = vmatprep.subr.bf16.mxu0 %v2827_v13  ;;  %2108 = vmatprep.subr.bf16.mxu1 %v2838_v46  ;;  %v433_v29 = vld [vmem:[#allocation8 + $0x3d8] sm:$0xff]  ;;  %v438_v24 = vld [vmem:[#allocation8 + $0x400] sm:$0xff] }
 0x285   :  { %v2985_v45 = vpack.c.bf16 %v434_v55, %v431_v12  ;;  %v2987_v52 = vpack.c.bf16 %v435_v22, %v432_v8  ;;  %v437_v49 = vld [vmem:[#allocation8 + $0x3f8] sm:$0xff]  ;;  %v685_v14 = vadd.f32 %v679_v31, %v641_v23  ;;  %v723_v11 = vmul.f32 %v708_v17, %v2755_v9  ;;  %v436_v22 = vld [vmem:[#allocation8 + $0x3f0] sm:$0xff]  ;;  %v446_v31 = vld [vmem:[#allocation8 + $0x440] sm:$0xff] }
 0x286   :  { %v600_v5 = vadd.f32 %v594_v57, %v556_v58  ;;  %v818_v62 = vadd.f32 %v812_v20, %v774_v3  ;;  %v796_v42 = vrot.slane %v2859_v47, %v2803_v43  ;;  %v441_v13 = vld [vmem:[#allocation8 + $0x418] sm:$0xff]  ;;  %v638_v34 = vmul.f32 %v632_v27, %v2855_v21  ;;  %v439_v57 = vld [vmem:[#allocation8 + $0x408] sm:$0xff] }
 0x287   :  { %v676_v58 = vrot.slane %v2829_v39, %v2794_v50  ;;  %v729_v12 = vadd.f32 %v723_v11, %v685_v14  ;;  %v767_v55 = vmul.f32 %v752_v15, %v2757_v26  ;;  %2046 = vmatpush1.bf16.msra.mxu0 %v2840_v19  ;;  %2110 = vmatpush3.bf16.msra.mxu1 %v2838_v46  ;;  %v443_v3 = vld [vmem:[#allocation8 + $0x428] sm:$0xff]  ;;  %v444_v15 = vld [vmem:[#allocation8 + $0x430] sm:$0xff]  ;;  %v442_v11 = vld [vmem:[#allocation8 + $0x420] sm:$0xff] }
 0x288   :  { %892 = vmatmul.mubr.f32.gmra.mrb[6].mxu0 %v818_v62  ;;  %1045 = vmatmul.mubr.f32.gmra.mrb[4].mxu1 %v818_v62  ;;  %v2998_v17 = vpack.c.bf16 %v433_v29, %v430_v25  ;;  %v644_v47 = vadd.f32 %v638_v34, %v600_v5  ;;  %v3002_v27 = vpack.c.bf16 %v440_v61, %v437_v49  ;;  %v447_v62 = vld [vmem:[#allocation8 + $0x448] sm:$0xff]  ;;  %v3439_v25 = vmov 0.0   ;;  %v449_v61 = vld [vmem:[#allocation8 + $0x458] sm:$0xff] }
 0x289   :  { %2048 = vmatprep.subr.bf16.mxu0 %v2985_v45  ;;  %2112 = vmatprep.subr.bf16.mxu1 %v2987_v52  ;;  %v3004_v8 = vpack.c.bf16 %v441_v13, %v438_v24  ;;  %v773_v20 = vadd.f32 %v767_v55, %v729_v12  ;;  %v811_v23 = vmul.f32 %v796_v42, %v2764_v36  ;;  %v445_v42 = vld [vmem:[#allocation8 + $0x438] sm:$0xff]  ;;  %v450_v12 = vld [vmem:[#allocation8 + $0x460] sm:$0xff] }
 0x28a   :  { %3436 = vst [vmem:[#allocation64_spill] sm:$0xff] %v2998_v17  ;;  %3437 = vst [vmem:[#allocation65_spill] sm:$0xff] %v3002_v27  ;;  %962 = vmatprep.mubr.f32.mxu0 %v3439_v25  ;;  %v720_v34 = vrot.slane %v2829_v39, %v2792_v63  ;;  %v682_v5 = vmul.f32 %v676_v58, %v2906_v33  ;;  %v3013_v24 = vpack.c.bf16 %v439_v57, %v436_v22  ;;  %v452_v58 = vld [vmem:[#allocation8 + $0x470] sm:$0xff]  ;;  %v453_v55 = vld [vmem:[#allocation8 + $0x478] sm:$0xff] }
 0x28b   :  { %3438 = vst [vmem:[#allocation66_spill] sm:$0xff] %v3004_v8  ;;  %v817_v29 = vadd.f32 %v811_v23, %v773_v20  ;;  %2050 = vmatpush1.bf16.msra.mxu0 %v2998_v17  ;;  %2114 = vmatpush3.bf16.msra.mxu1 %v2987_v52  ;;  %v3017_v49 = vpack.c.bf16 %v446_v31, %v443_v3  ;;  %v448_v31 = vld [vmem:[#allocation8 + $0x450] sm:$0xff] }
 0x28c   :  { %3440 = vst [vmem:[#allocation67_spill] sm:$0xff] %v3013_v24  ;;  %v688_v13 = vadd.f32 %v682_v5, %v644_v47  ;;  %2052 = vmatprep.subr.bf16.mxu0 %v3002_v27  ;;  %2116 = vmatprep.subr.bf16.mxu1 %v3004_v8  ;;  %v3019_v14 = vpack.c.bf16 %v447_v62, %v444_v15  ;;  %v451_v15 = vld [vmem:[#allocation8 + $0x468] sm:$0xff] }
 0x28d   :  { %3441 = vst [vmem:[#allocation68_spill] sm:$0xff] %v3017_v49  ;;  %1913 = vmatprep.mubr.f32.mxu1 %v817_v29  ;;  %v726_v20 = vmul.f32 %v720_v34, %v2888_v18  ;;  %v764_v47 = vrot.slane %v2829_v39, %v2796_v30  ;;  %v3026_v22 = vpack.c.bf16 %v445_v42, %v442_v11 }
 0x28e   :  { %3442 = vst [vmem:[#allocation69_spill] sm:$0xff] %v3019_v14  ;;  %v3030_v3 = vpack.c.bf16 %v452_v58, %v449_v61  ;;  %v3032_v23 = vpack.c.bf16 %v453_v55, %v450_v12  ;;  %v808_v34 = vrot.slane %v2829_v39, %v2803_v43  ;;  %v3039_v5 = vpack.c.bf16 %v451_v15, %v448_v31  ;;  %v3447_v39 = vld [vmem:[#allocation15_spill] sm:$0xff]  ;;  %v3448_v61 = vld [vmem:[#allocation17_spill] sm:$0xff]  ;;  %v3450_v12 = vld [vmem:[#allocation16_spill] sm:$0xff] }
 0x28f   :  { %2054 = vmatpush1.bf16.msra.mxu0 %v3013_v24  ;;  %2118 = vmatpush3.bf16.msra.mxu1 %v3004_v8  ;;  %3443 = vst [vmem:[#allocation70_spill] sm:$0xff] %v3026_v22  ;;  %v732_v57 = vadd.f32 %v726_v20, %v688_v13  ;;  %v770_v62 = vmul.f32 %v764_v47, %v2918_v0  ;;  %v3449_v58 = vld [vmem:[#allocation19_spill] sm:$0xff]  ;;  %v3451_v55 = vld [vmem:[#allocation18_spill] sm:$0xff]  ;;  %v3457_v47 = vld [vmem:[#allocation41_spill] sm:$0xff] }
 0x290   :  { %2056 = vmatprep.subr.bf16.mxu0 %v3017_v49  ;;  %2120 = vmatprep.subr.bf16.mxu1 %v3019_v14  ;;  %3444 = vst [vmem:[#allocation71_spill] sm:$0xff] %v3030_v3  ;;  %3445 = vst [vmem:[#allocation72_spill] sm:$0xff] %v3032_v23  ;;  %v814_v11 = vmul.f32 %v808_v34, %v2934_v6  ;;  %v3455_v20 = vld [vmem:[#allocation22_spill] sm:$0xff]  ;;  %v3460_v15 = vld [vmem:[#allocation43_spill] sm:$0xff] }
 0x291   :  { %3446 = vst [vmem:[#allocation73_spill] sm:$0xff] %v3039_v5  ;;  %v776_v13 = vadd.f32 %v770_v62, %v732_v57  ;;  %v3458_v57 = vld [vmem:[#allocation24_spill] sm:$0xff]  ;;  %v3459_v31 = vld [vmem:[#allocation26_spill] sm:$0xff]  ;;  %v3461_v62 = vld [vmem:[#allocation45_spill] sm:$0xff] }
 0x292   :  { %v3462_v34 = vld [vmem:[#allocation27_spill] sm:$0xff] }
 0x293   :  { %2058 = vmatpush1.bf16.msra.mxu0 %v3026_v22  ;;  %2122 = vmatpush3.bf16.msra.mxu1 %v3019_v14  ;;  %v820_v42 = vadd.f32 %v814_v11, %v776_v13  ;;  %v3463_v13 = vld [vmem:[#allocation28_spill] sm:$0xff]  ;;  %v3464_v11 = vld [vmem:[#allocation47_spill] sm:$0xff] }
 0x294   :  { %2060 = vmatprep.subr.bf16.mxu0 %v3030_v3  ;;  %2124 = vmatprep.subr.bf16.mxu1 %v3032_v23 }
 0x297   :  { %2062 = vmatpush1.bf16.msra.mxu0 %v3039_v5  ;;  %2126 = vmatpush3.bf16.msra.mxu1 %v3032_v23 }
 0x298   :  { %2128 = vmatprep.subr.bf16.mxu1 %v2590_v38  ;;  %2224 = vmatprep.subr.bf16.mxu0 %v2593_v48  ;;  %v3452_v38 = vld [vmem:[#allocation21_spill] sm:$0xff]  ;;  %v3453_v48 = vld [vmem:[#allocation23_spill] sm:$0xff] }
 0x29a   :  { %963 = vmatmul.mubr.f32.vlgmr.msra.gmra.mrb[4].mxu0 %v817_v29  ;;  %1914 = vmatmul.mubr.f32.vlgmr.msra.gmra.mrb[6].mxu1 %v820_v42  ;;  %v3454_v29 = vld [vmem:[#allocation20_spill] sm:$0xff] }
 0x29b   :  { %968 = vmatprep.mubr.f32.mxu0 %v3439_v25  ;;  %2130 = vmatpush1.bf16.msra.mxu1 %v2596_v7  ;;  %v3456_v7 = vld [vmem:[#allocation25_spill] sm:$0xff] }
 0x29c   :  { %2132 = vmatprep.subr.bf16.mxu1 %v3447_v39  ;;  %2226 = vmatpush3.bf16.msra.mxu0 %v3448_v61  ;;  %v3466_v39 = vld [vmem:[#allocation29_spill] sm:$0xff]  ;;  %v3467_v61 = vld [vmem:[#allocation30_spill] sm:$0xff] }
 0x29d   :  { %2228 = vmatprep.subr.bf16.mxu0 %v3449_v58  ;;  %v3468_v58 = vld [vmem:[#allocation51_spill] sm:$0xff] }
 0x29e   :  { %969 = vmatmul.mubr.f32.gmra.mrb[6].mxu0 %v820_v42  ;;  %v3465_v42 = vld [vmem:[#allocation49_spill] sm:$0xff] }
 0x29f   :  { %2134 = vmatpush1.bf16.msra.mxu1 %v3450_v12  ;;  %v3469_v12 = vld [vmem:[#allocation53_spill] sm:$0xff] }
 0x2a0   :  { %2136 = vmatprep.subr.bf16.mxu1 %v3451_v55  ;;  %2230 = vmatpush3.bf16.msra.mxu0 %v3452_v38  ;;  %v3470_v55 = vld [vmem:[#allocation31_spill] sm:$0xff]  ;;  %v3471_v38 = vld [vmem:[#allocation32_spill] sm:$0xff] }
 0x2a1   :  { %2232 = vmatprep.subr.bf16.mxu0 %v3453_v48  ;;  %v3472_v48 = vld [vmem:[#allocation55_spill] sm:$0xff] }
 0x2a3   :  { %2138 = vmatpush1.bf16.msra.mxu1 %v3454_v29  ;;  %v3473_v29 = vld [vmem:[#allocation57_spill] sm:$0xff] }
 0x2a4   :  { %2140 = vmatprep.subr.bf16.mxu1 %v3455_v20  ;;  %2234 = vmatpush3.bf16.msra.mxu0 %v3456_v7  ;;  %v3474_v20 = vld [vmem:[#allocation33_spill] sm:$0xff]  ;;  %v3475_v7 = vld [vmem:[#allocation34_spill] sm:$0xff] }
 0x2a5   :  { %2236 = vmatprep.subr.bf16.mxu0 %v3457_v47  ;;  %v3476_v47 = vld [vmem:[#allocation59_spill] sm:$0xff] }
 0x2a7   :  { %2142 = vmatpush1.bf16.msra.mxu1 %v3458_v57  ;;  %v3477_v57 = vld [vmem:[#allocation35_spill] sm:$0xff] }
 0x2a8   :  { %2144 = vmatprep.subr.bf16.mxu1 %v3459_v31  ;;  %2238 = vmatpush3.bf16.msra.mxu0 %v3460_v15  ;;  %v3478_v31 = vld [vmem:[#allocation36_spill] sm:$0xff]  ;;  %v3479_v15 = vld [vmem:[#allocation37_spill] sm:$0xff] }
 0x2a9   :  { %2240 = vmatprep.subr.bf16.mxu0 %v3461_v62  ;;  %v3480_v62 = vld [vmem:[#allocation38_spill] sm:$0xff] }
 0x2ab   :  { %2146 = vmatpush1.bf16.msra.mxu1 %v3462_v34  ;;  %v3481_v34 = vld [vmem:[#allocation39_spill] sm:$0xff] }
 0x2ac   :  { %2148 = vmatprep.subr.bf16.mxu1 %v3463_v13  ;;  %2242 = vmatpush3.bf16.msra.mxu0 %v3464_v11  ;;  %v3482_v13 = vld [vmem:[#allocation40_spill] sm:$0xff]  ;;  %v3483_v11 = vld [vmem:[#allocation42_spill] sm:$0xff] }
 0x2ad   :  { %2244 = vmatprep.subr.bf16.mxu0 %v3465_v42  ;;  %v3484_v42 = vld [vmem:[#allocation44_spill] sm:$0xff] }
 0x2af   :  { %2150 = vmatpush1.bf16.msra.mxu1 %v3466_v39  ;;  %v3485_v39 = vld [vmem:[#allocation46_spill] sm:$0xff] }
 0x2b0   :  { %2152 = vmatprep.subr.bf16.mxu1 %v3467_v61  ;;  %2246 = vmatpush3.bf16.msra.mxu0 %v3468_v58  ;;  %v3486_v61 = vld [vmem:[#allocation48_spill] sm:$0xff]  ;;  %v3487_v58 = vld [vmem:[#allocation50_spill] sm:$0xff] }
 0x2b1   :  { %2248 = vmatprep.subr.bf16.mxu0 %v3469_v12  ;;  %v3488_v12 = vld [vmem:[#allocation52_spill] sm:$0xff] }
 0x2b3   :  { %2154 = vmatpush1.bf16.msra.mxu1 %v3470_v55  ;;  %v3489_v55 = vld [vmem:[#allocation54_spill] sm:$0xff] }
 0x2b4   :  { %2156 = vmatprep.subr.bf16.mxu1 %v3471_v38  ;;  %2250 = vmatpush3.bf16.msra.mxu0 %v3472_v48  ;;  %v3490_v38 = vld [vmem:[#allocation56_spill] sm:$0xff]  ;;  %v3491_v48 = vld [vmem:[#allocation58_spill] sm:$0xff] }
 0x2b5   :  { %2252 = vmatprep.subr.bf16.mxu0 %v3473_v29  ;;  %v3492_v29 = vld [vmem:[#allocation60_spill] sm:$0xff] }
 0x2b7   :  { %2158 = vmatpush1.bf16.msra.mxu1 %v3474_v20 }
 0x2b8   :  { %2160 = vmatprep.subr.bf16.mxu1 %v3475_v7  ;;  %2254 = vmatpush3.bf16.msra.mxu0 %v3476_v47 }
 0x2b9   :  { %2256 = vmatprep.subr.bf16.mxu0 %v2743_v54 }
 0x2bb   :  { %2162 = vmatpush1.bf16.msra.mxu1 %v3477_v57 }
 0x2bc   :  { %2164 = vmatprep.subr.bf16.mxu1 %v3478_v31 }
 0x2bf   :  { %2166 = vmatpush1.bf16.msra.mxu1 %v3479_v15 }
 0x2c0   :  { %2168 = vmatprep.subr.bf16.mxu1 %v3480_v62  ;;  %v454_v62 = vld [vmem:[%s3312_s5] sm:$0x7]  ;;  %s2480_s5 = smov [#allocation10]  }
 0x2c1   :  { %s1734_s23 = sshll.u32 %s2480_s5, 4  ;;  %s1735_s23 = int_to_ptr.vmem [resolvable:$true] %s1734_s23 }
 0x2c2   :  { %s2433_s25 = scalar_lea.vmem %s1735_s23, 768  ;;  %p2438_p5 = scmp.lt.s32.totalorder %s1735_s23, %s1735_s23 }
 0x2c3   :  { %2170 = vmatpush1.bf16.msra.mxu1 %v3481_v34  ;;  %v3101_v34 = vrot.slane %v454_v62, %v2779_v53  ;;  %p2434_p4 = scmp.ne.s32.totalorder %s1735_s23, %s2433_s25  ;;  %p2439_p6 = scmp.lt.s32.totalorder %s2433_s25, %s2433_s25 }
 0x2c4   :  { %2172 = vmatprep.subr.bf16.mxu1 %v3482_v13  ;;  %v3104_v13 = vrot.slane %v454_v62, %v2766_v40 }
 0x2c5   :  { %3493 = vst [vmem:[#allocation15_spill] sm:$0xff] %v3101_v34  ;;  %p2440_p7 = por %p2439_p6, %p2438_p5 }
 0x2c6   :  { %3494 = vst [vmem:[#allocation17_spill] sm:$0xff] %v3104_v13 }
 0x2c7   :  { %2174 = vmatpush1.bf16.msra.mxu1 %v3483_v11  ;;  %v3107_v11 = vrot.slane %v454_v62, %v2759_v28  ;;  %p2441_p8 = pnand %p2440_p7, %p2434_p4 }
 0x2c8   :  { %2176 = vmatprep.subr.bf16.mxu1 %v3484_v42 }
 0x2c9   :  { %3495 = vst [vmem:[#allocation19_spill] sm:$0xff] %v3107_v11 }
 0x2cb   :  { %2178 = vmatpush1.bf16.msra.mxu1 %v3485_v39 }
 0x2cc   :  { %2180 = vmatprep.subr.bf16.mxu1 %v3486_v61 }
 0x2cf   :  { %2182 = vmatpush1.bf16.msra.mxu1 %v3487_v58 }
 0x2d0   :  { %2184 = vmatprep.subr.bf16.mxu1 %v3488_v12 }
 0x2d3   :  { %2186 = vmatpush1.bf16.msra.mxu1 %v3489_v55 }
 0x2d4   :  { %2188 = vmatprep.subr.bf16.mxu1 %v3490_v38 }
 0x2d7   :  { %2190 = vmatpush1.bf16.msra.mxu1 %v3491_v48 }
 0x2d8   :  { %2192 = vmatprep.subr.bf16.mxu1 %v3492_v29 }
 0x34d   :  { %v1790_v20 = vpop.f32.mrb[2].mxu1 }
 0x34e   :  { %v1791_v7 = vpop.f32.mrb[3].mxu1 }
 0x34f   :  { %v1792_v47 = vadd.f32 %v1791_v7, %v1790_v20 }
 0x351   :  { %v1042_v58 = vadd.f32 %v1792_v47, %v3101_v34 }
 0x35b   :  { %v1793_v57 = vpop.f32.mrb[4].mxu1 }
 0x35c   :  { %v1794_v31 = vpop.f32.mrb[5].mxu1 }
 0x35d   :  { %v1795_v15 = vadd.f32 %v1794_v31, %v1793_v57 }
 0x35f   :  { %v1047_v42 = vadd.f32 %v1795_v15, %v3101_v34 }
 0x36d   :  { %v964_v39 = vpop.f32.mrb[4].mxu0  ;;  %v1915_v61 = vpop.f32.mrb[6].mxu1 }
 0x36e   :  { %v2287_v12 = vadd.f32 %v964_v39, %v3104_v13  ;;  %v3112_v55 = vadd.f32 %v1915_v61, %v1047_v42  ;;  %v966_v38 = vpop.f32.mrb[5].mxu0  ;;  %v1116_v48 = vpop.f32.mrb[7].mxu1 }
 0x36f   :  { %v2288_v29 = vadd.f32 %v966_v38, %v3107_v11  ;;  %v1117_v20 = vadd.f32 %v1116_v48, %v1042_v58 }
 0x370   :  { %v1125_v7 = vmax.f32 %v2287_v12, 0.0 }
 0x371   :  { %v1126_v57 = vmax.f32 %v2288_v29, 0.0  ;;  %v970_v31 = vpop.f32.mrb[6].mxu0  ;;  %v3122_v38 = vmax.f32 %v1117_v20, 0.0 }
 0x372   :  { %v2289_v62 = vadd.f32 %v970_v31, %v3104_v13  ;;  %v972_v5 = vpop.f32.mrb[7].mxu0  ;;  %v1134_v15 = vrot.slane %v1125_v7, %v2766_v40  ;;  %v1164_v23 = vrot.slane %v1125_v7, %v2759_v28  ;;  %v1380_v27 = vrot.slane %v1125_v7, %v2803_v43 }
 0x373   :  { %v2290_v47 = vadd.f32 %v972_v5, %v3107_v11  ;;  %v1138_v42 = vrot.slane %v1126_v57, %v2766_v40  ;;  %v1168_v39 = vrot.slane %v1126_v57, %v2759_v28  ;;  %v1204_v61 = vrot.slane %v1126_v57, %v2779_v53 }
 0x374   :  { %v1240_v58 = vrot.slane %v1126_v57, %v2785_v16  ;;  %v1276_v12 = vrot.slane %v1126_v57, %v2794_v50  ;;  %v1312_v31 = vrot.slane %v1126_v57, %v2792_v63  ;;  %v1200_v5 = vrot.slane %v1125_v7, %v2779_v53 }
 0x375   :  { %v1156_v48 = vmul.f32 %v1138_v42, %v2787_v59  ;;  %v1186_v29 = vmul.f32 %v1168_v39, %v2747_v56  ;;  %v3130_v11 = vmax.f32 %v2289_v62, 0.0  ;;  %v3132_v13 = vmax.f32 %v2290_v47, 0.0 }
 0x376   :  { %v1222_v34 = vmul.f32 %v1204_v61, %v2749_v60  ;;  %v1348_v20 = vrot.slane %v1126_v57, %v2796_v30  ;;  %v1258_v22 = vmul.f32 %v1240_v58, %v2751_v1  ;;  %v1155_v14 = vmul.f32 %v1134_v15, %v2787_v59 }
 0x377   :  { %v1192_v3 = vadd.f32 %v1186_v29, %v1156_v48  ;;  %v1185_v42 = vmul.f32 %v1164_v23, %v2747_v56  ;;  %v1294_v39 = vmul.f32 %v1276_v12, %v2753_v2  ;;  %v1384_v49 = vrot.slane %v1126_v57, %v2803_v43 }
 0x378   :  { %v1236_v62 = vrot.slane %v1125_v7, %v2785_v16  ;;  %v1272_v47 = vrot.slane %v1125_v7, %v2794_v50  ;;  %v1330_v61 = vmul.f32 %v1312_v31, %v2755_v9  ;;  %v1221_v48 = vmul.f32 %v1200_v5, %v2749_v60 }
 0x379   :  { %v1228_v24 = vadd.f32 %v1222_v34, %v1192_v3  ;;  %v1191_v8 = vadd.f32 %v1185_v42, %v1155_v14  ;;  %v1366_v58 = vmul.f32 %v1348_v20, %v2757_v26  ;;  %v1308_v23 = vrot.slane %v1125_v7, %v2792_v63 }
 0x37a   :  { %v1257_v15 = vmul.f32 %v1236_v62, %v2751_v1  ;;  %v1344_v12 = vrot.slane %v1125_v7, %v2796_v30  ;;  %v1150_v3 = vrot.slane %v3132_v13, %v2766_v40  ;;  %v1402_v34 = vmul.f32 %v1384_v49, %v2764_v36 }
 0x37b   :  { %v1264_v29 = vadd.f32 %v1258_v22, %v1228_v24  ;;  %v1227_v57 = vadd.f32 %v1221_v48, %v1191_v8  ;;  %v1293_v14 = vmul.f32 %v1272_v47, %v2753_v2  ;;  %v1180_v31 = vrot.slane %v3132_v13, %v2759_v28 }
 0x37c   :  { %v1216_v5 = vrot.slane %v3132_v13, %v2779_v53  ;;  %v1159_v24 = vmul.f32 %v1150_v3, %v2777_v4  ;;  %v1252_v8 = vrot.slane %v3132_v13, %v2785_v16  ;;  %v1329_v22 = vmul.f32 %v1308_v23, %v2755_v9 }
 0x37d   :  { %v1300_v20 = vadd.f32 %v1294_v39, %v1264_v29  ;;  %v1263_v42 = vadd.f32 %v1257_v15, %v1227_v57  ;;  %v1365_v7 = vmul.f32 %v1344_v12, %v2757_v26  ;;  %v1189_v49 = vmul.f32 %v1180_v31, %v2876_v51 }
 0x37e   :  { %v1288_v62 = vrot.slane %v3132_v13, %v2794_v50  ;;  %v1401_v17 = vmul.f32 %v1380_v27, %v2764_v36  ;;  %v1225_v39 = vmul.f32 %v1216_v5, %v2811_v32  ;;  %v1261_v29 = vmul.f32 %v1252_v8, %v2855_v21 }
 0x37f   :  { %v1336_v47 = vadd.f32 %v1330_v61, %v1300_v20  ;;  %v1299_v48 = vadd.f32 %v1293_v14, %v1263_v42  ;;  %v1195_v15 = vadd.f32 %v1189_v49, %v1159_v24  ;;  %v1324_v57 = vrot.slane %v3132_v13, %v2792_v63 }
 0x380   :  { %v1360_v23 = vrot.slane %v3132_v13, %v2796_v30  ;;  %v1396_v31 = vrot.slane %v3132_v13, %v2803_v43  ;;  %v1146_v61 = vrot.slane %v3130_v11, %v2766_v40  ;;  %v1297_v14 = vmul.f32 %v1288_v62, %v2906_v33 }
 0x381   :  { %v1372_v12 = vadd.f32 %v1366_v58, %v1336_v47  ;;  %v1335_v3 = vadd.f32 %v1329_v22, %v1299_v48  ;;  %v1231_v27 = vadd.f32 %v1225_v39, %v1195_v15  ;;  %v1176_v5 = vrot.slane %v3130_v11, %v2759_v28 }
 0x382   :  { %v1212_v20 = vrot.slane %v3130_v11, %v2779_v53  ;;  %v1158_v58 = vmul.f32 %v1146_v61, %v2777_v4  ;;  %v1248_v8 = vrot.slane %v3130_v11, %v2785_v16  ;;  %v1333_v22 = vmul.f32 %v1324_v57, %v2888_v18 }
 0x383   :  { %v1408_v42 = vadd.f32 %v1402_v34, %v1372_v12  ;;  %v1371_v24 = vadd.f32 %v1365_v7, %v1335_v3  ;;  %v1267_v13 = vadd.f32 %v1261_v29, %v1231_v27  ;;  %v1188_v49 = vmul.f32 %v1176_v5, %v2876_v51 }
 0x384   :  { %v1284_v62 = vrot.slane %v3130_v11, %v2794_v50  ;;  %v1369_v48 = vmul.f32 %v1360_v23, %v2918_v0  ;;  %v1405_v34 = vmul.f32 %v1396_v31, %v2934_v6  ;;  %v1224_v15 = vmul.f32 %v1212_v20, %v2811_v32 }
 0x385   :  { %1477 = vmatprep.mubr.f32.mxu1 %v1408_v42  ;;  %1631 = vmatprep.mubr.f32.mxu0 %v1408_v42  ;;  %v1407_v47 = vadd.f32 %v1401_v17, %v1371_v24  ;;  %v1303_v7 = vadd.f32 %v1297_v14, %v1267_v13  ;;  %v1194_v39 = vadd.f32 %v1188_v49, %v1158_v58 }
 0x386   :  { %v1260_v29 = vmul.f32 %v1248_v8, %v2855_v21  ;;  %v1320_v57 = vrot.slane %v3130_v11, %v2792_v63  ;;  %v1356_v12 = vrot.slane %v3130_v11, %v2796_v30  ;;  %v1142_v17 = vrot.slane %v3122_v38, %v2766_v40 }
 0x387   :  { %1478 = vmatmul.mubr.f32.vlgmr.msra.gmra.mrb[8].mxu1 %v1407_v47  ;;  %1632 = vmatmul.mubr.f32.vlgmr.msra.gmra.mrb[8].mxu0 %v1407_v47  ;;  %v1339_v23 = vadd.f32 %v1333_v22, %v1303_v7  ;;  %v1230_v3 = vadd.f32 %v1224_v15, %v1194_v39  ;;  %v1296_v31 = vmul.f32 %v1284_v62, %v2906_v33  ;;  %v3496_v47 = vld [vmem:[#allocation61_spill] sm:$0xff]  ;;  %v3497_v39 = vld [vmem:[#allocation62_spill] sm:$0xff] }
 0x388   :  { %2194 = vmatpush1.bf16.msra.mxu1 %v2805_v41  ;;  %2258 = vmatpush3.bf16.msra.mxu0 %v2743_v54  ;;  %v1392_v61 = vrot.slane %v3130_v11, %v2803_v43  ;;  %v1157_v27 = vmul.f32 %v1142_v17, %v2787_v59  ;;  %v1172_v14 = vrot.slane %v3122_v38, %v2759_v28 }
 0x389   :  { %2196 = vmatprep.subr.bf16.mxu1 %v2807_v44  ;;  %2260 = vmatprep.subr.bf16.mxu0 %v2809_v35  ;;  %v1375_v5 = vadd.f32 %v1369_v48, %v1339_v23  ;;  %v1266_v41 = vadd.f32 %v1260_v29, %v1230_v3  ;;  %v1208_v54 = vrot.slane %v3122_v38, %v2779_v53  ;;  %v3214_v44 = vmax.f32 %v3112_v55, 0.0  ;;  %v3498_v29 = vld [vmem:[#allocation63_spill] sm:$0xff] }
 0x38a   :  { %v1244_v20 = vrot.slane %v3122_v38, %v2785_v16  ;;  %v1332_v42 = vmul.f32 %v1320_v57, %v2888_v18  ;;  %v1368_v11 = vmul.f32 %v1356_v12, %v2918_v0  ;;  %v1187_v59 = vmul.f32 %v1172_v14, %v2747_v56  ;;  %v3504_v14 = vld [vmem:[#allocation69_spill] sm:$0xff] }
 0x38b   :  { %v1411_v24 = vadd.f32 %v1405_v34, %v1375_v5  ;;  %v1302_v58 = vadd.f32 %v1296_v31, %v1266_v41  ;;  %v1280_v8 = vrot.slane %v3122_v38, %v2794_v50  ;;  %v1404_v13 = vmul.f32 %v1392_v61, %v2934_v6 }
 0x38c   :  { %2198 = vmatpush1.bf16.msra.mxu1 %v2815_v10  ;;  %2262 = vmatpush3.bf16.msra.mxu0 %v2809_v35  ;;  %v1193_v22 = vadd.f32 %v1187_v59, %v1157_v27  ;;  %v1223_v55 = vmul.f32 %v1208_v54, %v2749_v60  ;;  %v1316_v49 = vrot.slane %v3122_v38, %v2792_v63  ;;  %v3505_v54 = vld [vmem:[#allocation70_spill] sm:$0xff] }
 0x38d   :  { %2200 = vmatprep.subr.bf16.mxu1 %v2817_v37  ;;  %1483 = vmatprep.mubr.f32.mxu1 %v1411_v24  ;;  %v1338_v56 = vadd.f32 %v1332_v42, %v1302_v58  ;;  %v1259_v10 = vmul.f32 %v1244_v20, %v2751_v1  ;;  %v1352_v35 = vrot.slane %v3122_v38, %v2796_v30 }
 0x38e   :  { %1636 = vmatprep.mubr.f32.mxu0 %v1411_v24  ;;  %v1229_v62 = vadd.f32 %v1223_v55, %v1193_v22  ;;  %2264 = vmatprep.subr.bf16.mxu0 %v3496_v47  ;;  %v1154_v48 = vrot.slane %v3214_v44, %v2766_v40  ;;  %v1184_v60 = vrot.slane %v3214_v44, %v2759_v28 }
 0x38f   :  { %v1220_v37 = vrot.slane %v3214_v44, %v2779_v53  ;;  %v1374_v34 = vadd.f32 %v1368_v11, %v1338_v56  ;;  %v1295_v7 = vmul.f32 %v1280_v8, %v2753_v2  ;;  %v1256_v1 = vrot.slane %v3214_v44, %v2785_v16  ;;  %v3508_v11 = vld [vmem:[#allocation73_spill] sm:$0xff] }
 0x390   :  { %2202 = vmatpush1.bf16.msra.mxu1 %v3497_v39  ;;  %2266 = vmatpush3.bf16.msra.mxu0 %v3496_v47  ;;  %v1265_v15 = vadd.f32 %v1259_v10, %v1229_v62  ;;  %v1160_v28 = vmul.f32 %v1154_v48, %v2777_v4  ;;  %v1190_v40 = vmul.f32 %v1184_v60, %v2876_v51  ;;  %v3510_v56 = vld [vmem:[#allocation17_spill] sm:$0xff]  ;;  %v3511_v48 = vld [vmem:[#allocation19_spill] sm:$0xff] }
 0x391   :  { %2204 = vmatprep.subr.bf16.mxu1 %v3498_v29  ;;  %2268 = vmatprep.subr.bf16.mxu0 %v2838_v46  ;;  %v1410_v53 = vadd.f32 %v1404_v13, %v1374_v34  ;;  %v1331_v57 = vmul.f32 %v1316_v49, %v2755_v9  ;;  %v1388_v12 = vrot.slane %v3122_v38, %v2803_v43  ;;  %v3509_v13 = vld [vmem:[#allocation15_spill] sm:$0xff] }
 0x392   :  { %v1301_v2 = vadd.f32 %v1295_v7, %v1265_v15  ;;  %v1196_v17 = vadd.f32 %v1190_v40, %v1160_v28  ;;  %v1226_v23 = vmul.f32 %v1220_v37, %v2811_v32  ;;  %v1367_v16 = vmul.f32 %v1352_v35, %v2757_v26 }
 0x393   :  { %1484 = vmatmul.mubr.f32.gmra.mrb[10].mxu1 %v1410_v53  ;;  %1637 = vmatmul.mubr.f32.gmra.mrb[10].mxu0 %v1410_v53  ;;  %v1292_v3 = vrot.slane %v3214_v44, %v2794_v50  ;;  %v1262_v51 = vmul.f32 %v1256_v1, %v2855_v21  ;;  %v1403_v38 = vmul.f32 %v1388_v12, %v2764_v36  ;;  %v3500_v21 = vld [vmem:[#allocation65_spill] sm:$0xff] }
 0x394   :  { %v1337_v4 = vadd.f32 %v1331_v57, %v1301_v2  ;;  %2206 = vmatpush1.bf16.msra.mxu1 %v2840_v19  ;;  %2270 = vmatpush3.bf16.msra.mxu0 %v2838_v46  ;;  %v1232_v9 = vadd.f32 %v1226_v23, %v1196_v17  ;;  %v1328_v19 = vrot.slane %v3214_v44, %v2792_v63  ;;  %v3499_v46 = vld [vmem:[#allocation64_spill] sm:$0xff] }
 0x395   :  { %2208 = vmatprep.subr.bf16.mxu1 %v2985_v45  ;;  %2272 = vmatprep.subr.bf16.mxu0 %v2987_v52  ;;  %v1298_v50 = vmul.f32 %v1292_v3, %v2906_v33  ;;  %v3501_v45 = vld [vmem:[#allocation66_spill] sm:$0xff]  ;;  %v1364_v27 = vrot.slane %v3214_v44, %v2796_v30  ;;  %v3502_v33 = vld [vmem:[#allocation67_spill] sm:$0xff]  ;;  %v3503_v63 = vld [vmem:[#allocation68_spill] sm:$0xff]  ;;  %v1400_v41 = vrot.slane %v3214_v44, %v2803_v43 }
 0x396   :  { %v1373_v32 = vadd.f32 %v1367_v16, %v1337_v4  ;;  %1554 = vmatprep.mubr.f32.mxu1 %v3439_v25  ;;  %v1268_v26 = vadd.f32 %v1262_v51, %v1232_v9  ;;  %v1334_v36 = vmul.f32 %v1328_v19, %v2888_v18  ;;  %v3506_v18 = vld [vmem:[#allocation71_spill] sm:$0xff]  ;;  %v3507_v30 = vld [vmem:[#allocation72_spill] sm:$0xff] }
 0x397   :  { %v1370_v5 = vmul.f32 %v1364_v27, %v2918_v0  ;;  %v1406_v42 = vmul.f32 %v1400_v41, %v2934_v6 }
 0x398   :  { %v1409_v31 = vadd.f32 %v1403_v38, %v1373_v32  ;;  %2210 = vmatpush1.bf16.msra.mxu1 %v3499_v46  ;;  %2274 = vmatpush3.bf16.msra.mxu0 %v2987_v52  ;;  %v1304_v61 = vadd.f32 %v1298_v50, %v1268_v26 }
 0x399   :  { %2212 = vmatprep.subr.bf16.mxu1 %v3500_v21  ;;  %2276 = vmatprep.subr.bf16.mxu0 %v3501_v45 }
 0x39a   :  { %1948 = vmatprep.mubr.f32.mxu0 %v1409_v31  ;;  %v1340_v52 = vadd.f32 %v1334_v36, %v1304_v61 }
 0x39c   :  { %2214 = vmatpush1.bf16.msra.mxu1 %v3502_v33  ;;  %2278 = vmatpush3.bf16.msra.mxu0 %v3501_v45  ;;  %v1376_v20 = vadd.f32 %v1370_v5, %v1340_v52 }
 0x39d   :  { %2216 = vmatprep.subr.bf16.mxu1 %v3503_v63  ;;  %2280 = vmatprep.subr.bf16.mxu0 %v3504_v14 }
 0x39e   :  { %v1412_v59 = vadd.f32 %v1406_v42, %v1376_v20 }
 0x3a0   :  { %2218 = vmatpush1.bf16.msra.mxu1 %v3505_v54  ;;  %2282 = vmatpush3.bf16.msra.mxu0 %v3504_v14 }
 0x3a1   :  { %2220 = vmatprep.subr.bf16.mxu1 %v3506_v18  ;;  %2284 = vmatprep.subr.bf16.mxu0 %v3507_v30 }
 0x3a4   :  { %2222 = vmatpush1.bf16.msra.mxu1 %v3508_v11  ;;  %2286 = vmatpush3.bf16.msra.mxu0 %v3507_v30 }
 0x3a7   :  { %1555 = vmatmul.mubr.f32.vlgmr.msra.gmra.mrb[8].mxu1 %v1409_v31  ;;  %1949 = vmatmul.mubr.f32.vlgmr.msra.gmra.mrb[12].mxu0 %v1412_v59 }
 0x3a8   :  { %1560 = vmatprep.mubr.f32.mxu1 %v3439_v25 }
 0x3ab   :  { %1561 = vmatmul.mubr.f32.gmra.mrb[10].mxu1 %v1412_v59 }
 0x45a   :  { %v1846_v43 = vpop.f32.mrb[8].mxu0 }
 0x45b   :  { %v1847_v0 = vpop.f32.mrb[9].mxu0 }
 0x45c   :  { %v1848_v44 = vadd.f32 %v1847_v0, %v1846_v43 }
 0x45e   :  { %v1634_v49 = vadd.f32 %v1848_v44, %v3509_v13 }
 0x466   :  { %v1849_v24 = vpop.f32.mrb[10].mxu0 }
 0x467   :  { %v1850_v58 = vpop.f32.mrb[11].mxu0 }
 0x468   :  { %v1851_v8 = vadd.f32 %v1850_v58, %v1849_v24 }
 0x46a   :  { %v1639_v22 = vadd.f32 %v1851_v8, %v3509_v13 }
 0x47a   :  { %v1556_v55 = vpop.f32.mrb[8].mxu1  ;;  %v1950_v6 = vpop.f32.mrb[12].mxu0 }
 0x47b   :  { %v2291_v10 = vadd.f32 %v1556_v55, %v3510_v56  ;;  %v1714_v35 = vadd.f32 %v1950_v6, %v1639_v22  ;;  %v1558_v62 = vpop.f32.mrb[9].mxu1  ;;  %v1708_v47 = vpop.f32.mrb[13].mxu0 }
 0x47c   :  { %v2292_v25 = vadd.f32 %v1558_v62, %v3511_v48  ;;  %v1709_v60 = vadd.f32 %v1708_v47, %v1634_v49 }
 0x47d   :  { %v1717_v37 = vmax.f32 %v2291_v10, 0.0  ;;  %v1722_v34 = vmax.f32 %v1714_v35, 0.0 }
 0x47e   :  { %v1718_v7 = vmax.f32 %v2292_v25, 0.0  ;;  %v1719_v39 = vmax.f32 %v1709_v60, 0.0  ;;  %v1562_v1 = vpop.f32.mrb[10].mxu1 }
 0x47f   :  { %1723 = vst [vmem:[#allocation10] sm:$0xff] %v1717_v37  ;;  %1728 = vst [vmem:[#allocation10 + $0x28] sm:$0xff] %v1722_v34  ;;  %v2293_v15 = vadd.f32 %v1562_v1, %v3510_v56  ;;  %v1564_v29 = vpop.f32.mrb[11].mxu1 }
 0x480   :  { %1724 = vst [vmem:[#allocation10 + $0x8] sm:$0xff] %v1718_v7  ;;  %1725 = vst [vmem:[#allocation10 + $0x10] sm:$0xff] %v1719_v39  ;;  %v2294_v28 = vadd.f32 %v1564_v29, %v3511_v48 }
 0x481   :  { %v1720_v40 = vmax.f32 %v2293_v15, 0.0 }
 0x482   :  { %v1721_v53 = vmax.f32 %v2294_v28, 0.0 }
 0x483   :  { %1726 = vst [vmem:[#allocation10 + $0x18] sm:$0xff] %v1720_v40 }
 0x484   :  { %1727 = vst [vmem:[#allocation10 + $0x20] sm:$0xff] %v1721_v53 }
 0x485   :  { %2444 = shalt.err (!%p2441_p8)
}
 0x486   :  { %s2445_s28 = scalar_lea.hbm %s3313_s6, 768 }
 0x487   :  { %p2446_p9 = scmp.ne.s32.totalorder %s3313_s6, %s2445_s28  ;;  %p2449_p10 = scmp.lt.u32.totalorder %s2445_s28, %s3313_s6 }
 0x489   :  { %p2451_p11 = pnand %p2449_p10, %p2446_p9 }
 0x48b   :  { %2454 = shalt.err (!%p2451_p11)
}
 0x48c   :  { %1740 = dma.vmem_to_hbm [thread:$0]  %s1735_s23, 768, %s3313_s6, [#allocation4], %s2468_s0, %s2468_s0, %s2469_s24  }
 0x48d   :  { %2461 = dma.done.wait [#allocation4], 768  }
 0x48e   :  { %2462 = vsyncadd [#allocation4], 4294966528 }
 0x48f   :  { %1744 = vsyncpa [#allocation3], 1 }
 0x490   :  { %1745 = vsyncpa [#allocation6], 1 }
 0x491   :  { %1746 = vsyncpa [#allocation9], 1 }
 0x492   :  { %1747 = vsyncpa [#allocation4], 1 }

</bundles_post_ra>
